<compile_context>
chip_gen: v7x
topology: tpu7x:2x2x1
jax: 0.10.0
libtpu: 0.0.40
codegen_flags: <defaults>
</compile_context>

<pallas_src>
import jax
import jax.numpy as jnp
from jax.experimental import pallas as pl
from jax.experimental.pallas import tpu as pltpu

NUM_CLASSES = 2            # background + plate
C_IN = 4                   # synthetic image channels
C_FEAT = 32                # stub backbone feature channels
H = W = 16                 # image spatial size
ROI = 8                    # fixed 2x2 RoI grid per image -> 8x8 pooled regions
MASK_CH = 256              # MaskRCNNPredictor(256, 256, num_classes) channels
IN_FEATURES = C_FEAT       # FastRCNNPredictor in_features (stub box head output)

ROIS_PER_IMG = 4           # 2x2 RoI grid
PIX_PER_IMG = H * W        # 256 pixel rows per image
PIX_PER_ROI = ROI * ROI    # 64 pixel rows per RoI
K_IM2COL = 9 * C_IN        # 36 im2col columns
BOX_OUT = NUM_CLASSES + 4 * NUM_CLASSES   # 10 = fused cls(2) + bbox(8) head
MASK_OUT = 4 * NUM_CLASSES                # 8 = 4 deconv sub-positions x K


# ----------------------------- fused Pallas kernel -----------------------------

def fused_detector_kernel(p_ref, wconv_ref, bconv_ref, pool_ref,
                          wbox_ref, bbox_ref, wmh_ref,
                          wdec_ref, bdec_ref, wfcn_ref, bfcn_ref,
                          box_ref, mask_ref):
    # One grid step == one image: 256 im2col pixel rows (already permuted into
    # RoI-major order by the wrapper) and 4 RoIs.

    # 1) stub backbone: 3x3 conv as im2col matmul + ReLU           (256, 32)
    feat = jnp.dot(p_ref[...], wconv_ref[...], preferred_element_type=jnp.float32)
    feat = jnp.maximum(feat + bconv_ref[...], 0.0)

    # 2) box branch: per-RoI average pool as a (4, 256) pooling matmul, then the
    #    fused FastRCNNPredictor cls_score+bbox_pred Linear heads.  (4, 10)
    box_feats = jnp.dot(pool_ref[...], feat, preferred_element_type=jnp.float32)
    box_ref[0] = (jnp.dot(box_feats, wbox_ref[...], preferred_element_type=jnp.float32)
                  + bbox_ref[...])

    # 3) mask branch: stub mask_head channel expansion (32->256) + ReLU, then
    #    MaskRCNNPredictor: ConvTranspose2d(256,256,2,2) as one wide (256,1024)
    #    matmul over the 4 sub-positions, ReLU, and the 1x1 mask_fcn_logits as a
    #    block-diagonal (1024, 4*K) matmul.                        (256, 8)
    mf = jnp.maximum(jnp.dot(feat, wmh_ref[...], preferred_element_type=jnp.float32), 0.0)
    z = jnp.maximum(jnp.dot(mf, wdec_ref[...], preferred_element_type=jnp.float32)
                    + bdec_ref[...], 0.0)
    mask_ref[...] = (jnp.dot(z, wfcn_ref[...], preferred_element_type=jnp.float32)
                     + bfcn_ref[...])


def run_fused(patches_roi, pool, w_conv_mat, b_conv, w_box, b_box,
              w_maskhead, w_dec_wide, b_dec_wide, w_fcn_bd, b_fcn_wide, n_images):
    rows = patches_roi.shape[0]            # N * 256
    const2 = lambda n: (0, 0)              # weights: constant blocks, DMA'd once
    return pl.pallas_call(
        fused_detector_kernel,
        out_shape=(jax.ShapeDtypeStruct((n_images, ROIS_PER_IMG, BOX_OUT), jnp.float32),
                   jax.ShapeDtypeStruct((rows, MASK_OUT), jnp.float32)),
        grid=(n_images,),
        in_specs=[pl.BlockSpec((PIX_PER_IMG, K_IM2COL), lambda n: (n, 0)),
                  pl.BlockSpec((K_IM2COL, C_FEAT), const2),
                  pl.BlockSpec((1, C_FEAT), const2),
                  pl.BlockSpec((ROIS_PER_IMG, PIX_PER_IMG), const2),
                  pl.BlockSpec((IN_FEATURES, BOX_OUT), const2),
                  pl.BlockSpec((1, BOX_OUT), const2),
                  pl.BlockSpec((C_FEAT, MASK_CH), const2),
                  pl.BlockSpec((MASK_CH, 4 * MASK_CH), const2),
                  pl.BlockSpec((1, 4 * MASK_CH), const2),
                  pl.BlockSpec((4 * MASK_CH, MASK_OUT), const2),
                  pl.BlockSpec((1, MASK_OUT), const2)],
        out_specs=(pl.BlockSpec((1, ROIS_PER_IMG, BOX_OUT), lambda n: (n, 0, 0)),
                   pl.BlockSpec((PIX_PER_IMG, MASK_OUT), lambda n: (n, 0))),
        compiler_params=pltpu.CompilerParams(dimension_semantics=("parallel",)),
    )(patches_roi, w_conv_mat, b_conv, pool, w_box, b_box,
      w_maskhead, w_dec_wide, b_dec_wide, w_fcn_bd, b_fcn_wide)


# ----------------------------- parameters & forward -----------------------------

def init_params(key):
    ks = jax.random.split(key, 12)

    def dense(k, shape, fan_in, scale=1.0):
        return scale * jax.random.normal(k, shape, jnp.float32) / jnp.sqrt(fan_in)

    return {
        # stub backbone conv (3x3, C_IN -> C_FEAT)
        "w_conv": dense(ks[0], (3, 3, C_IN, C_FEAT), 9 * C_IN),
        "b_conv": 0.01 * jax.random.normal(ks[1], (1, C_FEAT), jnp.float32),
        # stub roi_heads.mask_head channel expansion C_FEAT -> 256 (frozen detector part)
        "w_maskhead": dense(ks[2], (C_FEAT, MASK_CH), C_FEAT),
        # FastRCNNPredictor(in_features, num_classes): cls_score + bbox_pred Linear
        "w_cls": dense(ks[3], (IN_FEATURES, NUM_CLASSES), IN_FEATURES),
        "b_cls": 0.01 * jax.random.normal(ks[4], (1, NUM_CLASSES), jnp.float32),
        "w_bbox": dense(ks[5], (IN_FEATURES, 4 * NUM_CLASSES), IN_FEATURES),
        "b_bbox": 0.01 * jax.random.normal(ks[6], (1, 4 * NUM_CLASSES), jnp.float32),
        # MaskRCNNPredictor(256, 256, num_classes):
        # conv5_mask ConvTranspose2d(256,256,2,2) stored as (4, Cin, Cout), p = di*2+dj
        "w_deconv": dense(ks[7], (4, MASK_CH, MASK_CH), MASK_CH),
        "b_deconv": 0.01 * jax.random.normal(ks[8], (1, MASK_CH), jnp.float32),
        # mask_fcn_logits Conv2d(256, num_classes, 1)
        "w_fcn": dense(ks[9], (MASK_CH, NUM_CLASSES), MASK_CH),
        "b_fcn": 0.01 * jax.random.normal(ks[10], (1, NUM_CLASSES), jnp.float32),
    }


def plate_detector_forward(images_nchw, params):
    N = images_nchw.shape[0]
    x = jnp.transpose(images_nchw, (0, 2, 3, 1))                       # NCHW -> NHWC

    # --- im2col glue for the stub backbone 3x3 conv (pad 1) ---
    xp = jnp.pad(x, ((0, 0), (1, 1), (1, 1), (0, 0)))
    cols = [xp[:, dh:dh + H, dw:dw + W, :] for dh in range(3) for dw in range(3)]
    patches = jnp.concatenate(cols, axis=-1)                           # (N, H, W, 36)

    # --- fixed 2x2 RoI grid per image (static boxes): permute the pixel rows so
    #     the kernel's matmul rows are already in RoI-major order ---
    # TODO(synk): RPN proposal generation, RoIAlign, NMS and detection postprocess of the
    # torchvision detector have no clean Pallas equivalent; fixed-grid RoIs are used instead.
    patches = patches.reshape(N, 2, ROI, 2, ROI, K_IM2COL)             # (n, bi, ph, bj, pw, 36)
    patches = patches.transpose(0, 1, 3, 2, 4, 5).reshape(N * PIX_PER_IMG, K_IM2COL)

    # --- constant glue tensors so everything is a matmul in the fused kernel ---
    pool = ((jnp.arange(PIX_PER_IMG)[None, :] // PIX_PER_ROI)
            == jnp.arange(ROIS_PER_IMG)[:, None]).astype(jnp.float32) / PIX_PER_ROI  # (4, 256)
    w_conv_mat = params["w_conv"].reshape(K_IM2COL, C_FEAT)
    w_box = jnp.concatenate([params["w_cls"], params["w_bbox"]], axis=1)              # (32, 10)
    b_box = jnp.concatenate([params["b_cls"], params["b_bbox"]], axis=1)              # (1, 10)
    # ConvTranspose2d(256,256,2,2) -> one wide 1x1 conv over the 4 sub-positions
    w_dec_wide = jnp.concatenate([params["w_deconv"][p] for p in range(4)], axis=1)   # (256, 1024)
    b_dec_wide = jnp.tile(params["b_deconv"], (1, 4))                                  # (1, 1024)
    # mask_fcn_logits Conv2d(256,K,1) as block-diagonal so the predictor is 2 dots
    w_fcn_bd = jnp.kron(jnp.eye(4, dtype=jnp.float32), params["w_fcn"])               # (1024, 8)
    b_fcn_wide = jnp.tile(params["b_fcn"], (1, 4))                                     # (1, 8)

    # --- single fused Pallas call: backbone + box branch + mask branch ---
    box_out, mask_flat = run_fused(patches, pool, w_conv_mat, params["b_conv"],
                                   w_box, b_box, params["w_maskhead"],
                                   w_dec_wide, b_dec_wide, w_fcn_bd, b_fcn_wide, N)

    box_out = box_out.reshape(N * ROIS_PER_IMG, BOX_OUT)
    cls_logits = box_out[:, :NUM_CLASSES]
    bbox_deltas = box_out[:, NUM_CLASSES:]

    # interleave the 4 sub-positions of the stride-2 transposed conv: (di,dj) -> (2i+di, 2j+dj)
    m = mask_flat.reshape(N * ROIS_PER_IMG, ROI, ROI, 2, 2, NUM_CLASSES)
    m = m.transpose(0, 1, 3, 2, 4, 5).reshape(N * ROIS_PER_IMG, 2 * ROI, 2 * ROI, NUM_CLASSES)
    mask_logits = jnp.transpose(m, (0, 3, 1, 2))                       # NCHW like torchvision

    return {"cls_logits": cls_logits, "bbox_deltas": bbox_deltas, "mask_logits": mask_logits}


def reference_forward(images_nchw, params):
    hp = jax.lax.Precision.HIGHEST
    N = images_nchw.shape[0]
    x = jnp.transpose(images_nchw, (0, 2, 3, 1))
    xp = jnp.pad(x, ((0, 0), (1, 1), (1, 1), (0, 0)))
    cols = [xp[:, dh:dh + H, dw:dw + W, :] for dh in range(3) for dw in range(3)]
    patches = jnp.concatenate(cols, axis=-1).reshape(N, H * W, 9 * C_IN)
    feat = jnp.maximum(
        jnp.dot(patches, params["w_conv"].reshape(9 * C_IN, C_FEAT), precision=hp)
        + params["b_conv"][0], 0.0).reshape(N, H, W, C_FEAT)
    rois = feat.reshape(N, 2, ROI, 2, ROI, C_FEAT).transpose(0, 1, 3, 2, 4, 5)
    rois = rois.reshape(N * 4, ROI, ROI, C_FEAT)
    box_feats = rois.mean(axis=(1, 2))
    cls_logits = jnp.dot(box_feats, params["w_cls"], precision=hp) + params["b_cls"][0]
    bbox = jnp.dot(box_feats, params["w_bbox"], precision=hp) + params["b_bbox"][0]
    mask_feats = jnp.maximum(
        jnp.einsum("rhwc,cd->rhwd", rois, params["w_maskhead"], precision=hp), 0.0)
    mask_feats = mask_feats.reshape(N * 4, ROI * ROI, MASK_CH)
    outs = []
    for p in range(4):
        z = jnp.maximum(jnp.dot(mask_feats, params["w_deconv"][p], precision=hp)
                        + params["b_deconv"][0], 0.0)
        outs.append(jnp.dot(z, params["w_fcn"], precision=hp) + params["b_fcn"][0])
    m = jnp.concatenate(outs, axis=-1).reshape(N * 4, ROI, ROI, 2, 2, NUM_CLASSES)
    m = m.transpose(0, 1, 3, 2, 4, 5).reshape(N * 4, 2 * ROI, 2 * ROI, NUM_CLASSES)
    return {"cls_logits": cls_logits, "bbox_deltas": bbox,
            "mask_logits": jnp.transpose(m, (0, 3, 1, 2))}


if __name__ == "__main__":
    key = jax.random.PRNGKey(0)
    k_img, k_par = jax.random.split(key)
    images = jax.random.normal(k_img, (2, C_IN, H, W), jnp.float32)    # NCHW, like PyTorch
    params = init_params(k_par)

    out = plate_detector_forward(images, params)
    out = jax.block_until_ready(out)

    ref = reference_forward(images, params)
    for name in ("cls_logits", "bbox_deltas", "mask_logits"):
        assert out[name].shape == ref[name].shape, name
        assert jnp.allclose(out[name], ref[name], rtol=1e-3, atol=1e-3), name

    print("KERNEL_OK")
</pallas_src>

<mosaic_0001>
module attributes {stable_mosaic.version = 11 : i64} {
  func.func @fused_detector_kernel(%arg0: i32, %arg1: memref<256x36xf32, #tpu.memory_space<vmem>>, %arg2: memref<36x32xf32, #tpu.memory_space<vmem>>, %arg3: memref<1x32xf32, #tpu.memory_space<vmem>>, %arg4: memref<4x256xf32, #tpu.memory_space<vmem>>, %arg5: memref<32x10xf32, #tpu.memory_space<vmem>>, %arg6: memref<1x10xf32, #tpu.memory_space<vmem>>, %arg7: memref<32x256xf32, #tpu.memory_space<vmem>>, %arg8: memref<256x1024xf32, #tpu.memory_space<vmem>>, %arg9: memref<1x1024xf32, #tpu.memory_space<vmem>>, %arg10: memref<1024x8xf32, #tpu.memory_space<vmem>>, %arg11: memref<1x8xf32, #tpu.memory_space<vmem>>, %arg12: memref<1x4x10xf32, #tpu.memory_space<vmem>>, %arg13: memref<256x8xf32, #tpu.memory_space<vmem>>) attributes {dimension_semantics = [#tpu.dimension_semantics<parallel>], iteration_bounds = array<i64: 2>, scalar_prefetch = 0 : i64, scratch_operands = 0 : i64, tpu.core_type = #tpu.core_type<tc>, window_params = [{transform_indices = @transform_0, window_bounds = array<i64: 256, 36>}, {pipeline_mode = #tpu.pipeline_mode<synchronous>, transform_indices = @transform_1, window_bounds = array<i64: 36, 32>}, {pipeline_mode = #tpu.pipeline_mode<synchronous>, transform_indices = @transform_2, window_bounds = array<i64: 1, 32>}, {pipeline_mode = #tpu.pipeline_mode<synchronous>, transform_indices = @transform_3, window_bounds = array<i64: 4, 256>}, {pipeline_mode = #tpu.pipeline_mode<synchronous>, transform_indices = @transform_4, window_bounds = array<i64: 32, 10>}, {pipeline_mode = #tpu.pipeline_mode<synchronous>, transform_indices = @transform_5, window_bounds = array<i64: 1, 10>}, {pipeline_mode = #tpu.pipeline_mode<synchronous>, transform_indices = @transform_6, window_bounds = array<i64: 32, 256>}, {pipeline_mode = #tpu.pipeline_mode<synchronous>, transform_indices = @transform_7, window_bounds = array<i64: 256, 1024>}, {pipeline_mode = #tpu.pipeline_mode<synchronous>, transform_indices = @transform_8, window_bounds = array<i64: 1, 1024>}, {pipeline_mode = #tpu.pipeline_mode<synchronous>, transform_indices = @transform_9, window_bounds = array<i64: 1024, 8>}, {pipeline_mode = #tpu.pipeline_mode<synchronous>, transform_indices = @transform_10, window_bounds = array<i64: 1, 8>}, {transform_indices = @transform_11, window_bounds = array<i64: 1, 4, 10>}, {transform_indices = @transform_12, window_bounds = array<i64: 256, 8>}]} {
    %c0 = arith.constant 0 : index
    %c0_0 = arith.constant 0 : index
    %0 = vector.load %arg1[%c0, %c0_0] : memref<256x36xf32, #tpu.memory_space<vmem>>, vector<256x36xf32>
    %c0_1 = arith.constant 0 : index
    %c0_2 = arith.constant 0 : index
    %1 = vector.load %arg2[%c0_1, %c0_2] : memref<36x32xf32, #tpu.memory_space<vmem>>, vector<36x32xf32>
    %cst = arith.constant dense<0.000000e+00> : vector<256x32xf32>
    %2 = tpu.matmul %0, %1, %cst {dimension_numbers = #tpu.dot_dimension_numbers<[1], [0], [0], [1], [0, 0, 1, 1], [], []>} : vector<256x36xf32>, vector<36x32xf32>, vector<256x32xf32> -> vector<256x32xf32>
    %c0_3 = arith.constant 0 : index
    %c0_4 = arith.constant 0 : index
    %3 = vector.load %arg3[%c0_3, %c0_4] : memref<1x32xf32, #tpu.memory_space<vmem>>, vector<1x32xf32>
    %4 = vector.broadcast %3 : vector<1x32xf32> to vector<256x32xf32>
    %5 = arith.addf %2, %4 : vector<256x32xf32>
    %cst_5 = arith.constant 0.000000e+00 : f32
    %6 = vector.broadcast %cst_5 : f32 to vector<256x32xf32>
    %7 = arith.maximumf %5, %6 : vector<256x32xf32>
    %c0_6 = arith.constant 0 : index
    %c0_7 = arith.constant 0 : index
    %8 = vector.load %arg4[%c0_6, %c0_7] : memref<4x256xf32, #tpu.memory_space<vmem>>, vector<4x256xf32>
    %cst_8 = arith.constant dense<0.000000e+00> : vector<4x32xf32>
    %9 = tpu.matmul %8, %7, %cst_8 {dimension_numbers = #tpu.dot_dimension_numbers<[1], [0], [0], [1], [0, 0, 1, 1], [], []>} : vector<4x256xf32>, vector<256x32xf32>, vector<4x32xf32> -> vector<4x32xf32>
    %c0_9 = arith.constant 0 : index
    %c0_10 = arith.constant 0 : index
    %10 = vector.load %arg5[%c0_9, %c0_10] : memref<32x10xf32, #tpu.memory_space<vmem>>, vector<32x10xf32>
    %cst_11 = arith.constant dense<0.000000e+00> : vector<4x10xf32>
    %11 = tpu.matmul %9, %10, %cst_11 {dimension_numbers = #tpu.dot_dimension_numbers<[1], [0], [0], [1], [0, 0, 1, 1], [], []>} : vector<4x32xf32>, vector<32x10xf32>, vector<4x10xf32> -> vector<4x10xf32>
    %c0_12 = arith.constant 0 : index
    %c0_13 = arith.constant 0 : index
    %12 = vector.load %arg6[%c0_12, %c0_13] : memref<1x10xf32, #tpu.memory_space<vmem>>, vector<1x10xf32>
    %13 = vector.broadcast %12 : vector<1x10xf32> to vector<4x10xf32>
    %14 = arith.addf %11, %13 : vector<4x10xf32>
    %c0_14 = arith.constant 0 : index
    %c0_15 = arith.constant 0 : index
    %c0_16 = arith.constant 0 : index
    %15 = vector.load %arg12[%c0_14, %c0_15, %c0_16] : memref<1x4x10xf32, #tpu.memory_space<vmem>>, vector<1x4x10xf32>
    %16 = vector.shape_cast %15 : vector<1x4x10xf32> to vector<4x10xf32>
    %17 = vector.shape_cast %14 : vector<4x10xf32> to vector<1x4x10xf32>
    tpu.vector_store %arg12[%c0_14, %c0_15, %c0_16], %17 {strides = array<i32>} : memref<1x4x10xf32, #tpu.memory_space<vmem>>, vector<1x4x10xf32>,
    %c0_17 = arith.constant 0 : index
    %c0_18 = arith.constant 0 : index
    %18 = vector.load %arg7[%c0_17, %c0_18] : memref<32x256xf32, #tpu.memory_space<vmem>>, vector<32x256xf32>
    %cst_19 = arith.constant dense<0.000000e+00> : vector<256x256xf32>
    %19 = tpu.matmul %7, %18, %cst_19 {dimension_numbers = #tpu.dot_dimension_numbers<[1], [0], [0], [1], [0, 0, 1, 1], [], []>} : vector<256x32xf32>, vector<32x256xf32>, vector<256x256xf32> -> vector<256x256xf32>
    %cst_20 = arith.constant 0.000000e+00 : f32
    %20 = vector.broadcast %cst_20 : f32 to vector<256x256xf32>
    %21 = arith.maximumf %19, %20 : vector<256x256xf32>
    %c0_21 = arith.constant 0 : index
    %c0_22 = arith.constant 0 : index
    %22 = vector.load %arg8[%c0_21, %c0_22] : memref<256x1024xf32, #tpu.memory_space<vmem>>, vector<256x1024xf32>
    %cst_23 = arith.constant dense<0.000000e+00> : vector<256x1024xf32>
    %23 = tpu.matmul %21, %22, %cst_23 {dimension_numbers = #tpu.dot_dimension_numbers<[1], [0], [0], [1], [0, 0, 1, 1], [], []>} : vector<256x256xf32>, vector<256x1024xf32>, vector<256x1024xf32> -> vector<256x1024xf32>
    %c0_24 = arith.constant 0 : index
    %c0_25 = arith.constant 0 : index
    %24 = vector.load %arg9[%c0_24, %c0_25] : memref<1x1024xf32, #tpu.memory_space<vmem>>, vector<1x1024xf32>
    %25 = vector.broadcast %24 : vector<1x1024xf32> to vector<256x1024xf32>
    %26 = arith.addf %23, %25 : vector<256x1024xf32>
    %cst_26 = arith.constant 0.000000e+00 : f32
    %27 = vector.broadcast %cst_26 : f32 to vector<256x1024xf32>
    %28 = arith.maximumf %26, %27 : vector<256x1024xf32>
    %c0_27 = arith.constant 0 : index
    %c0_28 = arith.constant 0 : index
    %29 = vector.load %arg10[%c0_27, %c0_28] : memref<1024x8xf32, #tpu.memory_space<vmem>>, vector<1024x8xf32>
    %cst_29 = arith.constant dense<0.000000e+00> : vector<256x8xf32>
    %30 = tpu.matmul %28, %29, %cst_29 {dimension_numbers = #tpu.dot_dimension_numbers<[1], [0], [0], [1], [0, 0, 1, 1], [], []>} : vector<256x1024xf32>, vector<1024x8xf32>, vector<256x8xf32> -> vector<256x8xf32>
    %c0_30 = arith.constant 0 : index
    %c0_31 = arith.constant 0 : index
    %31 = vector.load %arg11[%c0_30, %c0_31] : memref<1x8xf32, #tpu.memory_space<vmem>>, vector<1x8xf32>
    %32 = vector.broadcast %31 : vector<1x8xf32> to vector<256x8xf32>
    %33 = arith.addf %30, %32 : vector<256x8xf32>
    %c0_32 = arith.constant 0 : index
    %c0_33 = arith.constant 0 : index
    %34 = vector.load %arg13[%c0_32, %c0_33] : memref<256x8xf32, #tpu.memory_space<vmem>>, vector<256x8xf32>
    tpu.vector_store %arg13[%c0_32, %c0_33], %33 {strides = array<i32>} : memref<256x8xf32, #tpu.memory_space<vmem>>, vector<256x8xf32>,
    return
  }
  func.func @transform_0(%arg0: i32) -> (i32, i32) {
    %c0_i32 = arith.constant 0 : i32
    %c0_i32_0 = arith.constant 0 : i32
    return %arg0, %c0_i32 : i32, i32
  }
  func.func @transform_1(%arg0: i32) -> (i32, i32) {
    %c0_i32 = arith.constant 0 : i32
    %c0_i32_0 = arith.constant 0 : i32
    %c0_i32_1 = arith.constant 0 : i32
    return %c0_i32, %c0_i32_0 : i32, i32
  }
  func.func @transform_2(%arg0: i32) -> (i32, i32) {
    %c0_i32 = arith.constant 0 : i32
    %c0_i32_0 = arith.constant 0 : i32
    %c0_i32_1 = arith.constant 0 : i32
    return %c0_i32, %c0_i32_0 : i32, i32
  }
  func.func @transform_3(%arg0: i32) -> (i32, i32) {
    %c0_i32 = arith.constant 0 : i32
    %c0_i32_0 = arith.constant 0 : i32
    %c0_i32_1 = arith.constant 0 : i32
    return %c0_i32, %c0_i32_0 : i32, i32
  }
  func.func @transform_4(%arg0: i32) -> (i32, i32) {
    %c0_i32 = arith.constant 0 : i32
    %c0_i32_0 = arith.constant 0 : i32
    %c0_i32_1 = arith.constant 0 : i32
    return %c0_i32, %c0_i32_0 : i32, i32
  }
  func.func @transform_5(%arg0: i32) -> (i32, i32) {
    %c0_i32 = arith.constant 0 : i32
    %c0_i32_0 = arith.constant 0 : i32
    %c0_i32_1 = arith.constant 0 : i32
    return %c0_i32, %c0_i32_0 : i32, i32
  }
  func.func @transform_6(%arg0: i32) -> (i32, i32) {
    %c0_i32 = arith.constant 0 : i32
    %c0_i32_0 = arith.constant 0 : i32
    %c0_i32_1 = arith.constant 0 : i32
    return %c0_i32, %c0_i32_0 : i32, i32
  }
  func.func @transform_7(%arg0: i32) -> (i32, i32) {
    %c0_i32 = arith.constant 0 : i32
    %c0_i32_0 = arith.constant 0 : i32
    %c0_i32_1 = arith.constant 0 : i32
    return %c0_i32, %c0_i32_0 : i32, i32
  }
  func.func @transform_8(%arg0: i32) -> (i32, i32) {
    %c0_i32 = arith.constant 0 : i32
    %c0_i32_0 = arith.constant 0 : i32
    %c0_i32_1 = arith.constant 0 : i32
    return %c0_i32, %c0_i32_0 : i32, i32
  }
  func.func @transform_9(%arg0: i32) -> (i32, i32) {
    %c0_i32 = arith.constant 0 : i32
    %c0_i32_0 = arith.constant 0 : i32
    %c0_i32_1 = arith.constant 0 : i32
    return %c0_i32, %c0_i32_0 : i32, i32
  }
  func.func @transform_10(%arg0: i32) -> (i32, i32) {
    %c0_i32 = arith.constant 0 : i32
    %c0_i32_0 = arith.constant 0 : i32
    %c0_i32_1 = arith.constant 0 : i32
    return %c0_i32, %c0_i32_0 : i32, i32
  }
  func.func @transform_11(%arg0: i32) -> (i32, i32, i32) {
    %c0_i32 = arith.constant 0 : i32
    %c0_i32_0 = arith.constant 0 : i32
    %c0_i32_1 = arith.constant 0 : i32
    return %arg0, %c0_i32, %c0_i32_0 : i32, i32, i32
  }
  func.func @transform_12(%arg0: i32) -> (i32, i32) {
    %c0_i32 = arith.constant 0 : i32
    %c0_i32_0 = arith.constant 0 : i32
    return %arg0, %c0_i32 : i32, i32
  }
}

</mosaic_0001>

<bundles_post_ra>
// kernel: tpu_custom_call.1
= control target key start
LH: loop header
LB: loop body
LE: loop exit
PB: predicated region body
PF: predicated region fallthrough
CT: control target
= control target key end

     0   :  { %18 = vsyncpa [#allocation3], 0  ;;  %s7606_s0 = inlined_call_operand.vmem [shape: f32[512,36], index: 0, kind: input, shape index: {}]   ;;  %s7607_s1 = inlined_call_operand.vmem [shape: f32[36,32], index: 1, kind: input, shape index: {}]   ;;  %s7608_s2 = inlined_call_operand.vmem [shape: f32[1,32], index: 2, kind: input, shape index: {}]   ;;  %s7609_s3 = inlined_call_operand.vmem [shape: f32[4,256], index: 3, kind: input, shape index: {}]   ;;  %s7610_s4 = inlined_call_operand.vmem [shape: f32[32,10], index: 4, kind: input, shape index: {}]   ;;  %s7611_s5 = inlined_call_operand.vmem [shape: f32[1,10], index: 5, kind: input, shape index: {}]   ;;  %s7612_s6 = inlined_call_operand.vmem [shape: f32[32,256], index: 6, kind: input, shape index: {}]   ;;  %s7613_s7 = inlined_call_operand.hbm [shape: f32[256,1024], index: 7, kind: input, shape index: {}]   ;;  %s7614_s8 = inlined_call_operand.vmem [shape: f32[1,1024], index: 8, kind: input, shape index: {}]   ;;  %s7615_s9 = inlined_call_operand.vmem [shape: f32[1024,8], index: 9, kind: input, shape index: {}]   ;;  %s7616_s10 = inlined_call_operand.vmem [shape: f32[1,8], index: 10, kind: input, shape index: {}]   ;;  %s7617_s11 = inlined_call_operand.hbm [shape: f32[2,4,10], index: 11, kind: output, shape index: {0}]   ;;  %s7618_s12 = inlined_call_operand.vmem [shape: f32[512,8], index: 12, kind: output, shape index: {1}]  }
   0x1   :  { %19 = vsyncpa [#allocation4], 0 }
   0x2   :  { %21 = vsyncpa [#allocation4 + $0x1], 0  ;;  %s5394_s21 = smov 0   ;;  %s5396_s22 = smov 0  }
   0x3   :  { %s5398_s23 = smov 0   ;;  %s5400_s24 = smov 0  }
   0x4 LB: > { %7689 = sst [smem:[#allocation8_spill]] %s5316_s23  ;;  %s5415_s25 = sadd.s32 4294967295, %s5320_s24   ;;  %s5320_s24 = sphi %s5400_s24, %s7881_s24   ;;  %s5316_s23 = sphi %s5398_s23, %s7878_s23   ;;  %s5312_s22 = sphi %s5396_s22, %s7880_s22   ;;  %s5308_s21 = sphi %s5394_s21, %s7879_s21  }
   0x5   : > { %s4200_s26 = sadd.s32 4294967294, %s5320_s24   ;;  %s5419_s27 = sadd.s32 1, %s5320_s24  }
   0x6   : > { %s270_s28 = sadd.s32 1, %s5316_s23  ;;  %s267_s29 = ssub.s32 %s5320_s24, %s5419_s27 }
   0x7   : > { %p280_p0 = scmp.ne.s32.totalorder %s5316_s23, %s5312_s22  ;;  %p268_p1 = scmp.eq.s32.totalorder %s267_s29, 0 }
   0x8   : > { %p281_p2 = scmp.eq.s32.totalorder %s5415_s25, 1  ;;  %p286_p3 = scmp.ne.s32.totalorder %s5312_s22, %s5308_s21 }
   0x9   : > { %p287_p4 = scmp.eq.s32.totalorder %s4200_s26, 1  ;;  %p4201_p7 = scmp.ge.s32.totalorder %s5320_s24, 1 }
   0xa   : > { %s5430_s30 = scalar_select %p268_p1, %s5316_s23, %s270_s28  }
   0xb   : > { %p5432_p5 = por %p281_p2, %p280_p0  ;;  %p5436_p6 = por %p287_p4, %p286_p3 }
   0xc   : > { %7690 = sst [smem:[#allocation9_spill]] %s5430_s30  ;;  %p320_p8 = scmp.lt.s32.totalorder %s5320_s24, 3 }
   0xd   : > { %s7691_s13 = scalar_select %p5432_p5, 1, 0 }
   0xe   : > { %s7692_s14 = scalar_select %p5436_p6, 1, 0 }
   0xf   : > { %p7620_p9 = scmp.eq.s32.totalorder %s5415_s25, 0  ;;  %p5443_p10 = pnand %p4201_p7, %p320_p8 }
  0x10   : > { %s5322_s16 = smov [#allocation2]   ;;  %s5226_s26 = scalar_lea.hbm %s7613_s7, 32768 }
  0x11   : > { %s7693_s15 = scalar_select %p5443_p10, 1, 0 }
  0x12   : > { %s350_s17 = sshll.u32 %s5322_s16, 4  ;;  %p5175_p11 = pneg %p5443_p10  ;;  %s351_s17 = int_to_ptr.vmem [resolvable:$true] %s350_s17 }
  0x13   : > { %p5227_p13 = scmp.ne.s32.totalorder %s7613_s7, %s5226_s26  ;;  %p5233_p3 = scmp.lt.u32.totalorder %s5226_s26, %s7613_s7 }
  0x14   : > { %p5451_p12 = pnand %p7620_p9, %p5175_p11 }
  0x16   : > { %p5228_p0 = pneg %p5451_p12 }
  0x18   : > { %p5229_p1 = pnand %p5228_p0, %p5227_p13 }
  0x1a   : > { %p5230_p2 = pneg %p5229_p1 }
  0x1c   : > { %p5235_p4 = pnand %p5233_p3, %p5230_p2 }
  0x1e   : > { %5238 = shalt.err (!%p5235_p4)
}
  0x1f   : > { %s5239_s23 = scalar_lea.vmem %s351_s17, 32768  ;;  %p5247_p9 = scmp.lt.s32.totalorder %s351_s17, %s351_s17 }
  0x20   : > { %p5240_p7 = scmp.ne.s32.totalorder %s351_s17, %s5239_s23  ;;  %p5248_p6 = scmp.lt.s32.totalorder %s5239_s23, %s5239_s23 }
  0x22   : > { %p5242_p8 = pnand %p5240_p7, %p5228_p0  ;;  %p5249_p5 = por %p5248_p6, %p5247_p9 }
  0x24   : > { %p5243_p11 = pneg %p5242_p8 }
  0x26   : > { %p5250_p10 = pnand %p5249_p5, %p5243_p11 }
  0x28   : > { %5253 = shalt.err (!%p5250_p10)
}
  0x29   : > { %s5323_s19 = smov 1024   ;;  %s5324_s20 = smov 64  }
  0x2a   : > { %5178 = dma.hbm_to_vmem [thread:$0]  (!%p5451_p12), %s7613_s7, 32768, %s351_s17, [#allocation3], %s5323_s19, %s5323_s19, %s5324_s20  }
  0x2b   : > { %p7695_p13 = scmp.ne.s32.totalorder %s7693_s15, 0 }
  0x2d   : > { %384 = sbr.rel (%p7695_p13) target bundleno = 1655 (0x677), region = 64 }
  0x34   : > { %p7696_p1 = scmp.eq.s32.totalorder %s5415_s25, 0 }
  0x36   : > { %5299 = dma.done.wait (%p7696_p1), [#allocation3], 32768   ;;  %p7697_p0 = pmov %p7696_p1 }
  0x37   : > { %s4207_s23 = sshll.u32 %s5415_s25, 5  ;;  %vm487_vm0 = vcmask 293888   ;;  %v475_v0 = vld [vmem:[%s7607_s1] sm:$0xff]  ;;  %v476_v1 = vld [vmem:[%s7607_s1 + $0x8] sm:$0xff]  ;;  %v477_v2 = vld [vmem:[%s7607_s1 + $0x10] sm:$0xff]  ;;  %vm584_vm1 = vcmask 1043456  }
  0x38   : > { %5301 = vsyncadd (%p7697_p0), [#allocation3], 4294934528  ;;  %p432_p5 = scmp.lt.s32.totalorder %s4207_s23, 63  ;;  %v4430_v3 = vpack.c.bf16 %v476_v1, %v475_v0  ;;  %v478_v4 = vld [vmem:[%s7607_s1 + $0x18] sm:$0xff]  ;;  %v479_v7 = vld [vmem:[%s7607_s1 + $0x20] sm:$0xf] }
  0x39   : > { %v4434_v6 = vpack.c.bf16 %v478_v4, %v477_v2  ;;  %v5570_v39 = vld [vmem:[%s7609_s3] sm:$0xff]  ;;  %vm5326_vm2 = vmmov 0   ;;  %vm930_vm3 = vcmask 261120   ;;  %s7688_s20 = sand.u32 1, %s5312_s22   ;;  %vm1004_vm4 = vcmask 76800   ;;  %p7874_p9 = scmp.ne.s32.totalorder %s7691_s13, 0 }
  0x3a   : > { %s7883_s23 = smov (!%p432_p5, %s4207_s23), 63  ;;  %4431 = vmatprep.subr.bf16.mxu0 %v4430_v3  ;;  %v847_v40 = vcombine.high %v5570_v39, %v5570_v39  ;;  %v5583_v55 = vld [vmem:[%s7608_s2] ss:$0 sm:$0xff]  ;;  %s5328_s26 = smov [#allocation5]  }
  0x3b   : > { %s7687_s30 = sshll.u32 %s7883_s23, 3  ;;  %4433 = vmatpush3.bf16.msra.mxu0 %v4430_v3  ;;  %s5258_s16 = sshll.u32 %s5328_s26, 4  ;;  %s5259_s16 = int_to_ptr.vmem [resolvable:$false] %s5258_s16 }
  0x3c   : > { %s5486_s15 = scalar_lea.vmem %s7606_s0, %s7687_s30  ;;  %4435 = vmatprep.subr.bf16.mxu0 %v4434_v6  ;;  %913 = vmatprep.mubr.f32.mxu1 %v847_v40  ;;  %s4281_s30 = sshll.u32 %s5415_s25, 6 }
  0x3d   : > { %v443_v5 = vld [vmem:[%s5486_s15] sm:$0xff]  ;;  %v444_v8 = vld [vmem:[%s5486_s15 + $0x8] sm:$0xff]  ;;  %v445_v9 = vld [vmem:[%s5486_s15 + $0x10] sm:$0xff]  ;;  %s7459_s17 = scalar_lea.hbm %s7617_s11, %s4281_s30  ;;  %s7873_s25 = sand.u32 1, %s5312_s22  }
  0x3e   : > { %4371 = vmatprep.mubr.msk.f32.mxu0 %vm487_vm0, %v443_v5  ;;  %v446_v10 = vld [vmem:[%s5486_s15 + $0x18] sm:$0xff]  ;;  %v447_v11 = vld [vmem:[%s5486_s15 + $0x20] sm:$0xff]  ;;  %v448_v12 = vld [vmem:[%s5486_s15 + $0x28] sm:$0xff]  ;;  %s5260_s19 = scalar_lea.vmem %s5259_s16, 128 }
  0x3f   : > { %4437 = vmatpush3.bf16.msra.mxu0 %v4434_v6  ;;  %v449_v13 = vld [vmem:[%s5486_s15 + $0x30] sm:$0xff]  ;;  %v450_v14 = vld [vmem:[%s5486_s15 + $0x38] sm:$0xff]  ;;  %v451_v15 = vld [vmem:[%s5486_s15 + $0x40] sm:$0xff] }
  0x40   : > { %4369 = vmatprep.subr.msk.mxu0 %vm584_vm1, %v479_v7  ;;  %v452_v16 = vld [vmem:[%s5486_s15 + $0x48] sm:$0xff]  ;;  %v453_v17 = vld [vmem:[%s5486_s15 + $0x50] sm:$0xff]  ;;  %v454_v18 = vld [vmem:[%s5486_s15 + $0x58] sm:$0xff] }
  0x41   : > { %v455_v19 = vld [vmem:[%s5486_s15 + $0x60] sm:$0xff]  ;;  %v456_v20 = vld [vmem:[%s5486_s15 + $0x68] sm:$0xff]  ;;  %v457_v21 = vld [vmem:[%s5486_s15 + $0x70] sm:$0xff] }
  0x42   : > { %v458_v22 = vld [vmem:[%s5486_s15 + $0x78] sm:$0xff]  ;;  %v459_v23 = vld [vmem:[%s5486_s15 + $0x80] sm:$0xff]  ;;  %v460_v24 = vld [vmem:[%s5486_s15 + $0x88] sm:$0xff] }
  0x43   : > { %4370 = vmatpush3.msk.msra.mxu0 %vm584_vm1, %v479_v7  ;;  %v461_v25 = vld [vmem:[%s5486_s15 + $0x90] sm:$0xff]  ;;  %v462_v26 = vld [vmem:[%s5486_s15 + $0x98] sm:$0xff]  ;;  %v463_v27 = vld [vmem:[%s5486_s15 + $0xa0] sm:$0xff] }
  0x44   : > { %4372 = vmatmul.mubr.msk.f32.vlgmr.msra.gmra.mrb[0].mxu0 %vm487_vm0, %v444_v8  ;;  %v464_v28 = vld [vmem:[%s5486_s15 + $0xa8] sm:$0xff]  ;;  %v465_v29 = vld [vmem:[%s5486_s15 + $0xb0] sm:$0xff]  ;;  %v466_v30 = vld [vmem:[%s5486_s15 + $0xb8] sm:$0xff] }
  0x45   : > { %4374 = vmatprep.mubr.msk.f32.mxu0 %vm487_vm0, %v445_v9  ;;  %v467_v31 = vld [vmem:[%s5486_s15 + $0xc0] sm:$0xff]  ;;  %v468_v32 = vld [vmem:[%s5486_s15 + $0xc8] sm:$0xff]  ;;  %v469_v33 = vld [vmem:[%s5486_s15 + $0xd0] sm:$0xff] }
  0x46   : > { %v470_v34 = vld [vmem:[%s5486_s15 + $0xd8] sm:$0xff]  ;;  %v471_v35 = vld [vmem:[%s5486_s15 + $0xe0] sm:$0xff]  ;;  %v472_v36 = vld [vmem:[%s5486_s15 + $0xe8] sm:$0xff] }
  0x47   : > { %v473_v37 = vld [vmem:[%s5486_s15 + $0xf0] sm:$0xff]  ;;  %v474_v38 = vld [vmem:[%s5486_s15 + $0xf8] sm:$0xff]  ;;  %s5959_s15 = sshll.u32 %s7688_s20, 2 }
  0x48   : > { %4375 = vmatmul.mubr.msk.f32.gmra.mrb[2].mxu0 %vm487_vm0, %v446_v10  ;;  %s423_s18 = scalar_lea.vmem [#allocation5], %s5959_s15  ;;  %s4082_s15 = scalar_lea.sflag [#allocation4], %s7873_s25 }
  0x49   : > { %4377 = vmatprep.mubr.msk.f32.mxu0 %vm487_vm0, %v447_v11  ;;  %s4100_s20 = sshll.u32 %s423_s18, 4  ;;  %s7461_s20 = int_to_ptr.vmem [resolvable:$true] %s4100_s20 }
  0x4a   : > { %p5261_p2 = scmp.lt.s32.totalorder %s7461_s20, %s5259_s16 }
  0x4c   : > { %4378 = vmatmul.mubr.msk.f32.gmra.mrb[4].mxu0 %vm487_vm0, %v448_v12 }
  0x4d   : > { %4380 = vmatprep.mubr.msk.f32.mxu0 %vm487_vm0, %v449_v13 }
  0x50   : > { %4381 = vmatmul.mubr.msk.f32.gmra.mrb[6].mxu0 %vm487_vm0, %v450_v14 }
  0x51   : > { %4383 = vmatprep.mubr.msk.f32.mxu0 %vm487_vm0, %v451_v15 }
  0x54   : > { %4384 = vmatmul.mubr.msk.f32.gmra.mrb[8].mxu0 %vm487_vm0, %v452_v16 }
  0x55   : > { %4386 = vmatprep.mubr.msk.f32.mxu0 %vm487_vm0, %v453_v17 }
  0x58   : > { %4387 = vmatmul.mubr.msk.f32.gmra.mrb[10].mxu0 %vm487_vm0, %v454_v18 }
  0x59   : > { %4389 = vmatprep.mubr.msk.f32.mxu0 %vm487_vm0, %v455_v19 }
  0x5c   : > { %4390 = vmatmul.mubr.msk.f32.gmra.mrb[12].mxu0 %vm487_vm0, %v456_v20 }
  0x5d   : > { %4392 = vmatprep.mubr.msk.f32.mxu0 %vm487_vm0, %v457_v21 }
  0x60   : > { %4393 = vmatmul.mubr.msk.f32.gmra.mrb[14].mxu0 %vm487_vm0, %v458_v22 }
  0x61   : > { %4395 = vmatprep.mubr.msk.f32.mxu0 %vm487_vm0, %v459_v23 }
  0x64   : > { %4396 = vmatmul.mubr.msk.f32.gmra.mrb[16].mxu0 %vm487_vm0, %v460_v24 }
  0x65   : > { %4398 = vmatprep.mubr.msk.f32.mxu0 %vm487_vm0, %v461_v25 }
  0x68   : > { %4399 = vmatmul.mubr.msk.f32.gmra.mrb[18].mxu0 %vm487_vm0, %v462_v26 }
  0x69   : > { %4401 = vmatprep.mubr.msk.f32.mxu0 %vm487_vm0, %v463_v27 }
  0x6c   : > { %4402 = vmatmul.mubr.msk.f32.gmra.mrb[20].mxu0 %vm487_vm0, %v464_v28 }
  0x6d   : > { %4404 = vmatprep.mubr.msk.f32.mxu0 %vm487_vm0, %v465_v29 }
  0x70   : > { %4405 = vmatmul.mubr.msk.f32.gmra.mrb[22].mxu0 %vm487_vm0, %v466_v30 }
  0x71   : > { %4407 = vmatprep.mubr.msk.f32.mxu0 %vm487_vm0, %v467_v31 }
  0x74   : > { %4408 = vmatmul.mubr.msk.f32.gmra.mrb[24].mxu0 %vm487_vm0, %v468_v32 }
  0x75   : > { %4410 = vmatprep.mubr.msk.f32.mxu0 %vm487_vm0, %v469_v33 }
  0x78   : > { %4411 = vmatmul.mubr.msk.f32.gmra.mrb[26].mxu0 %vm487_vm0, %v470_v34 }
  0x79   : > { %4413 = vmatprep.mubr.msk.f32.mxu0 %vm487_vm0, %v471_v35 }
  0x7c   : > { %4414 = vmatmul.mubr.msk.f32.gmra.mrb[28].mxu0 %vm487_vm0, %v472_v36 }
  0x7d   : > { %4416 = vmatprep.mubr.msk.f32.mxu0 %vm487_vm0, %v473_v37 }
  0x80   : > { %4417 = vmatmul.mubr.msk.f32.gmra.mrb[30].mxu0 %vm487_vm0, %v474_v38 }
 0x117   : > { %v4373_v41 = vpop.f32.mrb[0].mxu0 }
 0x118   : > { %v654_v42 = vpop.f32.mrb[1].mxu0  ;;  %v5590_v58 = vadd.f32 %v4373_v41, %v5583_v55 }
 0x119   : > { %v5593_v59 = vadd.f32 %v5583_v55, %v654_v42 }
 0x11a   : > { %v814_v63 = vmax.f32 %v5590_v58, 0.0 }
 0x11b   : > { %v4376_v43 = vpop.f32.mrb[2].mxu0  ;;  %v813_v1 = vmax.f32 %v5593_v59, 0.0  ;;  %v1460_v59 = vld [vmem:[#allocation2 + $0xe8] sm:$0xff] }
 0x11c   : > { %v664_v44 = vpop.f32.mrb[3].mxu0  ;;  %v5604_v2 = vadd.f32 %v4376_v43, %v5583_v55 }
 0x11d   : > { %v5607_v3 = vadd.f32 %v5583_v55, %v664_v44  ;;  %v4440_v16 = vpack.c.bf16 %v814_v63, %v813_v1 }
 0x11e   : > { %v816_v13 = vmax.f32 %v5604_v2, 0.0  ;;  %v1507_v2 = vld [vmem:[#allocation2 + $0x260] sm:$0xff] }
 0x11f   : > { %v4379_v45 = vpop.f32.mrb[4].mxu0  ;;  %v815_v14 = vmax.f32 %v5607_v3, 0.0  ;;  %v1491_v3 = vld [vmem:[#allocation2 + $0x1e0] sm:$0xff] }
 0x120   : > { %v674_v46 = vpop.f32.mrb[5].mxu0  ;;  %v5612_v7 = vadd.f32 %v4379_v45, %v5583_v55 }
 0x121   : > { %v5618_v10 = vadd.f32 %v5583_v55, %v674_v46  ;;  %v4444_v26 = vpack.c.bf16 %v816_v13, %v815_v14 }
 0x122   : > { %v818_v19 = vmax.f32 %v5612_v7, 0.0  ;;  %v1539_v7 = vld [vmem:[#allocation2 + $0x360] sm:$0xff] }
 0x123   : > { %v4382_v47 = vpop.f32.mrb[6].mxu0  ;;  %v817_v22 = vmax.f32 %v5618_v10, 0.0  ;;  %v1523_v10 = vld [vmem:[#allocation2 + $0x2e0] sm:$0xff] }
 0x124   : > { %v684_v48 = vpop.f32.mrb[7].mxu0  ;;  %v5641_v23 = vadd.f32 %v4382_v47, %v5583_v55 }
 0x125   : > { %v5655_v27 = vadd.f32 %v5583_v55, %v684_v48  ;;  %v4448_v33 = vpack.c.bf16 %v818_v19, %v817_v22 }
 0x126   : > { %v820_v34 = vmax.f32 %v5641_v23, 0.0  ;;  %v1571_v23 = vld [vmem:[#allocation2 + $0x460] sm:$0xff] }
 0x127   : > { %v4385_v49 = vpop.f32.mrb[8].mxu0  ;;  %v819_v37 = vmax.f32 %v5655_v27, 0.0  ;;  %v1555_v27 = vld [vmem:[#allocation2 + $0x3e0] sm:$0xff] }
 0x128   : > { %v694_v50 = vpop.f32.mrb[9].mxu0  ;;  %v5676_v38 = vadd.f32 %v4385_v49, %v5583_v55 }
 0x129   : > { %v5679_v40 = vadd.f32 %v5583_v55, %v694_v50  ;;  %v4452_v50 = vpack.c.bf16 %v820_v34, %v819_v37 }
 0x12b   : > { %v4388_v51 = vpop.f32.mrb[10].mxu0 }
 0x12c   : > { %v5574_v52 = vpop.f32.mrb[11].mxu0  ;;  %v5684_v44 = vadd.f32 %v4388_v51, %v5583_v55  ;;  %v822_v51 = vmax.f32 %v5676_v38, 0.0  ;;  %v1603_v38 = vld [vmem:[#allocation2 + $0x560] sm:$0xff] }
 0x12d   : > { %v5691_v47 = vadd.f32 %v5583_v55, %v5574_v52 }
 0x12f   : > { %v5576_v53 = vpop.f32.mrb[12].mxu0 }
 0x130   : > { %v5578_v54 = vpop.f32.mrb[13].mxu0 }
 0x133   : > { %v5585_v56 = vpop.f32.mrb[14].mxu0 }
 0x134   : > { %v5587_v57 = vpop.f32.mrb[15].mxu0 }
 0x137   : > { %v4397_v60 = vpop.f32.mrb[16].mxu0 }
 0x138   : > { %v5596_v61 = vadd.f32 %v4397_v60, %v5583_v55  ;;  %v734_v62 = vpop.f32.mrb[17].mxu0  ;;  %v821_v60 = vmax.f32 %v5679_v40, 0.0  ;;  %v1587_v40 = vld [vmem:[#allocation2 + $0x4e0] sm:$0xff] }
 0x139   : > { %v5600_v0 = vadd.f32 %v5583_v55, %v734_v62 }
 0x13a   : > { %v7639_v4 = vmax.f32 %v5596_v61, 0.0 }
 0x13b   : > { %v7640_v5 = vmax.f32 %v5600_v0, 0.0  ;;  %v4400_v6 = vpop.f32.mrb[18].mxu0 }
 0x13c   : > { %v5615_v8 = vadd.f32 %v4400_v6, %v5583_v55  ;;  %v744_v9 = vpop.f32.mrb[19].mxu0 }
 0x13d   : > { %v5621_v11 = vadd.f32 %v5583_v55, %v744_v9  ;;  %v4438_v12 = vpack.c.bf16 %v7639_v4, %v7640_v5  ;;  %v7645_v9 = vmax.f32 %v5684_v44, 0.0 }
 0x13e   : > { %v7637_v15 = vmax.f32 %v5615_v8, 0.0 }
 0x13f   : > { %v7638_v17 = vmax.f32 %v5621_v11, 0.0  ;;  %v4403_v18 = vpop.f32.mrb[20].mxu0  ;;  %4439 = vmatprep.subr.bf16.mxu1 %v4438_v12 }
 0x140   : > { %v5637_v20 = vadd.f32 %v4403_v18, %v5583_v55  ;;  %v754_v21 = vpop.f32.mrb[21].mxu0  ;;  %4441 = vmatpush3.bf16.msra.mxu1 %v4440_v16  ;;  %v7646_v18 = vmax.f32 %v5691_v47, 0.0 }
 0x141   : > { %v4442_v24 = vpack.c.bf16 %v7637_v15, %v7638_v17  ;;  %v5648_v25 = vadd.f32 %v5583_v55, %v754_v21  ;;  %v5715_v21 = vadd.f32 %v5576_v53, %v5583_v55  ;;  %v1432_v15 = vld [vmem:[#allocation2 + $0x8] sm:$0xff] }
 0x142   : > { %v7635_v28 = vmax.f32 %v5637_v20, 0.0  ;;  %v1440_v17 = vld [vmem:[#allocation2 + $0x48] sm:$0xff] }
 0x143   : > { %v7636_v29 = vmax.f32 %v5648_v25, 0.0  ;;  %v4406_v30 = vpop.f32.mrb[22].mxu0  ;;  %4443 = vmatprep.subr.bf16.mxu1 %v4442_v24 }
 0x144   : > { %v5660_v31 = vadd.f32 %v4406_v30, %v5583_v55  ;;  %v764_v32 = vpop.f32.mrb[23].mxu0  ;;  %4445 = vmatpush3.bf16.msra.mxu1 %v4444_v26  ;;  %v4456_v30 = vpack.c.bf16 %v822_v51, %v821_v60 }
 0x145   : > { %v4446_v35 = vpack.c.bf16 %v7635_v28, %v7636_v29  ;;  %v5672_v36 = vadd.f32 %v5583_v55, %v764_v32  ;;  %v5730_v32 = vadd.f32 %v5583_v55, %v5578_v54  ;;  %v1010_v28 = vld [vmem:[%s7612_s6 + $0x20] sm:$0xff]  ;;  %v1012_v29 = vld [vmem:[%s7612_s6 + $0x30] sm:$0xff] }
 0x146   : > { %v7627_v41 = vmax.f32 %v5660_v31, 0.0  ;;  %v4482_v4 = vpack.c.bf16 %v1012_v29, %v1010_v28  ;;  %v1463_v28 = vld [vmem:[#allocation2 + $0x100] sm:$0xff] }
 0x147   : > { %v7632_v42 = vmax.f32 %v5672_v36, 0.0  ;;  %v4409_v43 = vpop.f32.mrb[24].mxu0  ;;  %4447 = vmatprep.subr.bf16.mxu1 %v4446_v35  ;;  %v1471_v29 = vld [vmem:[#allocation2 + $0x140] sm:$0xff] }
 0x148   : > { %v5687_v45 = vadd.f32 %v4409_v43, %v5583_v55  ;;  %v774_v46 = vpop.f32.mrb[25].mxu0  ;;  %4449 = vmatpush3.bf16.msra.mxu1 %v4448_v33 }
 0x149   : > { %v4450_v48 = vpack.c.bf16 %v7627_v41, %v7632_v42  ;;  %v5698_v49 = vadd.f32 %v5583_v55, %v774_v46 }
 0x14a   : > { %v7623_v52 = vmax.f32 %v5687_v45, 0.0 }
 0x14b   : > { %v7624_v62 = vmax.f32 %v5698_v49, 0.0  ;;  %v4412_v6 = vpop.f32.mrb[26].mxu0  ;;  %4451 = vmatprep.subr.bf16.mxu1 %v4450_v48  ;;  %v4460_v48 = vpack.c.bf16 %v7645_v9, %v7646_v18  ;;  %v1451_v9 = vld [vmem:[#allocation2 + $0xa0] sm:$0xff] }
 0x14c   : > { %v5710_v12 = vadd.f32 %v4412_v6, %v5583_v55  ;;  %v784_v16 = vpop.f32.mrb[27].mxu0  ;;  %4453 = vmatpush3.bf16.msra.mxu1 %v4452_v50  ;;  %v7643_v50 = vmax.f32 %v5715_v21, 0.0  ;;  %v1467_v18 = vld [vmem:[#allocation2 + $0x120] sm:$0xff] }
 0x14d   : > { %v4454_v24 = vpack.c.bf16 %v7623_v52, %v7624_v62  ;;  %v5722_v26 = vadd.f32 %v5583_v55, %v784_v16  ;;  %v7644_v16 = vmax.f32 %v5730_v32, 0.0 }
 0x14e   : > { %v7625_v53 = vmax.f32 %v5710_v12, 0.0 }
 0x14f   : > { %v7626_v33 = vmax.f32 %v5722_v26, 0.0  ;;  %v4415_v35 = vpop.f32.mrb[28].mxu0  ;;  %4455 = vmatprep.subr.bf16.mxu1 %v4454_v24  ;;  %v5752_v24 = vadd.f32 %v5585_v56, %v5583_v55 }
 0x150   : > { %v5735_v43 = vadd.f32 %v4415_v35, %v5583_v55  ;;  %v794_v46 = vpop.f32.mrb[29].mxu0  ;;  %4457 = vmatpush3.bf16.msra.mxu1 %v4456_v30  ;;  %v5756_v30 = vadd.f32 %v5583_v55, %v5587_v57  ;;  %v4464_v57 = vpack.c.bf16 %v7643_v50, %v7644_v16  ;;  %v1464_v50 = vld [vmem:[#allocation2 + $0x108] sm:$0xff] }
 0x151   : > { %v4458_v54 = vpack.c.bf16 %v7625_v53, %v7626_v33  ;;  %v5747_v6 = vadd.f32 %v5583_v55, %v794_v46  ;;  %v1472_v16 = vld [vmem:[#allocation2 + $0x148] sm:$0xff] }
 0x152   : > { %v7628_v35 = vmax.f32 %v5735_v43, 0.0 }
 0x153   : > { %v7629_v52 = vmax.f32 %v5747_v6, 0.0  ;;  %v4418_v62 = vpop.f32.mrb[30].mxu0  ;;  %4459 = vmatprep.subr.bf16.mxu1 %v4458_v54  ;;  %v7641_v54 = vmax.f32 %v5752_v24, 0.0 }
 0x154   : > { %v5761_v53 = vadd.f32 %v4418_v62, %v5583_v55  ;;  %v804_v46 = vpop.f32.mrb[31].mxu0  ;;  %4461 = vmatpush3.bf16.msra.mxu1 %v4460_v48  ;;  %v7642_v62 = vmax.f32 %v5756_v30, 0.0 }
 0x155   : > { %v4462_v56 = vpack.c.bf16 %v7628_v35, %v7629_v52  ;;  %v5768_v33 = vadd.f32 %v5583_v55, %v804_v46  ;;  %v919_v46 = vld [vmem:[%s7610_s4] sm:$0xff]  ;;  %v920_v35 = vld [vmem:[%s7610_s4 + $0x8] sm:$0xff] }
 0x156   : > { %v7630_v41 = vmax.f32 %v5761_v53, 0.0  ;;  %v4468_v52 = vpack.c.bf16 %v7641_v54, %v7642_v62  ;;  %v1447_v54 = vld [vmem:[#allocation2 + $0x80] sm:$0xff] }
 0x157   : > { %v7631_v48 = vmax.f32 %v5768_v33, 0.0  ;;  %4463 = vmatprep.subr.bf16.mxu1 %v4462_v56  ;;  %v4471_v56 = vpack.c.bf16 %v920_v35, %v919_v46  ;;  %v1006_v46 = vld [vmem:[%s7612_s6] sm:$0xff] }
 0x158   : > { %4465 = vmatpush3.bf16.msra.mxu1 %v4464_v57  ;;  %v7633_v57 = vmov 0.0|0.0   ;;  %v1455_v62 = vld [vmem:[#allocation2 + $0xc0] sm:$0xff] }
 0x159   : > { %v4466_v55 = vpack.c.bf16 %v7630_v41, %v7631_v48  ;;  %v921_v41 = vld [vmem:[%s7610_s4 + $0x10] sm:$0xff]  ;;  %v922_v48 = vld [vmem:[%s7610_s4 + $0x18] sm:$0xff] }
 0x15a   : > { %v4474_v42 = vpack.c.bf16 %v922_v48, %v921_v41  ;;  %v1008_v41 = vld [vmem:[%s7612_s6 + $0x10] sm:$0xff]  ;;  %v1013_v48 = vld [vmem:[%s7612_s6 + $0x38] sm:$0xff] }
 0x15b   : > { %4467 = vmatprep.subr.bf16.mxu1 %v4466_v55  ;;  %v5327_v55 = vmov 0.0  }
 0x15c   : > { %4469 = vmatpush3.bf16.msra.mxu1 %v4468_v52  ;;  %v1007_v52 = vld [vmem:[%s7612_s6 + $0x8] sm:$0xff] }
 0x15d   : > { %4470 = vmatprep.subr.bf16.mxu1 %v7633_v57 }
 0x15f   : > { %914 = vmatmul.mubr.f32.vlgmr.msra.gmra.mrb[0].mxu1 %v5570_v39  ;;  %v1009_v39 = vld [vmem:[%s7612_s6 + $0x18] sm:$0xff] }
 0x160   : > { %4472 = vmatpush3.bf16.msra.mxu1 %v4471_v56  ;;  %v4476_v35 = vpack.c.bf16 %v1009_v39, %v1007_v52  ;;  %4427 = vmatprep.mubr.msk.f32.mxu1 %vm5326_vm2, %v5327_v55  ;;  %v4478_v39 = vpack.c.bf16 %v1008_v41, %v1006_v46  ;;  %v4484_v46 = vpack.c.bf16 %v1440_v17, %v1432_v15  ;;  %v1431_v41 = vld [vmem:[#allocation2] sm:$0xff]  ;;  %v1480_v17 = vld [vmem:[#allocation2 + $0x188] sm:$0xff] }
 0x161   : > { %4473 = vmatprep.subr.bf16.mxu1 %v7633_v57  ;;  %v4490_v15 = vpack.c.bf16 %v1455_v62, %v1447_v54  ;;  %v4494_v62 = vpack.c.bf16 %v1471_v29, %v1463_v28  ;;  %v1492_v28 = vld [vmem:[#allocation2 + $0x1e8] sm:$0xff] }
 0x164   : > { %4475 = vmatpush3.bf16.msra.mxu1 %v4474_v42  ;;  %v1011_v42 = vld [vmem:[%s7612_s6 + $0x28] sm:$0xff] }
 0x165   : > { %4477 = vmatprep.subr.bf16.mxu1 %v4476_v35  ;;  %v4480_v57 = vpack.c.bf16 %v1013_v48, %v1011_v42  ;;  %v1439_v42 = vld [vmem:[#allocation2 + $0x40] sm:$0xff]  ;;  %v1448_v48 = vld [vmem:[#allocation2 + $0x88] sm:$0xff] }
 0x232   : > { %v4353_v56 = vpop.f32.mrb[0].mxu1 }
 0x233   : > { %v4354_v52 = vpop.f32.mrb[1].mxu1 }
 0x234   : > { %v4355_v35 = vadd.f32 %v4354_v52, %v4353_v56  ;;  %v1456_v56 = vld [vmem:[#allocation2 + $0xc8] sm:$0xff]  ;;  %v4486_v52 = vpack.c.bf16 %v1439_v42, %v1431_v41  ;;  %v1435_v41 = vld [vmem:[#allocation2 + $0x20] sm:$0xff] }
 0x235   : > { %v4488_v5 = vpack.c.bf16 %v1456_v56, %v1448_v48  ;;  %v1443_v42 = vld [vmem:[#allocation2 + $0x60] sm:$0xff]  ;;  %v1452_v48 = vld [vmem:[#allocation2 + $0xa8] sm:$0xff] }
 0x236   : > { %4428 = vmatmul.mubr.msk.f32.vlgmr.msra.gmra.mrb[2].mxu1 %vm930_vm3, %v4355_v35  ;;  %v4492_v35 = vpack.c.bf16 %v1472_v16, %v1464_v50  ;;  %v4614_v56 = vpack.c.bf16 %v1443_v42, %v1435_v41  ;;  %v4616_v54 = vpack.c.bf16 %v1460_v59, %v1452_v48  ;;  %v1476_v50 = vld [vmem:[#allocation2 + $0x168] sm:$0xff]  ;;  %v1483_v59 = vld [vmem:[#allocation2 + $0x1a0] sm:$0xff] }
 0x237   : > { %4479 = vmatpush1.bf16.msra.mxu1 %v4478_v39  ;;  %1174 = vmatprep.mubr.f32.mxu1 %v5327_v55  ;;  %v1444_v39 = vld [vmem:[#allocation2 + $0x68] sm:$0xff] }
 0x238   : > { %4481 = vmatprep.subr.bf16.mxu1 %v4480_v57  ;;  %v1488_v57 = vld [vmem:[#allocation2 + $0x1c8] sm:$0xff] }
 0x239   : > { %v4496_v16 = vpack.c.bf16 %v1488_v57, %v1480_v17  ;;  %v1504_v42 = vld [vmem:[#allocation2 + $0x248] sm:$0xff]  ;;  %v1495_v57 = vld [vmem:[#allocation2 + $0x200] sm:$0xff] }
 0x23a   : > { %v1520_v48 = vld [vmem:[#allocation2 + $0x2c8] sm:$0xff] }
 0x23b   : > { %4483 = vmatpush1.bf16.msra.mxu1 %v4482_v4  ;;  %v1436_v4 = vld [vmem:[#allocation2 + $0x28] sm:$0xff] }
 0x23c   : > { %4485 = vmatprep.subr.bf16.mxu1 %v4484_v46  ;;  %v4612_v46 = vpack.c.bf16 %v1444_v39, %v1436_v4  ;;  %v1487_v4 = vld [vmem:[#allocation2 + $0x1c0] sm:$0xff]  ;;  %v1496_v39 = vld [vmem:[#allocation2 + $0x208] sm:$0xff] }
 0x23d   : > { %v4500_v17 = vpack.c.bf16 %v1504_v42, %v1496_v39  ;;  %v1499_v39 = vld [vmem:[#allocation2 + $0x220] sm:$0xff] }
 0x23e   : > { %4247 = vmatmul.mubr.msk.f32.vlgmr.msra.gmra.mrb[4].mxu1 %vm930_vm3, %v813_v1  ;;  %v1459_v1 = vld [vmem:[#allocation2 + $0xe0] sm:$0xff]  ;;  %4613 = vmatprep.subr.bf16.mxu0 %v4612_v46 }
 0x23f   : > { %1180 = vmatprep.mubr.f32.mxu1 %v5327_v55  ;;  %4487 = vmatpush1.bf16.msra.mxu1 %v4486_v52  ;;  %v1479_v52 = vld [vmem:[#allocation2 + $0x180] sm:$0xff]  ;;  %v4618_v41 = vpack.c.bf16 %v1459_v1, %v1451_v9  ;;  %v1512_v9 = vld [vmem:[#allocation2 + $0x288] sm:$0xff] }
 0x240   : > { %4489 = vmatprep.subr.bf16.mxu1 %v4488_v5  ;;  %v1468_v5 = vld [vmem:[#allocation2 + $0x128] sm:$0xff]  ;;  %4615 = vmatpush1.bf16.msra.mxu0 %v4614_v56  ;;  %v4498_v29 = vpack.c.bf16 %v1487_v4, %v1479_v52 }
 0x241   : > { %4617 = vmatprep.subr.bf16.mxu0 %v4616_v54  ;;  %v4620_v58 = vpack.c.bf16 %v1476_v50, %v1468_v5  ;;  %v1508_v1 = vld [vmem:[#allocation2 + $0x268] sm:$0xff]  ;;  %v1511_v5 = vld [vmem:[#allocation2 + $0x280] sm:$0xff] }
 0x242   : > { %4248 = vmatmul.mubr.msk.f32.gmra.mrb[6].mxu1 %vm930_vm3, %v814_v63  ;;  %v1475_v63 = vld [vmem:[#allocation2 + $0x160] sm:$0xff]  ;;  %v1536_v52 = vld [vmem:[#allocation2 + $0x348] sm:$0xff] }
 0x243   : > { %1186 = vmatprep.mubr.f32.mxu1 %v5327_v55  ;;  %4491 = vmatpush1.bf16.msra.mxu1 %v4490_v15  ;;  %v1484_v15 = vld [vmem:[#allocation2 + $0x1a8] sm:$0xff]  ;;  %v4622_v46 = vpack.c.bf16 %v1475_v63, %v1467_v18  ;;  %v1519_v50 = vld [vmem:[#allocation2 + $0x2c0] sm:$0xff] }
 0x244   : > { %4493 = vmatprep.subr.bf16.mxu1 %v4492_v35  ;;  %v1503_v35 = vld [vmem:[#allocation2 + $0x240] sm:$0xff]  ;;  %4619 = vmatpush1.bf16.msra.mxu0 %v4618_v41  ;;  %v4624_v56 = vpack.c.bf16 %v1492_v28, %v1484_v15  ;;  %v1528_v18 = vld [vmem:[#allocation2 + $0x308] sm:$0xff]  ;;  %v4506_v42 = vpack.c.bf16 %v1519_v50, %v1511_v5 }
 0x245   : > { %4621 = vmatprep.subr.bf16.mxu0 %v4620_v58  ;;  %v4502_v54 = vpack.c.bf16 %v1503_v35, %v1495_v57  ;;  %v1524_v41 = vld [vmem:[#allocation2 + $0x2e8] sm:$0xff]  ;;  %v4508_v58 = vpack.c.bf16 %v1536_v52, %v1528_v18  ;;  %v1527_v63 = vld [vmem:[#allocation2 + $0x300] sm:$0xff] }
 0x246   : > { %4249 = vmatmul.mubr.msk.f32.gmra.mrb[8].mxu1 %vm930_vm3, %v815_v14  ;;  %v1500_v14 = vld [vmem:[#allocation2 + $0x228] sm:$0xff]  ;;  %v1535_v15 = vld [vmem:[#allocation2 + $0x340] sm:$0xff] }
 0x247   : > { %1192 = vmatprep.mubr.f32.mxu1 %v5327_v55  ;;  %4495 = vmatpush1.bf16.msra.mxu1 %v4494_v62  ;;  %v4504_v62 = vpack.c.bf16 %v1520_v48, %v1512_v9  ;;  %v4628_v4 = vpack.c.bf16 %v1508_v1, %v1500_v14  ;;  %v1544_v28 = vld [vmem:[#allocation2 + $0x388] sm:$0xff]  ;;  %v1515_v35 = vld [vmem:[#allocation2 + $0x2a0] sm:$0xff] }
 0x248   : > { %4497 = vmatprep.subr.bf16.mxu1 %v4496_v16  ;;  %4623 = vmatpush1.bf16.msra.mxu0 %v4622_v46  ;;  %v4626_v16 = vpack.c.bf16 %v1491_v3, %v1483_v59  ;;  %v1540_v9 = vld [vmem:[#allocation2 + $0x368] sm:$0xff]  ;;  %v4510_v46 = vpack.c.bf16 %v1535_v15, %v1527_v63  ;;  %v1551_v59 = vld [vmem:[#allocation2 + $0x3c0] sm:$0xff]  ;;  %v4634_v14 = vpack.c.bf16 %v1523_v10, %v1515_v35 }
 0x249   : > { %4625 = vmatprep.subr.bf16.mxu0 %v4624_v56  ;;  %v1543_v56 = vld [vmem:[#allocation2 + $0x380] sm:$0xff]  ;;  %v1560_v3 = vld [vmem:[#allocation2 + $0x408] sm:$0xff] }
 0x24a   : > { %4250 = vmatmul.mubr.msk.f32.gmra.mrb[10].mxu1 %vm930_vm3, %v816_v13  ;;  %v1516_v13 = vld [vmem:[#allocation2 + $0x2a8] sm:$0xff]  ;;  %v4514_v50 = vpack.c.bf16 %v1551_v59, %v1543_v56  ;;  %v1567_v52 = vld [vmem:[#allocation2 + $0x440] sm:$0xff] }
 0x24b   : > { %1198 = vmatprep.mubr.f32.mxu1 %v5327_v55  ;;  %4499 = vmatpush1.bf16.msra.mxu1 %v4498_v29  ;;  %v4630_v29 = vpack.c.bf16 %v1507_v2, %v1499_v39  ;;  %v4632_v57 = vpack.c.bf16 %v1524_v41, %v1516_v13  ;;  %v1568_v1 = vld [vmem:[#allocation2 + $0x448] sm:$0xff]  ;;  %v1547_v41 = vld [vmem:[#allocation2 + $0x3a0] sm:$0xff] }
 0x24c   : > { %4501 = vmatprep.subr.bf16.mxu1 %v4500_v17  ;;  %4627 = vmatpush1.bf16.msra.mxu0 %v4626_v16  ;;  %v1552_v17 = vld [vmem:[#allocation2 + $0x3c8] sm:$0xff]  ;;  %v4516_v18 = vpack.c.bf16 %v1568_v1, %v1560_v3  ;;  %v1559_v16 = vld [vmem:[#allocation2 + $0x400] sm:$0xff] }
 0x24d   : > { %4629 = vmatprep.subr.bf16.mxu0 %v4628_v4  ;;  %v4512_v48 = vpack.c.bf16 %v1552_v17, %v1544_v28  ;;  %v1556_v5 = vld [vmem:[#allocation2 + $0x3e8] sm:$0xff]  ;;  %v1575_v15 = vld [vmem:[#allocation2 + $0x480] sm:$0xff]  ;;  %v4642_v17 = vpack.c.bf16 %v1555_v27, %v1547_v41 }
 0x24e   : > { %4251 = vmatmul.mubr.msk.f32.gmra.mrb[12].mxu1 %vm930_vm3, %v817_v22  ;;  %v1532_v22 = vld [vmem:[#allocation2 + $0x328] sm:$0xff]  ;;  %v1583_v28 = vld [vmem:[#allocation2 + $0x4c0] sm:$0xff] }
 0x24f   : > { %1204 = vmatprep.mubr.f32.mxu1 %v5327_v55  ;;  %4503 = vmatpush1.bf16.msra.mxu1 %v4502_v54  ;;  %v4636_v54 = vpack.c.bf16 %v1540_v9, %v1532_v22  ;;  %v1576_v4 = vld [vmem:[#allocation2 + $0x488] sm:$0xff]  ;;  %v1563_v10 = vld [vmem:[#allocation2 + $0x420] sm:$0xff]  ;;  %v4522_v9 = vpack.c.bf16 %v1583_v28, %v1575_v15 }
 0x250   : > { %4505 = vmatprep.subr.bf16.mxu1 %v4504_v62  ;;  %4631 = vmatpush1.bf16.msra.mxu0 %v4630_v29  ;;  %v1531_v62 = vld [vmem:[#allocation2 + $0x320] sm:$0xff]  ;;  %v1584_v2 = vld [vmem:[#allocation2 + $0x4c8] sm:$0xff]  ;;  %v4646_v3 = vpack.c.bf16 %v1571_v23, %v1563_v10 }
 0x251   : > { %4633 = vmatprep.subr.bf16.mxu0 %v4632_v57  ;;  %v4638_v39 = vpack.c.bf16 %v1539_v7, %v1531_v62  ;;  %v4520_v63 = vpack.c.bf16 %v1584_v2, %v1576_v4  ;;  %v1592_v29 = vld [vmem:[#allocation2 + $0x508] sm:$0xff]  ;;  %v1599_v56 = vld [vmem:[#allocation2 + $0x540] sm:$0xff] }
 0x252   : > { %4252 = vmatmul.mubr.msk.f32.gmra.mrb[14].mxu1 %vm930_vm3, %v818_v19  ;;  %v1548_v19 = vld [vmem:[#allocation2 + $0x3a8] sm:$0xff] }
 0x253   : > { %1210 = vmatprep.mubr.f32.mxu1 %v5327_v55  ;;  %4507 = vmatpush1.bf16.msra.mxu1 %v4506_v42  ;;  %v4640_v13 = vpack.c.bf16 %v1556_v5, %v1548_v19  ;;  %v1572_v42 = vld [vmem:[#allocation2 + $0x468] sm:$0xff]  ;;  %v1607_v5 = vld [vmem:[#allocation2 + $0x580] sm:$0xff] }
 0x254   : > { %4509 = vmatprep.subr.bf16.mxu1 %v4508_v58  ;;  %4635 = vmatpush1.bf16.msra.mxu0 %v4634_v14  ;;  %v4518_v58 = vpack.c.bf16 %v1567_v52, %v1559_v16  ;;  %v1600_v57 = vld [vmem:[#allocation2 + $0x548] sm:$0xff] }
 0x255   : > { %4637 = vmatprep.subr.bf16.mxu0 %v4636_v54  ;;  %v1588_v22 = vld [vmem:[#allocation2 + $0x4e8] sm:$0xff]  ;;  %v1579_v54 = vld [vmem:[#allocation2 + $0x4a0] sm:$0xff] }
 0x256   : > { %4253 = vmatmul.mubr.msk.f32.gmra.mrb[16].mxu1 %vm930_vm3, %v819_v37  ;;  %v1564_v37 = vld [vmem:[#allocation2 + $0x428] sm:$0xff]  ;;  %v4650_v16 = vpack.c.bf16 %v1587_v40, %v1579_v54  ;;  %v1655_v54 = vld [vmem:[#allocation2 + $0x700] sm:$0xff] }
 0x257   : > { %1216 = vmatprep.mubr.f32.mxu1 %v5327_v55  ;;  %4511 = vmatpush1.bf16.msra.mxu1 %v4510_v46  ;;  %v4644_v35 = vpack.c.bf16 %v1572_v42, %v1564_v37  ;;  %v4524_v46 = vpack.c.bf16 %v1600_v57, %v1592_v29  ;;  %v1608_v59 = vld [vmem:[#allocation2 + $0x588] sm:$0xff]  ;;  %v1623_v37 = vld [vmem:[#allocation2 + $0x600] sm:$0xff] }
 0x258   : > { %4513 = vmatprep.subr.bf16.mxu1 %v4512_v48  ;;  %4639 = vmatpush1.bf16.msra.mxu0 %v4638_v39  ;;  %v1591_v48 = vld [vmem:[#allocation2 + $0x500] sm:$0xff]  ;;  %v1616_v14 = vld [vmem:[#allocation2 + $0x5c8] sm:$0xff] }
 0x259   : > { %4641 = vmatprep.subr.bf16.mxu0 %v4640_v13  ;;  %v1604_v62 = vld [vmem:[#allocation2 + $0x568] sm:$0xff]  ;;  %v4526_v7 = vpack.c.bf16 %v1599_v56, %v1591_v48  ;;  %v4528_v19 = vpack.c.bf16 %v1616_v14, %v1608_v59  ;;  %v1595_v39 = vld [vmem:[#allocation2 + $0x520] sm:$0xff] }
 0x25a   : > { %4254 = vmatmul.mubr.msk.f32.gmra.mrb[18].mxu1 %vm930_vm3, %v820_v34  ;;  %v1580_v34 = vld [vmem:[#allocation2 + $0x4a8] sm:$0xff]  ;;  %v1631_v42 = vld [vmem:[#allocation2 + $0x640] sm:$0xff] }
 0x25b   : > { %1222 = vmatprep.mubr.f32.mxu1 %v5327_v55  ;;  %4515 = vmatpush1.bf16.msra.mxu1 %v4514_v50  ;;  %v4648_v1 = vpack.c.bf16 %v1588_v22, %v1580_v34  ;;  %v1615_v50 = vld [vmem:[#allocation2 + $0x5c0] sm:$0xff]  ;;  %v1632_v52 = vld [vmem:[#allocation2 + $0x648] sm:$0xff]  ;;  %v4534_v10 = vpack.c.bf16 %v1631_v42, %v1623_v37 }
 0x25c   : > { %4517 = vmatprep.subr.bf16.mxu1 %v4516_v18  ;;  %4643 = vmatpush1.bf16.msra.mxu0 %v4642_v17  ;;  %v1624_v18 = vld [vmem:[#allocation2 + $0x608] sm:$0xff]  ;;  %v4530_v41 = vpack.c.bf16 %v1615_v50, %v1607_v5  ;;  %v1611_v29 = vld [vmem:[#allocation2 + $0x5a0] sm:$0xff]  ;;  %v7699_v17 = vmax.f32 %v5684_v44, 0.0  ;;  %v7705_v5 = vmax.f32 %v5596_v61, 0.0 }
 0x25d   : > { %4645 = vmatprep.subr.bf16.mxu0 %v4644_v35  ;;  %v1612_v2 = vld [vmem:[#allocation2 + $0x5a8] sm:$0xff]  ;;  %v4532_v27 = vpack.c.bf16 %v1632_v52, %v1624_v18  ;;  %v1639_v34 = vld [vmem:[#allocation2 + $0x680] sm:$0xff] }
 0x25e   : > { %4255 = vmatmul.mubr.msk.f32.gmra.mrb[20].mxu1 %vm930_vm3, %v821_v60  ;;  %v1596_v60 = vld [vmem:[#allocation2 + $0x528] sm:$0xff]  ;;  %v1647_v22 = vld [vmem:[#allocation2 + $0x6c0] sm:$0xff] }
 0x25f   : > { %1228 = vmatprep.mubr.f32.mxu1 %v5327_v55  ;;  %4519 = vmatpush1.bf16.msra.mxu1 %v4518_v58  ;;  %v4652_v4 = vpack.c.bf16 %v1604_v62, %v1596_v60  ;;  %v1620_v13 = vld [vmem:[#allocation2 + $0x5e8] sm:$0xff]  ;;  %v1627_v59 = vld [vmem:[#allocation2 + $0x620] sm:$0xff]  ;;  %v4538_v14 = vpack.c.bf16 %v1647_v22, %v1639_v34  ;;  %v7701_v62 = vmax.f32 %v5715_v21, 0.0  ;;  %v7704_v21 = vmax.f32 %v5600_v0, 0.0 }
 0x260   : > { %4521 = vmatprep.subr.bf16.mxu1 %v4520_v63  ;;  %4647 = vmatpush1.bf16.msra.mxu0 %v4646_v3  ;;  %v1640_v58 = vld [vmem:[#allocation2 + $0x688] sm:$0xff]  ;;  %v4654_v63 = vpack.c.bf16 %v1603_v38, %v1595_v39  ;;  %v4656_v28 = vpack.c.bf16 %v1620_v13, %v1612_v2  ;;  %v1635_v44 = vld [vmem:[#allocation2 + $0x660] sm:$0xff]  ;;  %v7700_v3 = vmax.f32 %v5730_v32, 0.0  ;;  %v7713_v22 = vmax.f32 %v5698_v49, 0.0 }
 0x261   : > { %4649 = vmatprep.subr.bf16.mxu0 %v4648_v1  ;;  %v1648_v15 = vld [vmem:[#allocation2 + $0x6c8] sm:$0xff]  ;;  %v1663_v40 = vld [vmem:[#allocation2 + $0x740] sm:$0xff]  ;;  %v4662_v60 = vpack.c.bf16 %v1635_v44, %v1627_v59  ;;  %v7716_v49 = vmax.f32 %v5710_v12, 0.0  ;;  %v7720_v12 = vmax.f32 %v5761_v53, 0.0  ;;  %v1433_v53 = vld [vmem:[#allocation2 + $0x10] sm:$0xff] }
 0x262   : > { %4256 = vmatmul.mubr.msk.f32.gmra.mrb[22].mxu1 %vm930_vm3, %v822_v51  ;;  %v7698_v51 = vmax.f32 %v5691_v47, 0.0  ;;  %v1619_v47 = vld [vmem:[#allocation2 + $0x5e0] sm:$0xff]  ;;  %v1628_v57 = vld [vmem:[#allocation2 + $0x628] sm:$0xff]  ;;  %v4536_v23 = vpack.c.bf16 %v1648_v15, %v1640_v58  ;;  %v4542_v32 = vpack.c.bf16 %v1663_v40, %v1655_v54  ;;  %v1450_v44 = vld [vmem:[#allocation2 + $0x98] sm:$0xff] }
 0x263   : > { %1234 = vmatprep.mubr.f32.mxu1 %v5327_v55  ;;  %4523 = vmatpush1.bf16.msra.mxu1 %v4522_v9  ;;  %v1636_v35 = vld [vmem:[#allocation2 + $0x668] sm:$0xff]  ;;  %v4658_v9 = vpack.c.bf16 %v1619_v47, %v1611_v29  ;;  %v1643_v0 = vld [vmem:[#allocation2 + $0x6a0] sm:$0xff]  ;;  %v1449_v40 = vld [vmem:[#allocation2 + $0x90] sm:$0xff] }
 0x264   : > { %4525 = vmatprep.subr.bf16.mxu1 %v4524_v46  ;;  %4651 = vmatpush1.bf16.msra.mxu0 %v4650_v16  ;;  %v1656_v46 = vld [vmem:[#allocation2 + $0x708] sm:$0xff]  ;;  %v4660_v56 = vpack.c.bf16 %v1636_v35, %v1628_v57  ;;  %v1651_v16 = vld [vmem:[#allocation2 + $0x6e0] sm:$0xff]  ;;  %v7709_v57 = vmax.f32 %v5637_v20, 0.0  ;;  %v7711_v35 = vmax.f32 %v5672_v36, 0.0  ;;  %v7712_v20 = vmax.f32 %v5660_v31, 0.0 }
 0x265   : > { %4653 = vmatprep.subr.bf16.mxu0 %v4652_v4  ;;  %v1664_v48 = vld [vmem:[#allocation2 + $0x748] sm:$0xff]  ;;  %v4666_v52 = vpack.c.bf16 %v1651_v16, %v1643_v0  ;;  %v7707_v4 = vmax.f32 %v5615_v8, 0.0  ;;  %v1671_v38 = vld [vmem:[#allocation2 + $0x780] sm:$0xff]  ;;  %v7708_v8 = vmax.f32 %v5648_v25, 0.0  ;;  %v7710_v25 = vmov 0.0|0.0   ;;  %v1465_v16 = vld [vmem:[#allocation2 + $0x110] sm:$0xff] }
 0x266   : > { %4257 = vmatmul.mubr.msk.f32.gmra.mrb[24].mxu1 %vm930_vm3, %v7698_v51  ;;  %v4540_v1 = vpack.c.bf16 %v1664_v48, %v1656_v46  ;;  %v1652_v50 = vld [vmem:[#allocation2 + $0x6e8] sm:$0xff]  ;;  %v1679_v51 = vld [vmem:[#allocation2 + $0x7c0] sm:$0xff]  ;;  %v7714_v36 = vmax.f32 %v5687_v45, 0.0  ;;  %v7715_v31 = vmax.f32 %v5722_v26, 0.0  ;;  %v7718_v45 = vmax.f32 %v5735_v43, 0.0 }
 0x267   : > { %1240 = vmatprep.mubr.f32.mxu1 %v5327_v55  ;;  %4527 = vmatpush1.bf16.msra.mxu1 %v4526_v7  ;;  %v7702_v7 = vmax.f32 %v5756_v30, 0.0  ;;  %v7706_v30 = vmax.f32 %v5621_v11, 0.0  ;;  %v1672_v61 = vld [vmem:[#allocation2 + $0x788] sm:$0xff]  ;;  %v1659_v37 = vld [vmem:[#allocation2 + $0x720] sm:$0xff]  ;;  %v7719_v26 = vmax.f32 %v5768_v33, 0.0 }
 0x268   : > { %4529 = vmatprep.subr.bf16.mxu1 %v4528_v19  ;;  %4655 = vmatpush1.bf16.msra.mxu0 %v4654_v63  ;;  %v7703_v19 = vmax.f32 %v5752_v24, 0.0  ;;  %v1644_v24 = vld [vmem:[#allocation2 + $0x6a8] sm:$0xff]  ;;  %v1667_v42 = vld [vmem:[#allocation2 + $0x760] sm:$0xff] }
 0x269   : > { %4657 = vmatprep.subr.bf16.mxu0 %v4656_v28  ;;  %v4664_v18 = vpack.c.bf16 %v1652_v50, %v1644_v24  ;;  %v1680_v39 = vld [vmem:[#allocation2 + $0x7c8] sm:$0xff]  ;;  %v4670_v58 = vpack.c.bf16 %v1667_v42, %v1659_v37  ;;  %v1675_v29 = vld [vmem:[#allocation2 + $0x7a0] sm:$0xff]  ;;  %v1474_v24 = vld [vmem:[#allocation2 + $0x158] sm:$0xff] }
 0x26a   : > { %4258 = vmatmul.mubr.msk.f32.gmra.mrb[26].mxu1 %vm930_vm3, %v7699_v17  ;;  %v4544_v11 = vpack.c.bf16 %v1680_v39, %v1672_v61  ;;  %v1660_v2 = vld [vmem:[#allocation2 + $0x728] sm:$0xff]  ;;  %v1683_v47 = vld [vmem:[#allocation2 + $0x7e0] sm:$0xff]  ;;  %v1473_v39 = vld [vmem:[#allocation2 + $0x150] sm:$0xff] }
 0x26b   : > { %1246 = vmatprep.mubr.f32.mxu1 %v5327_v55  ;;  %4531 = vmatpush1.bf16.msra.mxu1 %v4530_v41  ;;  %v1668_v13 = vld [vmem:[#allocation2 + $0x768] sm:$0xff]  ;;  %v4546_v41 = vpack.c.bf16 %v1679_v51, %v1671_v38  ;;  %v4674_v17 = vpack.c.bf16 %v1683_v47, %v1675_v29  ;;  %v4245_v43 = vld [vmem:[%s7611_s5] ss:$0 sm:$0xff]  ;;  %v4558_v37 = vpack.c.bf16 %v1473_v39, %v1465_v16  ;;  %v1481_v42 = vld [vmem:[#allocation2 + $0x190] sm:$0xff] }
 0x26c   : > { %4533 = vmatprep.subr.bf16.mxu1 %v4532_v27  ;;  %4659 = vmatpush1.bf16.msra.mxu0 %v4658_v9  ;;  %v4668_v27 = vpack.c.bf16 %v1668_v13, %v1660_v2  ;;  %v1676_v63 = vld [vmem:[#allocation2 + $0x7a8] sm:$0xff]  ;;  %v7717_v9 = vmax.f32 %v5747_v6, 0.0  ;;  %v3013_v48 = vld [vmem:[%s7615_s9] sm:$0xff]  ;;  %v1482_v2 = vld [vmem:[#allocation2 + $0x198] sm:$0xff] }
 0x26d   : > { %4661 = vmatprep.subr.bf16.mxu0 %v4660_v56  ;;  %v1684_v15 = vld [vmem:[#allocation2 + $0x7e8] sm:$0xff]  ;;  %v3017_v38 = vld [vmem:[%s7615_s9 + $0x20] sm:$0xff]  ;;  %v1490_v13 = vld [vmem:[#allocation2 + $0x1d8] sm:$0xff] }
 0x26e   : > { %4259 = vmatmul.mubr.msk.f32.gmra.mrb[28].mxu1 %vm930_vm3, %v7700_v3  ;;  %v4672_v28 = vpack.c.bf16 %v1684_v15, %v1676_v63  ;;  %v3014_v56 = vld [vmem:[%s7615_s9 + $0x8] sm:$0xff]  ;;  %v1458_v3 = vld [vmem:[#allocation2 + $0xd8] sm:$0xff]  ;;  %v4560_v63 = vpack.c.bf16 %v1490_v13, %v1482_v2  ;;  %v1489_v15 = vld [vmem:[#allocation2 + $0x1d0] sm:$0xff] }
 0x26f   : > { %1252 = vmatprep.mubr.f32.mxu1 %v5327_v55  ;;  %4535 = vmatpush1.bf16.msra.mxu1 %v4534_v10  ;;  %v1434_v10 = vld [vmem:[#allocation2 + $0x18] sm:$0xff] }
 0x270   : > { %4537 = vmatprep.subr.bf16.mxu1 %v4536_v23  ;;  %4663 = vmatpush1.bf16.msra.mxu0 %v4662_v60  ;;  %v1442_v23 = vld [vmem:[#allocation2 + $0x58] sm:$0xff]  ;;  %v4741_v60 = vpack.c.bf16 %v3014_v56, %v3013_v48  ;;  %v1521_v56 = vld [vmem:[#allocation2 + $0x2d0] sm:$0xff] }
 0x271   : > { %4665 = vmatprep.subr.bf16.mxu0 %v4664_v18  ;;  %v4548_v34 = vpack.c.bf16 %v1442_v23, %v1434_v10  ;;  %v3020_v29 = vld [vmem:[%s7615_s9 + $0x38] sm:$0xff]  ;;  %v4562_v23 = vpack.c.bf16 %v1489_v15, %v1481_v42 }
 0x272   : > { %4260 = vmatmul.mubr.msk.f32.gmra.mrb[30].mxu1 %vm930_vm3, %v7701_v62  ;;  %v1546_v16 = vld [vmem:[#allocation2 + $0x398] sm:$0xff] }
 0x273   : > { %1258 = vmatprep.mubr.f32.mxu1 %v5327_v55  ;;  %4539 = vmatpush1.bf16.msra.mxu1 %v4538_v14  ;;  %v3028_v42 = vld [vmem:[%s7615_s9 + $0x78] sm:$0xff] }
 0x274   : > { %4541 = vmatprep.subr.bf16.mxu1 %v4540_v1  ;;  %4667 = vmatpush1.bf16.msra.mxu0 %v4666_v52  ;;  %v1570_v15 = vld [vmem:[#allocation2 + $0x458] sm:$0xff] }
 0x275   : > { %4669 = vmatprep.subr.bf16.mxu0 %v4668_v27 }
 0x276   : > { %4261 = vmatmul.mubr.msk.f32.gmra.mrb[32].mxu1 %vm930_vm3, %v7702_v7  ;;  %v1457_v7 = vld [vmem:[#allocation2 + $0xd0] sm:$0xff] }
 0x277   : > { %1264 = vmatprep.mubr.f32.mxu1 %v5327_v55  ;;  %4543 = vmatpush1.bf16.msra.mxu1 %v4542_v32  ;;  %v4552_v32 = vpack.c.bf16 %v1458_v3, %v1450_v44  ;;  %v4554_v0 = vpack.c.bf16 %v1457_v7, %v1449_v40  ;;  %v3024_v44 = vld [vmem:[%s7615_s9 + $0x58] sm:$0xff]  ;;  %v1529_v7 = vld [vmem:[#allocation2 + $0x310] sm:$0xff] }
 0x278   : > { %4545 = vmatprep.subr.bf16.mxu1 %v4544_v11  ;;  %4671 = vmatpush1.bf16.msra.mxu0 %v4670_v58  ;;  %v3018_v11 = vld [vmem:[%s7615_s9 + $0x28] sm:$0xff] }
 0x279   : > { %4673 = vmatprep.subr.bf16.mxu0 %v4672_v28  ;;  %v4747_v58 = vpack.c.bf16 %v3018_v11, %v3017_v38  ;;  %v3019_v28 = vld [vmem:[%s7615_s9 + $0x30] sm:$0xff] }
 0x27a   : > { %4262 = vmatmul.mubr.msk.f32.gmra.mrb[34].mxu1 %vm930_vm3, %v7703_v19  ;;  %v3015_v19 = vld [vmem:[%s7615_s9 + $0x10] sm:$0xff] }
 0x27b   : > { %1270 = vmatprep.mubr.f32.mxu1 %v5327_v55  ;;  %4547 = vmatpush1.bf16.msra.mxu1 %v4546_v41  ;;  %v1545_v11 = vld [vmem:[#allocation2 + $0x390] sm:$0xff] }
 0x27c   : > { %4675 = vmatpush1.bf16.msra.mxu0 %v4674_v17  ;;  %4549 = vmatprep.subr.bf16.mxu1 %v4548_v34  ;;  %v1498_v17 = vld [vmem:[#allocation2 + $0x218] sm:$0xff]  ;;  %v1497_v34 = vld [vmem:[#allocation2 + $0x210] sm:$0xff] }
 0x27d   : > { %4740 = vmatprep.subr.bf16.mxu0 %v7710_v25 }
 0x27e   : > { %4263 = vmatmul.mubr.msk.f32.gmra.mrb[36].mxu1 %vm930_vm3, %v7704_v21  ;;  %v3016_v21 = vld [vmem:[%s7615_s9 + $0x18] sm:$0xff] }
 0x27f   : > { %1276 = vmatprep.mubr.f32.mxu1 %v5327_v55  ;;  %v4744_v52 = vpack.c.bf16 %v3016_v21, %v3015_v19 }
 0x282   : > { %4264 = vmatmul.mubr.msk.f32.gmra.mrb[38].mxu1 %vm930_vm3, %v7705_v5 }
 0x283   : > { %1282 = vmatprep.mubr.f32.mxu1 %v5327_v55 }
 0x286   : > { %4265 = vmatmul.mubr.msk.f32.gmra.mrb[40].mxu1 %vm930_vm3, %v7706_v30  ;;  %v1466_v30 = vld [vmem:[#allocation2 + $0x118] sm:$0xff] }
 0x287   : > { %1288 = vmatprep.mubr.f32.mxu1 %v5327_v55  ;;  %v4556_v61 = vpack.c.bf16 %v1474_v24, %v1466_v30  ;;  %v1537_v30 = vld [vmem:[#allocation2 + $0x350] sm:$0xff]  ;;  %v3025_v24 = vld [vmem:[%s7615_s9 + $0x60] sm:$0xff] }
 0x288   : > { %v4574_v38 = vpack.c.bf16 %v1537_v30, %v1529_v7  ;;  %v1601_v30 = vld [vmem:[#allocation2 + $0x550] sm:$0xff] }
 0x28a   : > { %4266 = vmatmul.mubr.msk.f32.gmra.mrb[42].mxu1 %vm930_vm3, %v7707_v4 }
 0x28b   : > { %1294 = vmatprep.mubr.f32.mxu1 %v5327_v55 }
 0x28e   : > { %4267 = vmatmul.mubr.msk.f32.gmra.mrb[44].mxu1 %vm930_vm3, %v7708_v8 }
 0x28f   : > { %1300 = vmatprep.mubr.f32.mxu1 %v5327_v55 }
 0x292   : > { %4268 = vmatmul.mubr.msk.f32.gmra.mrb[46].mxu1 %vm930_vm3, %v7709_v57  ;;  %v1506_v57 = vld [vmem:[#allocation2 + $0x258] sm:$0xff] }
 0x293   : > { %1306 = vmatprep.mubr.f32.mxu1 %v5327_v55 }
 0x296   : > { %4269 = vmatmul.mubr.msk.f32.gmra.mrb[48].mxu1 %vm930_vm3, %v7711_v35 }
 0x297   : > { %1312 = vmatprep.mubr.f32.mxu1 %v5327_v55 }
 0x29a   : > { %4270 = vmatmul.mubr.msk.f32.gmra.mrb[50].mxu1 %vm930_vm3, %v7712_v20  ;;  %v4750_v20 = vpack.c.bf16 %v3020_v29, %v3019_v28 }
 0x29b   : > { %1318 = vmatprep.mubr.f32.mxu1 %v5327_v55 }
 0x29e   : > { %4271 = vmatmul.mubr.msk.f32.gmra.mrb[52].mxu1 %vm930_vm3, %v7713_v22 }
 0x29f   : > { %1324 = vmatprep.mubr.f32.mxu1 %v5327_v55 }
 0x2a2   : > { %4272 = vmatmul.mubr.msk.f32.gmra.mrb[54].mxu1 %vm930_vm3, %v7714_v36  ;;  %v4564_v36 = vpack.c.bf16 %v1506_v57, %v1498_v17  ;;  %v1561_v17 = vld [vmem:[#allocation2 + $0x410] sm:$0xff] }
 0x2a3   : > { %1330 = vmatprep.mubr.f32.mxu1 %v5327_v55 }
 0x2a6   : > { %4273 = vmatmul.mubr.msk.f32.gmra.mrb[56].mxu1 %vm930_vm3, %v7715_v31  ;;  %v1505_v31 = vld [vmem:[#allocation2 + $0x250] sm:$0xff] }
 0x2a7   : > { %1336 = vmatprep.mubr.f32.mxu1 %v5327_v55 }
 0x2aa   : > { %4274 = vmatmul.mubr.msk.f32.gmra.mrb[58].mxu1 %vm930_vm3, %v7716_v49  ;;  %v3021_v49 = vld [vmem:[%s7615_s9 + $0x40] sm:$0xff] }
 0x2ab   : > { %1342 = vmatprep.mubr.f32.mxu1 %v5327_v55 }
 0x2ae   : > { %4275 = vmatmul.mubr.msk.f32.gmra.mrb[60].mxu1 %vm930_vm3, %v7717_v9  ;;  %v3022_v9 = vld [vmem:[%s7615_s9 + $0x48] sm:$0xff] }
 0x2af   : > { %1348 = vmatprep.mubr.f32.mxu1 %v5327_v55 }
 0x2b2   : > { %4276 = vmatmul.mubr.msk.f32.gmra.mrb[62].mxu1 %vm930_vm3, %v7718_v45 }
 0x2b3   : > { %1354 = vmatprep.mubr.f32.mxu1 %v5327_v55 }
 0x2b6   : > { %4277 = vmatmul.mubr.msk.f32.gmra.mrb[64].mxu1 %vm930_vm3, %v7719_v26  ;;  %v1514_v26 = vld [vmem:[#allocation2 + $0x298] sm:$0xff] }
 0x2b7   : > { %1360 = vmatprep.mubr.f32.mxu1 %v5327_v55  ;;  %v1441_v55 = vld [vmem:[#allocation2 + $0x50] sm:$0xff] }
 0x2b8   : > { %v4550_v54 = vpack.c.bf16 %v1441_v55, %v1433_v53  ;;  %v4753_v53 = vpack.c.bf16 %v3022_v9, %v3021_v49  ;;  %v1578_v49 = vld [vmem:[#allocation2 + $0x498] sm:$0xff] }
 0x2b9   : > { %v1586_v9 = vld [vmem:[#allocation2 + $0x4d8] sm:$0xff] }
 0x2ba   : > { %4278 = vmatmul.mubr.msk.f32.gmra.mrb[66].mxu1 %vm930_vm3, %v7720_v12  ;;  %v1522_v12 = vld [vmem:[#allocation2 + $0x2d8] sm:$0xff] }
 0x2bb   : > { %v4568_v48 = vpack.c.bf16 %v1522_v12, %v1514_v26 }
 0x309   : > { %v1000_v6 = vpop.f32.mrb[2].mxu1 }
 0x30a   : > { %v1001_v33 = vadd.f32 %v4245_v43, %v1000_v6  ;;  %v4429_v46 = vpop.f32.mrb[3].mxu1 }
 0x30b   : > { %v1513_v46 = vld [vmem:[#allocation2 + $0x290] sm:$0xff] }
 0x30c   : > { %1005 = vst.msk [vmem:[%s423_s18] sm:$0xf] %vm1004_vm4, %v1001_v33  ;;  %v4566_v33 = vpack.c.bf16 %v1505_v31, %v1497_v34  ;;  %v1569_v34 = vld [vmem:[#allocation2 + $0x450] sm:$0xff]  ;;  %s5254_s18 = scalar_lea.vmem %s7461_s20, 64 }
 0x30d   : > { %v4582_v12 = vpack.c.bf16 %v1569_v34, %v1561_v17  ;;  %v3034_v17 = vld [vmem:[%s7615_s9 + $0xa8] sm:$0xff]  ;;  %v1625_v34 = vld [vmem:[#allocation2 + $0x610] sm:$0xff]  ;;  %p5255_p6 = scmp.ne.s32.totalorder %s7461_s20, %s5254_s18  ;;  %p5262_p3 = scmp.lt.s32.totalorder %s5260_s19, %s5254_s18 }
 0x30f   : > { %p5256_p10 = pnand %p5255_p6, %p7874_p9  ;;  %p5263_p4 = por %p5262_p3, %p5261_p2 }
 0x311   : > { %v1176_v59 = vpop.f32.mrb[4].mxu1  ;;  %p5257_p12 = pneg %p5256_p10 }
 0x312   : > { %v1178_v14 = vpop.f32.mrb[5].mxu1  ;;  %v5975_v62 = vmax.f32 %v1176_v59, 0.0  ;;  %v3023_v59 = vld [vmem:[%s7615_s9 + $0x50] sm:$0xff] }
 0x313   : > { %v5973_v1 = vmax.f32 %v1178_v14, 0.0  ;;  %v1530_v14 = vld [vmem:[#allocation2 + $0x318] sm:$0xff]  ;;  %v4756_v19 = vpack.c.bf16 %v3024_v44, %v3023_v59  ;;  %p5264_p7 = pnand %p5263_p4, %p5257_p12 }
 0x314   : > { %7721 = vst [vmem:[#allocation10_spill] sm:$0xff] %v5975_v62  ;;  %v1594_v59 = vld [vmem:[#allocation2 + $0x518] sm:$0xff] }
 0x315   : > { %v1182_v5 = vpop.f32.mrb[6].mxu1  ;;  %1793 = vmatprep.mubr.f32.mxu1 %v5973_v1  ;;  %2307 = vmatprep.mubr.f32.mxu0 %v5973_v1  ;;  %v1602_v44 = vld [vmem:[#allocation2 + $0x558] sm:$0xff] }
 0x316   : > { %v1184_v50 = vpop.f32.mrb[7].mxu1  ;;  %1794 = vmatmul.mubr.f32.vlgmr.msra.gmra.mrb[68].mxu1 %v5975_v62  ;;  %2308 = vmatmul.mubr.f32.vlgmr.msra.gmra.mrb[32].mxu0 %v5975_v62  ;;  %v5989_v4 = vmax.f32 %v1182_v5, 0.0 }
 0x317   : > { %v5987_v18 = vmax.f32 %v1184_v50, 0.0  ;;  %4551 = vmatpush1.bf16.msra.mxu1 %v4550_v54  ;;  %4742 = vmatpush1.bf16.msra.mxu0 %v4741_v60  ;;  %v1538_v54 = vld [vmem:[#allocation2 + $0x358] sm:$0xff]  ;;  %v3026_v50 = vld [vmem:[%s7615_s9 + $0x68] sm:$0xff] }
 0x318   : > { %4553 = vmatprep.subr.bf16.mxu1 %v4552_v32  ;;  %4743 = vmatprep.subr.bf16.mxu0 %v7710_v25  ;;  %v4570_v32 = vpack.c.bf16 %v1521_v56, %v1513_v46  ;;  %v4572_v5 = vpack.c.bf16 %v1538_v54, %v1530_v14  ;;  %v4584_v46 = vpack.c.bf16 %v1586_v9, %v1578_v49  ;;  %v1642_v49 = vld [vmem:[#allocation2 + $0x698] sm:$0xff] }
 0x319   : > { %7722 = vst [vmem:[#allocation11_spill] sm:$0xff] %v5987_v18  ;;  %v1188_v51 = vpop.f32.mrb[8].mxu1  ;;  %1799 = vmatprep.mubr.f32.mxu1 %v5987_v18  ;;  %2313 = vmatprep.mubr.f32.mxu0 %v5987_v18  ;;  %v1650_v9 = vld [vmem:[#allocation2 + $0x6d8] sm:$0xff] }
 0x31a   : > { %v1190_v41 = vpop.f32.mrb[9].mxu1  ;;  %1800 = vmatmul.mubr.f32.gmra.mrb[70].mxu1 %v5989_v4  ;;  %2314 = vmatmul.mubr.f32.gmra.mrb[34].mxu0 %v5989_v4  ;;  %v6004_v8 = vmax.f32 %v1188_v51, 0.0  ;;  %v4759_v51 = vpack.c.bf16 %v3026_v50, %v3025_v24 }
 0x31b   : > { %v6002_v27 = vmax.f32 %v1190_v41, 0.0  ;;  %4555 = vmatpush1.bf16.msra.mxu1 %v4554_v0  ;;  %4745 = vmatpush1.bf16.msra.mxu0 %v4744_v52  ;;  %v1554_v52 = vld [vmem:[#allocation2 + $0x3d8] sm:$0xff]  ;;  %v1553_v41 = vld [vmem:[#allocation2 + $0x3d0] sm:$0xff] }
 0x31c   : > { %4557 = vmatprep.subr.bf16.mxu1 %v4556_v61  ;;  %4746 = vmatprep.subr.bf16.mxu0 %v7710_v25  ;;  %v4576_v13 = vpack.c.bf16 %v1554_v52, %v1546_v16  ;;  %v1618_v16 = vld [vmem:[#allocation2 + $0x5d8] sm:$0xff] }
 0x31d   : > { %v1194_v47 = vpop.f32.mrb[10].mxu1  ;;  %1805 = vmatprep.mubr.f32.mxu1 %v6002_v27  ;;  %2319 = vmatprep.mubr.f32.mxu0 %v6002_v27 }
 0x31e   : > { %v1196_v35 = vpop.f32.mrb[11].mxu1  ;;  %1806 = vmatmul.mubr.f32.gmra.mrb[72].mxu1 %v6004_v8  ;;  %2320 = vmatmul.mubr.f32.gmra.mrb[36].mxu0 %v6004_v8  ;;  %v6019_v22 = vmax.f32 %v1194_v47, 0.0  ;;  %v4578_v47 = vpack.c.bf16 %v1553_v41, %v1545_v11  ;;  %v1617_v41 = vld [vmem:[#allocation2 + $0x5d0] sm:$0xff] }
 0x31f   : > { %v6017_v10 = vmax.f32 %v1196_v35, 0.0  ;;  %4559 = vmatpush1.bf16.msra.mxu1 %v4558_v37  ;;  %4748 = vmatpush1.bf16.msra.mxu0 %v4747_v58  ;;  %v3027_v37 = vld [vmem:[%s7615_s9 + $0x70] sm:$0xff] }
 0x320   : > { %4561 = vmatprep.subr.bf16.mxu1 %v4560_v63  ;;  %4749 = vmatprep.subr.bf16.mxu0 %v7710_v25  ;;  %v1562_v63 = vld [vmem:[#allocation2 + $0x418] sm:$0xff]  ;;  %v4762_v57 = vpack.c.bf16 %v3028_v42, %v3027_v37 }
 0x321   : > { %v1200_v45 = vpop.f32.mrb[12].mxu1  ;;  %1811 = vmatprep.mubr.f32.mxu1 %v6017_v10  ;;  %2325 = vmatprep.mubr.f32.mxu0 %v6017_v10  ;;  %v1626_v42 = vld [vmem:[#allocation2 + $0x618] sm:$0xff] }
 0x322   : > { %v1202_v43 = vpop.f32.mrb[13].mxu1  ;;  %1812 = vmatmul.mubr.f32.gmra.mrb[74].mxu1 %v6019_v22  ;;  %2326 = vmatmul.mubr.f32.gmra.mrb[38].mxu0 %v6019_v22  ;;  %v6034_v55 = vmax.f32 %v1200_v45, 0.0 }
 0x323   : > { %v6032_v6 = vmax.f32 %v1202_v43, 0.0  ;;  %4563 = vmatpush1.bf16.msra.mxu1 %v4562_v23  ;;  %4751 = vmatpush1.bf16.msra.mxu0 %v4750_v20  ;;  %v4580_v23 = vpack.c.bf16 %v1570_v15, %v1562_v63  ;;  %v3029_v20 = vld [vmem:[%s7615_s9 + $0x80] sm:$0xff] }
 0x324   : > { %4565 = vmatprep.subr.bf16.mxu1 %v4564_v36  ;;  %4752 = vmatprep.subr.bf16.mxu0 %v7710_v25  ;;  %v3030_v36 = vld [vmem:[%s7615_s9 + $0x88] sm:$0xff] }
 0x325   : > { %v1206_v3 = vpop.f32.mrb[14].mxu1  ;;  %1817 = vmatprep.mubr.f32.mxu1 %v6032_v6  ;;  %2331 = vmatprep.mubr.f32.mxu0 %v6032_v6  ;;  %v4765_v43 = vpack.c.bf16 %v3030_v36, %v3029_v20  ;;  %v1633_v20 = vld [vmem:[#allocation2 + $0x650] sm:$0xff] }
 0x326   : > { %v1208_v40 = vpop.f32.mrb[15].mxu1  ;;  %1818 = vmatmul.mubr.f32.gmra.mrb[76].mxu1 %v6034_v55  ;;  %2332 = vmatmul.mubr.f32.gmra.mrb[40].mxu0 %v6034_v55  ;;  %v6049_v21 = vmax.f32 %v1206_v3, 0.0 }
 0x327   : > { %v6047_v60 = vmax.f32 %v1208_v40, 0.0  ;;  %4567 = vmatpush1.bf16.msra.mxu1 %v4566_v33  ;;  %4754 = vmatpush1.bf16.msra.mxu0 %v4753_v53  ;;  %v1577_v53 = vld [vmem:[#allocation2 + $0x490] sm:$0xff] }
 0x328   : > { %4569 = vmatprep.subr.bf16.mxu1 %v4568_v48  ;;  %4755 = vmatprep.subr.bf16.mxu0 %v7710_v25  ;;  %v1585_v48 = vld [vmem:[#allocation2 + $0x4d0] sm:$0xff] }
 0x329   : > { %v1212_v0 = vpop.f32.mrb[16].mxu1  ;;  %1823 = vmatprep.mubr.f32.mxu1 %v6047_v60  ;;  %2337 = vmatprep.mubr.f32.mxu0 %v6047_v60  ;;  %v4586_v54 = vpack.c.bf16 %v1585_v48, %v1577_v53  ;;  %v3031_v40 = vld [vmem:[%s7615_s9 + $0x90] sm:$0xff]  ;;  %v4600_v53 = vpack.c.bf16 %v1650_v9, %v1642_v49  ;;  %v3038_v49 = vld [vmem:[%s7615_s9 + $0xc8] sm:$0xff] }
 0x32a   : > { %v1214_v61 = vpop.f32.mrb[17].mxu1  ;;  %1824 = vmatmul.mubr.f32.gmra.mrb[78].mxu1 %v6049_v21  ;;  %2338 = vmatmul.mubr.f32.gmra.mrb[42].mxu0 %v6049_v21  ;;  %v6064_v2 = vmax.f32 %v1212_v0, 0.0  ;;  %v1610_v0 = vld [vmem:[#allocation2 + $0x598] sm:$0xff]  ;;  %v1641_v48 = vld [vmem:[#allocation2 + $0x690] sm:$0xff] }
 0x32b   : > { %v6062_v39 = vmax.f32 %v1214_v61, 0.0  ;;  %4571 = vmatpush1.bf16.msra.mxu1 %v4570_v32  ;;  %4757 = vmatpush1.bf16.msra.mxu0 %v4756_v19  ;;  %v3032_v32 = vld [vmem:[%s7615_s9 + $0x98] sm:$0xff]  ;;  %v4588_v19 = vpack.c.bf16 %v1602_v44, %v1594_v59 }
 0x32c   : > { %4573 = vmatprep.subr.bf16.mxu1 %v4572_v5  ;;  %4758 = vmatprep.subr.bf16.mxu0 %v7710_v25  ;;  %v1593_v5 = vld [vmem:[#allocation2 + $0x510] sm:$0xff]  ;;  %v4768_v24 = vpack.c.bf16 %v3032_v32, %v3031_v40  ;;  %v1658_v44 = vld [vmem:[#allocation2 + $0x718] sm:$0xff] }
 0x32d   : > { %v1218_v58 = vpop.f32.mrb[18].mxu1  ;;  %1829 = vmatprep.mubr.f32.mxu1 %v6062_v39  ;;  %2343 = vmatprep.mubr.f32.mxu0 %v6062_v39 }
 0x32e   : > { %v1220_v28 = vpop.f32.mrb[19].mxu1  ;;  %1830 = vmatmul.mubr.f32.gmra.mrb[80].mxu1 %v6064_v2  ;;  %2344 = vmatmul.mubr.f32.gmra.mrb[44].mxu0 %v6064_v2  ;;  %v6079_v35 = vmax.f32 %v1218_v58, 0.0  ;;  %v1634_v58 = vld [vmem:[#allocation2 + $0x658] sm:$0xff] }
 0x32f   : > { %v6077_v29 = vmax.f32 %v1220_v28, 0.0  ;;  %4575 = vmatpush1.bf16.msra.mxu1 %v4574_v38  ;;  %4760 = vmatpush1.bf16.msra.mxu0 %v4759_v51  ;;  %v4590_v38 = vpack.c.bf16 %v1601_v30, %v1593_v5  ;;  %v4592_v51 = vpack.c.bf16 %v1618_v16, %v1610_v0  ;;  %v3036_v5 = vld [vmem:[%s7615_s9 + $0xb8] sm:$0xff]  ;;  %v1665_v0 = vld [vmem:[#allocation2 + $0x750] sm:$0xff] }
 0x330   : > { %4577 = vmatprep.subr.bf16.mxu1 %v4576_v13  ;;  %4761 = vmatprep.subr.bf16.mxu0 %v7710_v25  ;;  %v1609_v13 = vld [vmem:[#allocation2 + $0x590] sm:$0xff] }
 0x331   : > { %v1224_v31 = vpop.f32.mrb[20].mxu1  ;;  %1835 = vmatprep.mubr.f32.mxu1 %v6077_v29  ;;  %2349 = vmatprep.mubr.f32.mxu0 %v6077_v29  ;;  %v4594_v28 = vpack.c.bf16 %v1617_v41, %v1609_v13 }
 0x332   : > { %v1226_v45 = vpop.f32.mrb[21].mxu1  ;;  %1836 = vmatmul.mubr.f32.gmra.mrb[82].mxu1 %v6079_v35  ;;  %2350 = vmatmul.mubr.f32.gmra.mrb[46].mxu0 %v6079_v35  ;;  %v6094_v33 = vmax.f32 %v1224_v31, 0.0 }
 0x333   : > { %v6092_v26 = vmax.f32 %v1226_v45, 0.0  ;;  %4579 = vmatpush1.bf16.msra.mxu1 %v4578_v47  ;;  %4763 = vmatpush1.bf16.msra.mxu0 %v4762_v57  ;;  %v3033_v47 = vld [vmem:[%s7615_s9 + $0xa0] sm:$0xff] }
 0x334   : > { %4581 = vmatprep.subr.bf16.mxu1 %v4580_v23  ;;  %4764 = vmatprep.subr.bf16.mxu0 %v7710_v25  ;;  %v4596_v23 = vpack.c.bf16 %v1634_v58, %v1626_v42  ;;  %v4771_v36 = vpack.c.bf16 %v3034_v17, %v3033_v47  ;;  %v1438_v17 = vld [vmem:[#allocation2 + $0x38] sm:$0xff] }
 0x335   : > { %v1230_v56 = vpop.f32.mrb[22].mxu1  ;;  %1841 = vmatprep.mubr.f32.mxu1 %v6092_v26  ;;  %2355 = vmatprep.mubr.f32.mxu0 %v6092_v26 }
 0x336   : > { %v1232_v3 = vpop.f32.mrb[23].mxu1  ;;  %1842 = vmatmul.mubr.f32.gmra.mrb[84].mxu1 %v6094_v33  ;;  %2356 = vmatmul.mubr.f32.gmra.mrb[48].mxu0 %v6094_v33  ;;  %v6109_v7 = vmax.f32 %v1230_v56, 0.0  ;;  %v1649_v56 = vld [vmem:[#allocation2 + $0x6d0] sm:$0xff] }
 0x337   : > { %v6101_v14 = vmax.f32 %v1232_v3, 0.0  ;;  %4583 = vmatpush1.bf16.msra.mxu1 %v4582_v12  ;;  %4766 = vmatpush1.bf16.msra.mxu0 %v4765_v43  ;;  %v4598_v43 = vpack.c.bf16 %v1633_v20, %v1625_v34  ;;  %v1666_v3 = vld [vmem:[#allocation2 + $0x758] sm:$0xff]  ;;  %v4602_v32 = vpack.c.bf16 %v1649_v56, %v1641_v48 }
 0x338   : > { %4585 = vmatprep.subr.bf16.mxu1 %v4584_v46  ;;  %4767 = vmatprep.subr.bf16.mxu0 %v7710_v25 }
 0x339   : > { %v1236_v50 = vpop.f32.mrb[24].mxu1  ;;  %1847 = vmatprep.mubr.f32.mxu1 %v6101_v14  ;;  %2361 = vmatprep.mubr.f32.mxu0 %v6101_v14 }
 0x33a   : > { %v1238_v52 = vpop.f32.mrb[25].mxu1  ;;  %1848 = vmatmul.mubr.f32.gmra.mrb[86].mxu1 %v6109_v7  ;;  %2362 = vmatmul.mubr.f32.gmra.mrb[50].mxu0 %v6109_v7  ;;  %v6118_v11 = vmax.f32 %v1236_v50, 0.0  ;;  %v1657_v50 = vld [vmem:[#allocation2 + $0x710] sm:$0xff] }
 0x33b   : > { %v6116_v61 = vmax.f32 %v1238_v52, 0.0  ;;  %4587 = vmatpush1.bf16.msra.mxu1 %v4586_v54  ;;  %4769 = vmatpush1.bf16.msra.mxu0 %v4768_v24  ;;  %v4604_v24 = vpack.c.bf16 %v1666_v3, %v1658_v44 }
 0x33c   : > { %4589 = vmatprep.subr.bf16.mxu1 %v4588_v19  ;;  %4770 = vmatprep.subr.bf16.mxu0 %v7710_v25  ;;  %v3035_v19 = vld [vmem:[%s7615_s9 + $0xb0] sm:$0xff] }
 0x33d   : > { %v1242_v37 = vpop.f32.mrb[26].mxu1  ;;  %1853 = vmatprep.mubr.f32.mxu1 %v6116_v61  ;;  %2367 = vmatprep.mubr.f32.mxu0 %v6116_v61  ;;  %v4774_v16 = vpack.c.bf16 %v3036_v5, %v3035_v19  ;;  %v3040_v19 = vld [vmem:[%s7615_s9 + $0xd8] sm:$0xff] }
 0x33e   : > { %v1244_v63 = vpop.f32.mrb[27].mxu1  ;;  %1854 = vmatmul.mubr.f32.gmra.mrb[88].mxu1 %v6118_v11  ;;  %2368 = vmatmul.mubr.f32.gmra.mrb[52].mxu0 %v6118_v11  ;;  %v6133_v57 = vmax.f32 %v1242_v37, 0.0  ;;  %v4606_v37 = vpack.c.bf16 %v1665_v0, %v1657_v50 }
 0x33f   : > { %v6125_v15 = vmax.f32 %v1244_v63, 0.0  ;;  %4591 = vmatpush1.bf16.msra.mxu1 %v4590_v38  ;;  %4772 = vmatpush1.bf16.msra.mxu0 %v4771_v36  ;;  %v1674_v38 = vld [vmem:[#allocation2 + $0x798] sm:$0xff]  ;;  %v1673_v63 = vld [vmem:[#allocation2 + $0x790] sm:$0xff] }
 0x340   : > { %4593 = vmatprep.subr.bf16.mxu1 %v4592_v51  ;;  %4773 = vmatprep.subr.bf16.mxu0 %v7710_v25  ;;  %v1682_v51 = vld [vmem:[#allocation2 + $0x7d8] sm:$0xff] }
 0x341   : > { %v1248_v31 = vpop.f32.mrb[28].mxu1  ;;  %1859 = vmatprep.mubr.f32.mxu1 %v6125_v15  ;;  %2373 = vmatprep.mubr.f32.mxu0 %v6125_v15  ;;  %v4608_v58 = vpack.c.bf16 %v1682_v51, %v1674_v38 }
 0x342   : > { %v1250_v45 = vpop.f32.mrb[29].mxu1  ;;  %1860 = vmatmul.mubr.f32.gmra.mrb[90].mxu1 %v6133_v57  ;;  %2374 = vmatmul.mubr.f32.gmra.mrb[54].mxu0 %v6133_v57  ;;  %v6141_v46 = vmax.f32 %v1248_v31, 0.0  ;;  %v3037_v31 = vld [vmem:[%s7615_s9 + $0xc0] sm:$0xff] }
 0x343   : > { %v6139_v12 = vmax.f32 %v1250_v45, 0.0  ;;  %4595 = vmatpush1.bf16.msra.mxu1 %v4594_v28  ;;  %4775 = vmatpush1.bf16.msra.mxu0 %v4774_v16  ;;  %v1681_v28 = vld [vmem:[#allocation2 + $0x7d0] sm:$0xff] }
 0x344   : > { %4597 = vmatprep.subr.bf16.mxu1 %v4596_v23  ;;  %4776 = vmatprep.subr.bf16.mxu0 %v7710_v25  ;;  %v1446_v23 = vld [vmem:[#allocation2 + $0x78] sm:$0xff]  ;;  %v4610_v36 = vpack.c.bf16 %v1681_v28, %v1673_v63 }
 0x345   : > { %v1254_v59 = vpop.f32.mrb[30].mxu1  ;;  %1865 = vmatprep.mubr.f32.mxu1 %v6139_v12  ;;  %2379 = vmatprep.mubr.f32.mxu0 %v6139_v12  ;;  %v4676_v45 = vpack.c.bf16 %v1446_v23, %v1438_v17 }
 0x346   : > { %v1256_v54 = vpop.f32.mrb[31].mxu1  ;;  %1866 = vmatmul.mubr.f32.gmra.mrb[92].mxu1 %v6141_v46  ;;  %2380 = vmatmul.mubr.f32.gmra.mrb[56].mxu0 %v6141_v46  ;;  %v6156_v30 = vmax.f32 %v1254_v59, 0.0 }
 0x347   : > { %v6148_v40 = vmax.f32 %v1256_v54, 0.0  ;;  %4599 = vmatpush1.bf16.msra.mxu1 %v4598_v43  ;;  %v4777_v43 = vpack.c.bf16 %v3038_v49, %v3037_v31 }
 0x348   : > { %4601 = vmatprep.subr.bf16.mxu1 %v4600_v53 }
 0x349   : > { %v1260_v52 = vpop.f32.mrb[32].mxu1  ;;  %1871 = vmatprep.mubr.f32.mxu1 %v6148_v40  ;;  %2385 = vmatprep.mubr.f32.mxu0 %v6148_v40 }
 0x34a   : > { %v1262_v13 = vpop.f32.mrb[33].mxu1  ;;  %1872 = vmatmul.mubr.f32.gmra.mrb[94].mxu1 %v6156_v30  ;;  %2386 = vmatmul.mubr.f32.gmra.mrb[58].mxu0 %v6156_v30  ;;  %v6164_v42 = vmax.f32 %v1260_v52, 0.0 }
 0x34b   : > { %v6162_v41 = vmax.f32 %v1262_v13, 0.0  ;;  %4603 = vmatpush1.bf16.msra.mxu1 %v4602_v32  ;;  %4778 = vmatpush1.bf16.msra.mxu0 %v4777_v43  ;;  %v3039_v32 = vld [vmem:[%s7615_s9 + $0xd0] sm:$0xff]  ;;  %v3044_v43 = vld [vmem:[%s7615_s9 + $0xf8] sm:$0xff] }
 0x34c   : > { %4605 = vmatprep.subr.bf16.mxu1 %v4604_v24  ;;  %4779 = vmatprep.subr.bf16.mxu0 %v7710_v25  ;;  %v4780_v24 = vpack.c.bf16 %v3040_v19, %v3039_v32 }
 0x34d   : > { %v1266_v47 = vpop.f32.mrb[34].mxu1  ;;  %1877 = vmatprep.mubr.f32.mxu1 %v6162_v41  ;;  %2391 = vmatprep.mubr.f32.mxu0 %v6162_v41 }
 0x34e   : > { %v1268_v34 = vpop.f32.mrb[35].mxu1  ;;  %1878 = vmatmul.mubr.f32.gmra.mrb[96].mxu1 %v6164_v42  ;;  %2392 = vmatmul.mubr.f32.gmra.mrb[60].mxu0 %v6164_v42  ;;  %v6179_v9 = vmax.f32 %v1266_v47, 0.0 }
 0x34f   : > { %v6171_v20 = vmax.f32 %v1268_v34, 0.0  ;;  %4607 = vmatpush1.bf16.msra.mxu1 %v4606_v37  ;;  %4781 = vmatpush1.bf16.msra.mxu0 %v4780_v24  ;;  %v3041_v37 = vld [vmem:[%s7615_s9 + $0xe0] sm:$0xff] }
 0x350   : > { %4609 = vmatprep.subr.bf16.mxu1 %v4608_v58  ;;  %4782 = vmatprep.subr.bf16.mxu0 %v7710_v25  ;;  %v3042_v58 = vld [vmem:[%s7615_s9 + $0xe8] sm:$0xff] }
 0x351   : > { %v1272_v53 = vpop.f32.mrb[36].mxu1  ;;  %1883 = vmatprep.mubr.f32.mxu1 %v6171_v20  ;;  %2397 = vmatprep.mubr.f32.mxu0 %v6171_v20  ;;  %v4783_v28 = vpack.c.bf16 %v3042_v58, %v3041_v37 }
 0x352   : > { %v1274_v48 = vpop.f32.mrb[37].mxu1  ;;  %1884 = vmatmul.mubr.f32.gmra.mrb[98].mxu1 %v6179_v9  ;;  %2398 = vmatmul.mubr.f32.gmra.mrb[62].mxu0 %v6179_v9  ;;  %v6187_v59 = vmax.f32 %v1272_v53, 0.0 }
 0x353   : > { %v6185_v56 = vmax.f32 %v1274_v48, 0.0  ;;  %4611 = vmatpush1.bf16.msra.mxu1 %v4610_v36  ;;  %4784 = vmatpush1.bf16.msra.mxu0 %v4783_v28 }
 0x354   : > { %4677 = vmatprep.subr.bf16.mxu1 %v4676_v45  ;;  %4785 = vmatprep.subr.bf16.mxu0 %v7710_v25  ;;  %v3043_v45 = vld [vmem:[%s7615_s9 + $0xf0] sm:$0xff] }
 0x355   : > { %v1278_v44 = vpop.f32.mrb[38].mxu1  ;;  %1889 = vmatprep.mubr.f32.mxu1 %v6185_v56  ;;  %2403 = vmatprep.mubr.f32.mxu0 %v6185_v56  ;;  %v4786_v48 = vpack.c.bf16 %v3044_v43, %v3043_v45 }
 0x356   : > { %v1280_v3 = vpop.f32.mrb[39].mxu1  ;;  %1890 = vmatmul.mubr.f32.gmra.mrb[100].mxu1 %v6187_v59  ;;  %2404 = vmatmul.mubr.f32.gmra.mrb[64].mxu0 %v6187_v59  ;;  %v6202_v5 = vmax.f32 %v1278_v44, 0.0 }
 0x357   : > { %v6194_v54 = vmax.f32 %v1280_v3, 0.0  ;;  %4787 = vmatpush1.bf16.msra.mxu0 %v4786_v48 }
 0x358   : > { %4788 = vmatprep.subr.bf16.mxu0 %v7710_v25 }
 0x359   : > { %v1284_v50 = vpop.f32.mrb[40].mxu1  ;;  %1895 = vmatprep.mubr.f32.mxu1 %v6194_v54  ;;  %2409 = vmatprep.mubr.f32.mxu0 %v6194_v54 }
 0x35a   : > { %v1286_v0 = vpop.f32.mrb[41].mxu1  ;;  %1896 = vmatmul.mubr.f32.gmra.mrb[102].mxu1 %v6202_v5  ;;  %2410 = vmatmul.mubr.f32.gmra.mrb[66].mxu0 %v6202_v5  ;;  %v6210_v52 = vmax.f32 %v1284_v50, 0.0 }
 0x35b   : > { %v6208_v16 = vmax.f32 %v1286_v0, 0.0 }
 0x35d   : > { %v1290_v38 = vpop.f32.mrb[42].mxu1  ;;  %1901 = vmatprep.mubr.f32.mxu1 %v6208_v16  ;;  %2415 = vmatprep.mubr.f32.mxu0 %v6208_v16 }
 0x35e   : > { %v1292_v51 = vpop.f32.mrb[43].mxu1  ;;  %1902 = vmatmul.mubr.f32.gmra.mrb[104].mxu1 %v6210_v52  ;;  %2416 = vmatmul.mubr.f32.gmra.mrb[68].mxu0 %v6210_v52  ;;  %v6225_v63 = vmax.f32 %v1290_v38, 0.0 }
 0x35f   : > { %v6217_v13 = vmax.f32 %v1292_v51, 0.0 }
 0x361   : > { %v1296_v47 = vpop.f32.mrb[44].mxu1  ;;  %1907 = vmatprep.mubr.f32.mxu1 %v6217_v13  ;;  %2421 = vmatprep.mubr.f32.mxu0 %v6217_v13 }
 0x362   : > { %v1298_v17 = vpop.f32.mrb[45].mxu1  ;;  %1908 = vmatmul.mubr.f32.gmra.mrb[106].mxu1 %v6225_v63  ;;  %2422 = vmatmul.mubr.f32.gmra.mrb[70].mxu0 %v6225_v63  ;;  %v6233_v34 = vmax.f32 %v1296_v47, 0.0 }
 0x363   : > { %v6231_v23 = vmax.f32 %v1298_v17, 0.0 }
 0x365   : > { %v1302_v36 = vpop.f32.mrb[46].mxu1  ;;  %1913 = vmatprep.mubr.f32.mxu1 %v6231_v23  ;;  %2427 = vmatprep.mubr.f32.mxu0 %v6231_v23 }
 0x366   : > { %v1304_v31 = vpop.f32.mrb[47].mxu1  ;;  %1914 = vmatmul.mubr.f32.gmra.mrb[108].mxu1 %v6233_v34  ;;  %2428 = vmatmul.mubr.f32.gmra.mrb[72].mxu0 %v6233_v34  ;;  %v6248_v53 = vmax.f32 %v1302_v36, 0.0 }
 0x367   : > { %v6240_v49 = vmax.f32 %v1304_v31, 0.0 }
 0x368   : > { %7723 = vst [vmem:[#allocation12_spill] sm:$0xff] %v6248_v53 }
 0x369   : > { %v1308_v44 = vpop.f32.mrb[48].mxu1  ;;  %1919 = vmatprep.mubr.f32.mxu1 %v6240_v49  ;;  %2433 = vmatprep.mubr.f32.mxu0 %v6240_v49 }
 0x36a   : > { %v1310_v3 = vpop.f32.mrb[49].mxu1  ;;  %1920 = vmatmul.mubr.f32.gmra.mrb[110].mxu1 %v6248_v53  ;;  %2434 = vmatmul.mubr.f32.gmra.mrb[74].mxu0 %v6248_v53  ;;  %v6256_v19 = vmax.f32 %v1308_v44, 0.0 }
 0x36b   : > { %v6254_v32 = vmax.f32 %v1310_v3, 0.0 }
 0x36c   : > { %7725 = vst [vmem:[#allocation14_spill] sm:$0xff] %v6256_v19 }
 0x36d   : > { %7724 = vst [vmem:[#allocation13_spill] sm:$0xff] %v6254_v32  ;;  %v1314_v24 = vpop.f32.mrb[50].mxu1  ;;  %1925 = vmatprep.mubr.f32.mxu1 %v6254_v32  ;;  %2439 = vmatprep.mubr.f32.mxu0 %v6254_v32 }
 0x36e   : > { %v1316_v50 = vpop.f32.mrb[51].mxu1  ;;  %1926 = vmatmul.mubr.f32.gmra.mrb[112].mxu1 %v6256_v19  ;;  %2440 = vmatmul.mubr.f32.gmra.mrb[76].mxu0 %v6256_v19  ;;  %v6265_v38 = vmax.f32 %v1314_v24, 0.0 }
 0x36f   : > { %v6263_v0 = vmax.f32 %v1316_v50, 0.0 }
 0x370   : > { %7727 = vst [vmem:[#allocation16_spill] sm:$0xff] %v6265_v38 }
 0x371   : > { %7726 = vst [vmem:[#allocation15_spill] sm:$0xff] %v6263_v0  ;;  %v1320_v51 = vpop.f32.mrb[52].mxu1  ;;  %1931 = vmatprep.mubr.f32.mxu1 %v6263_v0  ;;  %2445 = vmatprep.mubr.f32.mxu0 %v6263_v0 }
 0x372   : > { %v1322_v37 = vpop.f32.mrb[53].mxu1  ;;  %1932 = vmatmul.mubr.f32.gmra.mrb[114].mxu1 %v6265_v38  ;;  %2446 = vmatmul.mubr.f32.gmra.mrb[78].mxu0 %v6265_v38  ;;  %v6273_v28 = vmax.f32 %v1320_v51, 0.0  ;;  %v1486_v38 = vld [vmem:[#allocation2 + $0x1b8] sm:$0xff] }
 0x373   : > { %v6271_v58 = vmax.f32 %v1322_v37, 0.0 }
 0x374   : > { %7729 = vst [vmem:[#allocation18_spill] sm:$0xff] %v6273_v28 }
 0x375   : > { %7728 = vst [vmem:[#allocation17_spill] sm:$0xff] %v6271_v58  ;;  %v1326_v47 = vpop.f32.mrb[54].mxu1  ;;  %1937 = vmatprep.mubr.f32.mxu1 %v6271_v58  ;;  %2451 = vmatprep.mubr.f32.mxu0 %v6271_v58  ;;  %v1477_v58 = vld [vmem:[#allocation2 + $0x170] sm:$0xff] }
 0x376   : > { %v1328_v17 = vpop.f32.mrb[55].mxu1  ;;  %1938 = vmatmul.mubr.f32.gmra.mrb[116].mxu1 %v6273_v28  ;;  %2452 = vmatmul.mubr.f32.gmra.mrb[80].mxu0 %v6273_v28  ;;  %v6281_v31 = vmax.f32 %v1326_v47, 0.0  ;;  %v1469_v28 = vld [vmem:[#allocation2 + $0x130] sm:$0xff] }
 0x377   : > { %v6279_v36 = vmax.f32 %v1328_v17, 0.0 }
 0x378   : > { %7731 = vst [vmem:[#allocation20_spill] sm:$0xff] %v6281_v31 }
 0x379   : > { %7730 = vst [vmem:[#allocation19_spill] sm:$0xff] %v6279_v36  ;;  %v1332_v45 = vpop.f32.mrb[56].mxu1  ;;  %1943 = vmatprep.mubr.f32.mxu1 %v6279_v36  ;;  %2457 = vmatprep.mubr.f32.mxu0 %v6279_v36 }
 0x37a   : > { %v1334_v43 = vpop.f32.mrb[57].mxu1  ;;  %1944 = vmatmul.mubr.f32.gmra.mrb[118].mxu1 %v6281_v31  ;;  %2458 = vmatmul.mubr.f32.gmra.mrb[82].mxu0 %v6281_v31  ;;  %v6289_v44 = vmax.f32 %v1332_v45, 0.0  ;;  %v1478_v31 = vld [vmem:[#allocation2 + $0x178] sm:$0xff] }
 0x37b   : > { %v6287_v48 = vmax.f32 %v1334_v43, 0.0 }
 0x37c   : > { %7733 = vst [vmem:[#allocation22_spill] sm:$0xff] %v6289_v44 }
 0x37d   : > { %7732 = vst [vmem:[#allocation21_spill] sm:$0xff] %v6287_v48  ;;  %v1338_v3 = vpop.f32.mrb[58].mxu1  ;;  %1949 = vmatprep.mubr.f32.mxu1 %v6287_v48  ;;  %2463 = vmatprep.mubr.f32.mxu0 %v6287_v48  ;;  %v1461_v48 = vld [vmem:[#allocation2 + $0xf0] sm:$0xff] }
 0x37e   : > { %v1340_v24 = vpop.f32.mrb[59].mxu1  ;;  %1950 = vmatmul.mubr.f32.gmra.mrb[120].mxu1 %v6289_v44  ;;  %2464 = vmatmul.mubr.f32.gmra.mrb[84].mxu0 %v6289_v44  ;;  %v6297_v51 = vmax.f32 %v1338_v3, 0.0 }
 0x37f   : > { %v6295_v50 = vmax.f32 %v1340_v24, 0.0 }
 0x380   : > { %7735 = vst [vmem:[#allocation24_spill] sm:$0xff] %v6297_v51 }
 0x381   : > { %7734 = vst [vmem:[#allocation23_spill] sm:$0xff] %v6295_v50  ;;  %v1344_v37 = vpop.f32.mrb[60].mxu1  ;;  %1955 = vmatprep.mubr.f32.mxu1 %v6295_v50  ;;  %2469 = vmatprep.mubr.f32.mxu0 %v6295_v50 }
 0x382   : > { %v1346_v47 = vpop.f32.mrb[61].mxu1  ;;  %1956 = vmatmul.mubr.f32.gmra.mrb[122].mxu1 %v6297_v51  ;;  %2470 = vmatmul.mubr.f32.gmra.mrb[86].mxu0 %v6297_v51  ;;  %v6305_v45 = vmax.f32 %v1344_v37, 0.0 }
 0x383   : > { %v6303_v17 = vmax.f32 %v1346_v47, 0.0 }
 0x384   : > { %7737 = vst [vmem:[#allocation26_spill] sm:$0xff] %v6305_v45 }
 0x385   : > { %7736 = vst [vmem:[#allocation25_spill] sm:$0xff] %v6303_v17  ;;  %v1350_v43 = vpop.f32.mrb[62].mxu1  ;;  %1961 = vmatprep.mubr.f32.mxu1 %v6303_v17  ;;  %2475 = vmatprep.mubr.f32.mxu0 %v6303_v17 }
 0x386   : > { %v1352_v3 = vpop.f32.mrb[63].mxu1  ;;  %1962 = vmatmul.mubr.f32.gmra.mrb[124].mxu1 %v6305_v45  ;;  %2476 = vmatmul.mubr.f32.gmra.mrb[88].mxu0 %v6305_v45  ;;  %v6313_v50 = vmax.f32 %v1350_v43, 0.0  ;;  %v1437_v45 = vld [vmem:[#allocation2 + $0x30] sm:$0xff] }
 0x387   : > { %v6311_v24 = vmax.f32 %v1352_v3, 0.0 }
 0x388   : > { %7739 = vst [vmem:[#allocation28_spill] sm:$0xff] %v6313_v50 }
 0x389   : > { %7738 = vst [vmem:[#allocation27_spill] sm:$0xff] %v6311_v24  ;;  %v1356_v44 = vpop.f32.mrb[64].mxu1  ;;  %1967 = vmatprep.mubr.f32.mxu1 %v6311_v24  ;;  %2481 = vmatprep.mubr.f32.mxu0 %v6311_v24 }
 0x38a   : > { %v1358_v37 = vpop.f32.mrb[65].mxu1  ;;  %1968 = vmatmul.mubr.f32.gmra.mrb[126].mxu1 %v6313_v50  ;;  %2482 = vmatmul.mubr.f32.gmra.mrb[90].mxu0 %v6313_v50  ;;  %v6321_v17 = vmax.f32 %v1356_v44, 0.0  ;;  %v1445_v50 = vld [vmem:[#allocation2 + $0x70] sm:$0xff]  ;;  %v1454_v44 = vld [vmem:[#allocation2 + $0xb8] sm:$0xff] }
 0x38b   : > { %v6319_v47 = vmax.f32 %v1358_v37, 0.0  ;;  %v1462_v37 = vld [vmem:[#allocation2 + $0xf8] sm:$0xff] }
 0x38c   : > { %7741 = vst [vmem:[#allocation30_spill] sm:$0xff] %v6321_v17 }
 0x38d   : > { %7740 = vst [vmem:[#allocation29_spill] sm:$0xff] %v6319_v47  ;;  %v1362_v51 = vpop.f32.mrb[66].mxu1  ;;  %1973 = vmatprep.mubr.f32.mxu1 %v6319_v47  ;;  %2487 = vmatprep.mubr.f32.mxu0 %v6319_v47  ;;  %v4678_v47 = vpack.c.bf16 %v1445_v50, %v1437_v45  ;;  %v4686_v50 = vpack.c.bf16 %v1477_v58, %v1469_v28  ;;  %v1517_v28 = vld [vmem:[#allocation2 + $0x2b0] sm:$0xff] }
 0x38e   : > { %v1364_v43 = vpop.f32.mrb[67].mxu1  ;;  %1974 = vmatmul.mubr.f32.gmra.mrb[128].mxu1 %v6321_v17  ;;  %2488 = vmatmul.mubr.f32.gmra.mrb[92].mxu0 %v6321_v17  ;;  %v6329_v24 = vmax.f32 %v1362_v51, 0.0  ;;  %v4680_v17 = vpack.c.bf16 %v1462_v37, %v1454_v44  ;;  %v1470_v51 = vld [vmem:[#allocation2 + $0x138] sm:$0xff]  ;;  %v1485_v44 = vld [vmem:[#allocation2 + $0x1b0] sm:$0xff] }
 0x38f   : > { %v6327_v3 = vmax.f32 %v1364_v43, 0.0  ;;  %v1453_v43 = vld [vmem:[#allocation2 + $0xb0] sm:$0xff]  ;;  %v4684_v36 = vpack.c.bf16 %v1478_v31, %v1470_v51  ;;  %v1526_v51 = vld [vmem:[#allocation2 + $0x2f8] sm:$0xff] }
 0x390   : > { %7743 = vst [vmem:[#allocation32_spill] sm:$0xff] %v6329_v24  ;;  %v1493_v37 = vld [vmem:[#allocation2 + $0x1f0] sm:$0xff] }
 0x391   : > { %7742 = vst [vmem:[#allocation31_spill] sm:$0xff] %v6327_v3  ;;  %1979 = vmatprep.mubr.f32.mxu1 %v6327_v3  ;;  %2493 = vmatprep.mubr.f32.mxu0 %v6327_v3  ;;  %v4682_v3 = vpack.c.bf16 %v1461_v48, %v1453_v43  ;;  %v4690_v31 = vpack.c.bf16 %v1493_v37, %v1485_v44  ;;  %v1518_v43 = vld [vmem:[#allocation2 + $0x2b8] sm:$0xff] }
 0x392   : > { %1980 = vmatmul.mubr.f32.gmra.mrb[130].mxu1 %v6329_v24  ;;  %2494 = vmatmul.mubr.f32.gmra.mrb[94].mxu0 %v6329_v24  ;;  %v1494_v24 = vld [vmem:[#allocation2 + $0x1f8] sm:$0xff]  ;;  %v4696_v58 = vpack.c.bf16 %v1526_v51, %v1518_v43 }
 0x393   : > { %2050 = vmatprep.mubr.f32.mxu1 %v5973_v1  ;;  %v4688_v45 = vpack.c.bf16 %v1494_v24, %v1486_v38  ;;  %v1534_v24 = vld [vmem:[#allocation2 + $0x338] sm:$0xff] }
 0x394   : > { %v1550_v44 = vld [vmem:[#allocation2 + $0x3b8] sm:$0xff] }
 0x395   : > { %v1558_v37 = vld [vmem:[#allocation2 + $0x3f8] sm:$0xff] }
 0x396   : > { %2051 = vmatmul.mubr.f32.vlgmr.msra.gmra.mrb[132].mxu1 %v5975_v62  ;;  %v1502_v62 = vld [vmem:[#allocation2 + $0x238] sm:$0xff] }
 0x397   : > { %2056 = vmatprep.mubr.f32.mxu1 %v5987_v18  ;;  %4679 = vmatpush1.bf16.msra.mxu1 %v4678_v47  ;;  %v1510_v18 = vld [vmem:[#allocation2 + $0x278] sm:$0xff]  ;;  %v1509_v47 = vld [vmem:[#allocation2 + $0x270] sm:$0xff] }
 0x398   : > { %4681 = vmatprep.subr.bf16.mxu1 %v4680_v17  ;;  %v4692_v48 = vpack.c.bf16 %v1510_v18, %v1502_v62  ;;  %v1501_v17 = vld [vmem:[#allocation2 + $0x230] sm:$0xff]  ;;  %v1566_v43 = vld [vmem:[#allocation2 + $0x438] sm:$0xff] }
 0x399   : > { %v4694_v38 = vpack.c.bf16 %v1509_v47, %v1501_v17  ;;  %v1549_v17 = vld [vmem:[#allocation2 + $0x3b0] sm:$0xff]  ;;  %v1574_v51 = vld [vmem:[#allocation2 + $0x478] sm:$0xff] }
 0x39a   : > { %2057 = vmatmul.mubr.f32.gmra.mrb[134].mxu1 %v5989_v4  ;;  %v1557_v47 = vld [vmem:[#allocation2 + $0x3f0] sm:$0xff] }
 0x39b   : > { %2062 = vmatprep.mubr.f32.mxu1 %v6002_v27  ;;  %4683 = vmatpush1.bf16.msra.mxu1 %v4682_v3  ;;  %v1542_v3 = vld [vmem:[#allocation2 + $0x378] sm:$0xff] }
 0x39c   : > { %4685 = vmatprep.subr.bf16.mxu1 %v4684_v36  ;;  %v1525_v36 = vld [vmem:[#allocation2 + $0x2f0] sm:$0xff]  ;;  %v4700_v18 = vpack.c.bf16 %v1542_v3, %v1534_v24  ;;  %v1582_v24 = vld [vmem:[#allocation2 + $0x4b8] sm:$0xff] }
 0x39d   : > { %v4698_v62 = vpack.c.bf16 %v1525_v36, %v1517_v28  ;;  %v1565_v28 = vld [vmem:[#allocation2 + $0x430] sm:$0xff]  ;;  %v1590_v3 = vld [vmem:[#allocation2 + $0x4f8] sm:$0xff] }
 0x39e   : > { %2063 = vmatmul.mubr.f32.gmra.mrb[136].mxu1 %v6004_v8  ;;  %v1573_v36 = vld [vmem:[#allocation2 + $0x470] sm:$0xff] }
 0x39f   : > { %2068 = vmatprep.mubr.f32.mxu1 %v6017_v10  ;;  %4687 = vmatpush1.bf16.msra.mxu1 %v4686_v50  ;;  %v1533_v50 = vld [vmem:[#allocation2 + $0x330] sm:$0xff] }
 0x3a0   : > { %4689 = vmatprep.subr.bf16.mxu1 %v4688_v45  ;;  %v1541_v45 = vld [vmem:[#allocation2 + $0x370] sm:$0xff] }
 0x3a2   : > { %2069 = vmatmul.mubr.f32.gmra.mrb[138].mxu1 %v6019_v22 }
 0x3a3   : > { %2074 = vmatprep.mubr.f32.mxu1 %v6032_v6  ;;  %4691 = vmatpush1.bf16.msra.mxu1 %v4690_v31  ;;  %v4702_v31 = vpack.c.bf16 %v1541_v45, %v1533_v50  ;;  %v1581_v50 = vld [vmem:[#allocation2 + $0x4b0] sm:$0xff] }
 0x3a4   : > { %4693 = vmatprep.subr.bf16.mxu1 %v4692_v48  ;;  %v4704_v48 = vpack.c.bf16 %v1558_v37, %v1550_v44  ;;  %v1589_v45 = vld [vmem:[#allocation2 + $0x4f0] sm:$0xff]  ;;  %v1598_v44 = vld [vmem:[#allocation2 + $0x538] sm:$0xff] }
 0x3a5   : > { %v1606_v37 = vld [vmem:[#allocation2 + $0x578] sm:$0xff] }
 0x3a6   : > { %2075 = vmatmul.mubr.f32.gmra.mrb[140].mxu1 %v6034_v55 }
 0x3a7   : > { %2080 = vmatprep.mubr.f32.mxu1 %v6047_v60  ;;  %4695 = vmatpush1.bf16.msra.mxu1 %v4694_v38  ;;  %v4706_v38 = vpack.c.bf16 %v1557_v47, %v1549_v17  ;;  %v1597_v17 = vld [vmem:[#allocation2 + $0x530] sm:$0xff] }
 0x3a8   : > { %4697 = vmatprep.subr.bf16.mxu1 %v4696_v58  ;;  %v4708_v58 = vpack.c.bf16 %v1574_v51, %v1566_v43  ;;  %v1605_v47 = vld [vmem:[#allocation2 + $0x570] sm:$0xff]  ;;  %v1614_v43 = vld [vmem:[#allocation2 + $0x5b8] sm:$0xff] }
 0x3a9   : > { %v1622_v51 = vld [vmem:[#allocation2 + $0x5f8] sm:$0xff] }
 0x3aa   : > { %2081 = vmatmul.mubr.f32.gmra.mrb[142].mxu1 %v6049_v21 }
 0x3ab   : > { %2086 = vmatprep.mubr.f32.mxu1 %v6062_v39  ;;  %4699 = vmatpush1.bf16.msra.mxu1 %v4698_v62  ;;  %v4710_v62 = vpack.c.bf16 %v1573_v36, %v1565_v28  ;;  %v1613_v28 = vld [vmem:[#allocation2 + $0x5b0] sm:$0xff] }
 0x3ac   : > { %4701 = vmatprep.subr.bf16.mxu1 %v4700_v18  ;;  %v4712_v18 = vpack.c.bf16 %v1590_v3, %v1582_v24  ;;  %v1621_v36 = vld [vmem:[#allocation2 + $0x5f0] sm:$0xff]  ;;  %v1630_v24 = vld [vmem:[#allocation2 + $0x638] sm:$0xff] }
 0x3ad   : > { %v1638_v3 = vld [vmem:[#allocation2 + $0x678] sm:$0xff] }
 0x3ae   : > { %2087 = vmatmul.mubr.f32.gmra.mrb[144].mxu1 %v6064_v2 }
 0x3af   : > { %2092 = vmatprep.mubr.f32.mxu1 %v6077_v29  ;;  %4703 = vmatpush1.bf16.msra.mxu1 %v4702_v31  ;;  %v4714_v31 = vpack.c.bf16 %v1589_v45, %v1581_v50  ;;  %v1629_v50 = vld [vmem:[#allocation2 + $0x630] sm:$0xff] }
 0x3b0   : > { %4705 = vmatprep.subr.bf16.mxu1 %v4704_v48  ;;  %v4716_v48 = vpack.c.bf16 %v1606_v37, %v1598_v44  ;;  %v1637_v45 = vld [vmem:[#allocation2 + $0x670] sm:$0xff]  ;;  %v1646_v44 = vld [vmem:[#allocation2 + $0x6b8] sm:$0xff] }
 0x3b1   : > { %v1654_v37 = vld [vmem:[#allocation2 + $0x6f8] sm:$0xff] }
 0x3b2   : > { %2093 = vmatmul.mubr.f32.gmra.mrb[146].mxu1 %v6079_v35 }
 0x3b3   : > { %2098 = vmatprep.mubr.f32.mxu1 %v6092_v26  ;;  %4707 = vmatpush1.bf16.msra.mxu1 %v4706_v38  ;;  %v4718_v38 = vpack.c.bf16 %v1605_v47, %v1597_v17  ;;  %v1645_v17 = vld [vmem:[#allocation2 + $0x6b0] sm:$0xff] }
 0x3b4   : > { %4709 = vmatprep.subr.bf16.mxu1 %v4708_v58  ;;  %v4720_v58 = vpack.c.bf16 %v1622_v51, %v1614_v43  ;;  %v1653_v47 = vld [vmem:[#allocation2 + $0x6f0] sm:$0xff]  ;;  %v1662_v43 = vld [vmem:[#allocation2 + $0x738] sm:$0xff] }
 0x3b5   : > { %v1670_v51 = vld [vmem:[#allocation2 + $0x778] sm:$0xff] }
 0x3b6   : > { %2099 = vmatmul.mubr.f32.gmra.mrb[148].mxu1 %v6094_v33 }
 0x3b7   : > { %2104 = vmatprep.mubr.f32.mxu1 %v6101_v14  ;;  %4711 = vmatpush1.bf16.msra.mxu1 %v4710_v62  ;;  %v4722_v62 = vpack.c.bf16 %v1621_v36, %v1613_v28  ;;  %v1661_v28 = vld [vmem:[#allocation2 + $0x730] sm:$0xff] }
 0x3b8   : > { %4713 = vmatprep.subr.bf16.mxu1 %v4712_v18  ;;  %v4724_v18 = vpack.c.bf16 %v1638_v3, %v1630_v24  ;;  %v1669_v36 = vld [vmem:[#allocation2 + $0x770] sm:$0xff]  ;;  %v1678_v24 = vld [vmem:[#allocation2 + $0x7b8] sm:$0xff] }
 0x3b9   : > { %v1686_v3 = vld [vmem:[#allocation2 + $0x7f8] sm:$0xff] }
 0x3ba   : > { %2105 = vmatmul.mubr.f32.gmra.mrb[150].mxu1 %v6109_v7 }
 0x3bb   : > { %2110 = vmatprep.mubr.f32.mxu1 %v6116_v61  ;;  %4715 = vmatpush1.bf16.msra.mxu1 %v4714_v31  ;;  %v4726_v31 = vpack.c.bf16 %v1637_v45, %v1629_v50  ;;  %v1677_v50 = vld [vmem:[#allocation2 + $0x7b0] sm:$0xff] }
 0x3bc   : > { %4717 = vmatprep.subr.bf16.mxu1 %v4716_v48  ;;  %v4728_v48 = vpack.c.bf16 %v1654_v37, %v1646_v44  ;;  %v1685_v45 = vld [vmem:[#allocation2 + $0x7f0] sm:$0xff]  ;;  %v1689_v37 = vlaneseq }
 0x3bd   : > { %v4738_v44 = vpack.c.bf16 %v1685_v45, %v1677_v50 }
 0x3be   : > { %2111 = vmatmul.mubr.f32.gmra.mrb[152].mxu1 %v6118_v11 }
 0x3bf   : > { %2116 = vmatprep.mubr.f32.mxu1 %v6125_v15  ;;  %4719 = vmatpush1.bf16.msra.mxu1 %v4718_v38  ;;  %v4730_v38 = vpack.c.bf16 %v1653_v47, %v1645_v17  ;;  %v6383_v17 = vld [vmem:[%s7614_s8] sm:$0xff] }
 0x3c0   : > { %4721 = vmatprep.subr.bf16.mxu1 %v4720_v58  ;;  %v4732_v58 = vpack.c.bf16 %v1670_v51, %v1662_v43 }
 0x3c2   : > { %2117 = vmatmul.mubr.f32.gmra.mrb[154].mxu1 %v6133_v57 }
 0x3c3   : > { %2122 = vmatprep.mubr.f32.mxu1 %v6139_v12  ;;  %4723 = vmatpush1.bf16.msra.mxu1 %v4722_v62  ;;  %v4734_v62 = vpack.c.bf16 %v1669_v36, %v1661_v28 }
 0x3c4   : > { %4725 = vmatprep.subr.bf16.mxu1 %v4724_v18  ;;  %v4736_v18 = vpack.c.bf16 %v1686_v3, %v1678_v24  ;;  %v3045_v3 = vld [vmem:[%s7615_s9 + $0x100] sm:$0xff] }
 0x3c6   : > { %2123 = vmatmul.mubr.f32.gmra.mrb[156].mxu1 %v6141_v46 }
 0x3c7   : > { %2128 = vmatprep.mubr.f32.mxu1 %v6148_v40  ;;  %4727 = vmatpush1.bf16.msra.mxu1 %v4726_v31  ;;  %v6374_v31 = vshrl.u32 %v1689_v37, 7 }
 0x3c8   : > { %4729 = vmatprep.subr.bf16.mxu1 %v4728_v48 }
 0x3c9   : > { %v1691_v48 = vsub.s32 0, %v6374_v31  ;;  %v1695_v47 = vsub.s32 1, %v6374_v31 }
 0x3ca   : > { %2129 = vmatmul.mubr.f32.gmra.mrb[158].mxu1 %v6156_v30 }
 0x3cb   : > { %2134 = vmatprep.mubr.f32.mxu1 %v6162_v41  ;;  %4731 = vmatpush1.bf16.msra.mxu1 %v4730_v38  ;;  %v6388_v43 = vrot.slane %v6383_v17, %v1691_v48  ;;  %v6392_v51 = vrot.slane %v6383_v17, %v1695_v47 }
 0x3cc   : > { %4733 = vmatprep.subr.bf16.mxu1 %v4732_v58 }
 0x3ce   : > { %2135 = vmatmul.mubr.f32.gmra.mrb[160].mxu1 %v6164_v42 }
 0x3cf   : > { %2140 = vmatprep.mubr.f32.mxu1 %v6171_v20  ;;  %4735 = vmatpush1.bf16.msra.mxu1 %v4734_v62  ;;  %v3046_v62 = vld [vmem:[%s7615_s9 + $0x108] sm:$0xff] }
 0x3d0   : > { %4737 = vmatprep.subr.bf16.mxu1 %v4736_v18  ;;  %v4789_v37 = vpack.c.bf16 %v3046_v62, %v3045_v3 }
 0x3d2   : > { %2141 = vmatmul.mubr.f32.gmra.mrb[162].mxu1 %v6179_v9 }
 0x3d3   : > { %2146 = vmatprep.mubr.f32.mxu1 %v6185_v56  ;;  %4739 = vmatpush1.bf16.msra.mxu1 %v4738_v44 }
 0x3d4   : > { %4932 = vmatprep.subr.bf16.mxu1 %v7710_v25 }
 0x3d6   : > { %2147 = vmatmul.mubr.f32.gmra.mrb[164].mxu1 %v6187_v59 }
 0x3d7   : > { %2152 = vmatprep.mubr.f32.mxu1 %v6194_v54 }
 0x3da   : > { %2153 = vmatmul.mubr.f32.gmra.mrb[166].mxu1 %v6202_v5 }
 0x3db   : > { %2158 = vmatprep.mubr.f32.mxu1 %v6208_v16 }
 0x3de   : > { %2159 = vmatmul.mubr.f32.gmra.mrb[168].mxu1 %v6210_v52 }
 0x3df   : > { %2164 = vmatprep.mubr.f32.mxu1 %v6217_v13 }
 0x3e2   : > { %2165 = vmatmul.mubr.f32.gmra.mrb[170].mxu1 %v6225_v63 }
 0x3e3   : > { %2170 = vmatprep.mubr.f32.mxu1 %v6231_v23 }
 0x3e6   : > { %2171 = vmatmul.mubr.f32.gmra.mrb[172].mxu1 %v6233_v34 }
 0x3e7   : > { %2176 = vmatprep.mubr.f32.mxu1 %v6240_v49 }
 0x3e9   : > { %v1795_v38 = vpop.f32.mrb[68].mxu1  ;;  %v6394_v58 = vpop.f32.mrb[32].mxu0 }
 0x3ea   : > { %7744 = vst [vmem:[#allocation33_spill] sm:$0xff] %v6394_v58  ;;  %v1796_v28 = vadd.f32 %v1795_v38, %v6388_v43  ;;  %v1797_v36 = vpop.f32.mrb[69].mxu1  ;;  %2177 = vmatmul.mubr.f32.gmra.mrb[174].mxu1 %v6248_v53  ;;  %v6398_v24 = vpop.f32.mrb[33].mxu0 }
 0x3eb   : > { %7745 = vst [vmem:[#allocation34_spill] sm:$0xff] %v6398_v24  ;;  %v1798_v18 = vadd.f32 %v1797_v36, %v6392_v51  ;;  %2182 = vmatprep.mubr.f32.mxu1 %v6254_v32  ;;  %v3047_v24 = vld [vmem:[%s7615_s9 + $0x110] sm:$0xff]  ;;  %v3048_v36 = vld [vmem:[%s7615_s9 + $0x118] sm:$0xff] }
 0x3ec   : > { %v2757_v48 = vmax.f32 %v1796_v28, 0.0  ;;  %v7749_v32 = vld [vmem:[#allocation16_spill] sm:$0xff] }
 0x3ed   : > { %v2758_v50 = vmax.f32 %v1798_v18, 0.0  ;;  %v1801_v45 = vpop.f32.mrb[70].mxu1  ;;  %v6408_v44 = vpop.f32.mrb[34].mxu0 }
 0x3ee   : > { %7746 = vst [vmem:[#allocation35_spill] sm:$0xff] %v6408_v44  ;;  %v1802_v47 = vadd.f32 %v1801_v45, %v6388_v43  ;;  %v1803_v38 = vpop.f32.mrb[71].mxu1  ;;  %2183 = vmatmul.mubr.f32.gmra.mrb[176].mxu1 %v6256_v19  ;;  %v6412_v58 = vpop.f32.mrb[35].mxu0  ;;  %v4792_v45 = vpack.c.bf16 %v3048_v36, %v3047_v24 }
 0x3ef   : > { %7747 = vst [vmem:[#allocation36_spill] sm:$0xff] %v6412_v58  ;;  %v1804_v18 = vadd.f32 %v1803_v38, %v6392_v51  ;;  %2188 = vmatprep.mubr.f32.mxu1 %v6263_v0  ;;  %3212 = vmatprep.mubr.f32.mxu0 %v2758_v50  ;;  %v3049_v50 = vld [vmem:[%s7615_s9 + $0x120] sm:$0xff] }
 0x3f0   : > { %3213 = vmatmul.mubr.f32.vlgmr.msra.gmra.mrb[96].mxu0 %v2757_v48  ;;  %v2765_v44 = vmax.f32 %v1802_v47, 0.0  ;;  %v7751_v48 = vld [vmem:[#allocation17_spill] sm:$0xff] }
 0x3f1   : > { %v2766_v28 = vmax.f32 %v1804_v18, 0.0  ;;  %4790 = vmatpush1.bf16.msra.mxu0 %v4789_v37  ;;  %v1807_v3 = vpop.f32.mrb[72].mxu1  ;;  %v6422_v62 = vpop.f32.mrb[36].mxu0  ;;  %v3050_v37 = vld [vmem:[%s7615_s9 + $0x128] sm:$0xff] }
 0x3f2   : > { %7748 = vst [vmem:[#allocation37_spill] sm:$0xff] %v6422_v62  ;;  %v1808_v58 = vadd.f32 %v1807_v3, %v6388_v43  ;;  %v1809_v19 = vpop.f32.mrb[73].mxu1  ;;  %2189 = vmatmul.mubr.f32.gmra.mrb[178].mxu1 %v7749_v32  ;;  %v6426_v53 = vpop.f32.mrb[37].mxu0  ;;  %4791 = vmatprep.subr.bf16.mxu0 %v7710_v25  ;;  %v4795_v18 = vpack.c.bf16 %v3050_v37, %v3049_v50  ;;  %v7753_v32 = vld [vmem:[#allocation18_spill] sm:$0xff] }
 0x3f3   : > { %7750 = vst [vmem:[#allocation38_spill] sm:$0xff] %v6426_v53  ;;  %v1810_v24 = vadd.f32 %v1809_v19, %v6392_v51  ;;  %2194 = vmatprep.mubr.f32.mxu1 %v7751_v48  ;;  %3217 = vmatprep.mubr.f32.mxu0 %v2766_v28  ;;  %v3051_v19 = vld [vmem:[%s7615_s9 + $0x130] sm:$0xff] }
 0x3f4   : > { %3218 = vmatmul.mubr.f32.gmra.mrb[98].mxu0 %v2765_v44  ;;  %v2773_v3 = vmax.f32 %v1808_v58, 0.0  ;;  %v3052_v44 = vld [vmem:[%s7615_s9 + $0x138] sm:$0xff]  ;;  %v7755_v58 = vld [vmem:[#allocation19_spill] sm:$0xff] }
 0x3f5   : > { %v2774_v47 = vmax.f32 %v1810_v24, 0.0  ;;  %v1813_v38 = vpop.f32.mrb[74].mxu1  ;;  %v6437_v36 = vpop.f32.mrb[38].mxu0  ;;  %4793 = vmatpush1.bf16.msra.mxu0 %v4792_v45  ;;  %v4798_v24 = vpack.c.bf16 %v3052_v44, %v3051_v19 }
 0x3f6   : > { %7752 = vst [vmem:[#allocation39_spill] sm:$0xff] %v6437_v36  ;;  %v1814_v62 = vadd.f32 %v1813_v38, %v6388_v43  ;;  %v1815_v53 = vpop.f32.mrb[75].mxu1  ;;  %2195 = vmatmul.mubr.f32.gmra.mrb[180].mxu1 %v7753_v32  ;;  %v6441_v0 = vpop.f32.mrb[39].mxu0  ;;  %4794 = vmatprep.subr.bf16.mxu0 %v7710_v25  ;;  %v7757_v32 = vld [vmem:[#allocation20_spill] sm:$0xff] }
 0x3f7   : > { %7754 = vst [vmem:[#allocation40_spill] sm:$0xff] %v6441_v0  ;;  %v1816_v28 = vadd.f32 %v1815_v53, %v6392_v51  ;;  %2200 = vmatprep.mubr.f32.mxu1 %v7755_v58  ;;  %3222 = vmatprep.mubr.f32.mxu0 %v2774_v47  ;;  %v3053_v53 = vld [vmem:[%s7615_s9 + $0x140] sm:$0xff]  ;;  %v3054_v47 = vld [vmem:[%s7615_s9 + $0x148] sm:$0xff] }
 0x3f8   : > { %3223 = vmatmul.mubr.f32.gmra.mrb[100].mxu0 %v2773_v3  ;;  %v2781_v38 = vmax.f32 %v1814_v62, 0.0  ;;  %v7759_v62 = vld [vmem:[#allocation21_spill] sm:$0xff] }
 0x3f9   : > { %v2782_v45 = vmax.f32 %v1816_v28, 0.0  ;;  %v1819_v50 = vpop.f32.mrb[76].mxu1  ;;  %v6452_v37 = vpop.f32.mrb[40].mxu0  ;;  %4796 = vmatpush1.bf16.msra.mxu0 %v4795_v18  ;;  %v4801_v28 = vpack.c.bf16 %v3054_v47, %v3053_v53 }
 0x3fa   : > { %7756 = vst [vmem:[#allocation41_spill] sm:$0xff] %v6452_v37  ;;  %v1820_v36 = vadd.f32 %v1819_v50, %v6388_v43  ;;  %v1821_v0 = vpop.f32.mrb[77].mxu1  ;;  %2201 = vmatmul.mubr.f32.gmra.mrb[182].mxu1 %v7757_v32  ;;  %v6456_v48 = vpop.f32.mrb[41].mxu0  ;;  %4797 = vmatprep.subr.bf16.mxu0 %v7710_v25  ;;  %v7761_v32 = vld [vmem:[#allocation22_spill] sm:$0xff] }
 0x3fb   : > { %7758 = vst [vmem:[#allocation42_spill] sm:$0xff] %v6456_v48  ;;  %v1822_v18 = vadd.f32 %v1821_v0, %v6392_v51  ;;  %2206 = vmatprep.mubr.f32.mxu1 %v7759_v62  ;;  %3227 = vmatprep.mubr.f32.mxu0 %v2782_v45  ;;  %v3055_v0 = vld [vmem:[%s7615_s9 + $0x150] sm:$0xff]  ;;  %v3056_v45 = vld [vmem:[%s7615_s9 + $0x158] sm:$0xff] }
 0x3fc   : > { %3228 = vmatmul.mubr.f32.gmra.mrb[102].mxu0 %v2781_v38  ;;  %v2789_v50 = vmax.f32 %v1820_v36, 0.0  ;;  %v7763_v36 = vld [vmem:[#allocation23_spill] sm:$0xff] }
 0x3fd   : > { %v2790_v3 = vmax.f32 %v1822_v18, 0.0  ;;  %v1825_v19 = vpop.f32.mrb[78].mxu1  ;;  %v6467_v44 = vpop.f32.mrb[42].mxu0  ;;  %4799 = vmatpush1.bf16.msra.mxu0 %v4798_v24  ;;  %v4804_v18 = vpack.c.bf16 %v3056_v45, %v3055_v0 }
 0x3fe   : > { %7760 = vst [vmem:[#allocation43_spill] sm:$0xff] %v6467_v44  ;;  %v1826_v37 = vadd.f32 %v1825_v19, %v6388_v43  ;;  %v1827_v48 = vpop.f32.mrb[79].mxu1  ;;  %2207 = vmatmul.mubr.f32.gmra.mrb[184].mxu1 %v7761_v32  ;;  %v6471_v58 = vpop.f32.mrb[43].mxu0  ;;  %4800 = vmatprep.subr.bf16.mxu0 %v7710_v25  ;;  %v7765_v32 = vld [vmem:[#allocation24_spill] sm:$0xff] }
 0x3ff   : > { %7762 = vst [vmem:[#allocation44_spill] sm:$0xff] %v6471_v58  ;;  %v1828_v24 = vadd.f32 %v1827_v48, %v6392_v51  ;;  %2212 = vmatprep.mubr.f32.mxu1 %v7763_v36  ;;  %3232 = vmatprep.mubr.f32.mxu0 %v2790_v3  ;;  %v3057_v48 = vld [vmem:[%s7615_s9 + $0x160] sm:$0xff]  ;;  %v3058_v3 = vld [vmem:[%s7615_s9 + $0x168] sm:$0xff] }
 0x400   : > { %3233 = vmatmul.mubr.f32.gmra.mrb[104].mxu0 %v2789_v50  ;;  %v2797_v19 = vmax.f32 %v1826_v37, 0.0  ;;  %v7767_v37 = vld [vmem:[#allocation25_spill] sm:$0xff] }
 0x401   : > { %v2798_v38 = vmax.f32 %v1828_v24, 0.0  ;;  %v1831_v53 = vpop.f32.mrb[80].mxu1  ;;  %v6482_v47 = vpop.f32.mrb[44].mxu0  ;;  %4802 = vmatpush1.bf16.msra.mxu0 %v4801_v28  ;;  %v4807_v24 = vpack.c.bf16 %v3058_v3, %v3057_v48 }
 0x402   : > { %7764 = vst [vmem:[#allocation45_spill] sm:$0xff] %v6482_v47  ;;  %v1832_v44 = vadd.f32 %v1831_v53, %v6388_v43  ;;  %v1833_v58 = vpop.f32.mrb[81].mxu1  ;;  %2213 = vmatmul.mubr.f32.gmra.mrb[186].mxu1 %v7765_v32  ;;  %v6486_v62 = vpop.f32.mrb[45].mxu0  ;;  %4803 = vmatprep.subr.bf16.mxu0 %v7710_v25  ;;  %v7769_v32 = vld [vmem:[#allocation26_spill] sm:$0xff] }
 0x403   : > { %7766 = vst [vmem:[#allocation46_spill] sm:$0xff] %v6486_v62  ;;  %v1834_v28 = vadd.f32 %v1833_v58, %v6392_v51  ;;  %2218 = vmatprep.mubr.f32.mxu1 %v7767_v37  ;;  %3237 = vmatprep.mubr.f32.mxu0 %v2798_v38  ;;  %v3059_v58 = vld [vmem:[%s7615_s9 + $0x170] sm:$0xff]  ;;  %v3060_v38 = vld [vmem:[%s7615_s9 + $0x178] sm:$0xff] }
 0x404   : > { %3238 = vmatmul.mubr.f32.gmra.mrb[106].mxu0 %v2797_v19  ;;  %v2805_v53 = vmax.f32 %v1832_v44, 0.0  ;;  %v7771_v44 = vld [vmem:[#allocation27_spill] sm:$0xff] }
 0x405   : > { %v2806_v50 = vmax.f32 %v1834_v28, 0.0  ;;  %v1837_v0 = vpop.f32.mrb[82].mxu1  ;;  %v6497_v45 = vpop.f32.mrb[46].mxu0  ;;  %4805 = vmatpush1.bf16.msra.mxu0 %v4804_v18  ;;  %v4810_v28 = vpack.c.bf16 %v3060_v38, %v3059_v58 }
 0x406   : > { %7768 = vst [vmem:[#allocation47_spill] sm:$0xff] %v6497_v45  ;;  %v1838_v47 = vadd.f32 %v1837_v0, %v6388_v43  ;;  %v1839_v62 = vpop.f32.mrb[83].mxu1  ;;  %2219 = vmatmul.mubr.f32.gmra.mrb[188].mxu1 %v7769_v32  ;;  %v6501_v36 = vpop.f32.mrb[47].mxu0  ;;  %4806 = vmatprep.subr.bf16.mxu0 %v7710_v25  ;;  %v7773_v32 = vld [vmem:[#allocation28_spill] sm:$0xff] }
 0x407   : > { %7770 = vst [vmem:[#allocation48_spill] sm:$0xff] %v6501_v36  ;;  %v1840_v18 = vadd.f32 %v1839_v62, %v6392_v51  ;;  %2224 = vmatprep.mubr.f32.mxu1 %v7771_v44  ;;  %3242 = vmatprep.mubr.f32.mxu0 %v2806_v50  ;;  %v3061_v62 = vld [vmem:[%s7615_s9 + $0x180] sm:$0xff]  ;;  %v3062_v50 = vld [vmem:[%s7615_s9 + $0x188] sm:$0xff] }
 0x408   : > { %3243 = vmatmul.mubr.f32.gmra.mrb[108].mxu0 %v2805_v53  ;;  %v2813_v0 = vmax.f32 %v1838_v47, 0.0  ;;  %v7775_v47 = vld [vmem:[#allocation29_spill] sm:$0xff] }
 0x409   : > { %v2814_v19 = vmax.f32 %v1840_v18, 0.0  ;;  %v1843_v48 = vpop.f32.mrb[84].mxu1  ;;  %v6512_v3 = vpop.f32.mrb[48].mxu0  ;;  %4808 = vmatpush1.bf16.msra.mxu0 %v4807_v24  ;;  %v4813_v18 = vpack.c.bf16 %v3062_v50, %v3061_v62 }
 0x40a   : > { %7772 = vst [vmem:[#allocation49_spill] sm:$0xff] %v6512_v3  ;;  %v1844_v45 = vadd.f32 %v1843_v48, %v6388_v43  ;;  %v1845_v36 = vpop.f32.mrb[85].mxu1  ;;  %2225 = vmatmul.mubr.f32.gmra.mrb[190].mxu1 %v7773_v32  ;;  %v6516_v37 = vpop.f32.mrb[49].mxu0  ;;  %4809 = vmatprep.subr.bf16.mxu0 %v7710_v25  ;;  %v7777_v32 = vld [vmem:[#allocation30_spill] sm:$0xff] }
 0x40b   : > { %7774 = vst [vmem:[#allocation50_spill] sm:$0xff] %v6516_v37  ;;  %v1846_v24 = vadd.f32 %v1845_v36, %v6392_v51  ;;  %2230 = vmatprep.mubr.f32.mxu1 %v7775_v47  ;;  %3247 = vmatprep.mubr.f32.mxu0 %v2814_v19  ;;  %v3063_v36 = vld [vmem:[%s7615_s9 + $0x190] sm:$0xff]  ;;  %v3064_v19 = vld [vmem:[%s7615_s9 + $0x198] sm:$0xff] }
 0x40c   : > { %3248 = vmatmul.mubr.f32.gmra.mrb[110].mxu0 %v2813_v0  ;;  %v2821_v48 = vmax.f32 %v1844_v45, 0.0  ;;  %v7779_v45 = vld [vmem:[#allocation31_spill] sm:$0xff] }
 0x40d   : > { %v2822_v53 = vmax.f32 %v1846_v24, 0.0  ;;  %v1849_v58 = vpop.f32.mrb[86].mxu1  ;;  %v6527_v38 = vpop.f32.mrb[50].mxu0  ;;  %4811 = vmatpush1.bf16.msra.mxu0 %v4810_v28  ;;  %v4816_v24 = vpack.c.bf16 %v3064_v19, %v3063_v36 }
 0x40e   : > { %7776 = vst [vmem:[#allocation51_spill] sm:$0xff] %v6527_v38  ;;  %v1850_v3 = vadd.f32 %v1849_v58, %v6388_v43  ;;  %v1851_v37 = vpop.f32.mrb[87].mxu1  ;;  %2231 = vmatmul.mubr.f32.gmra.mrb[192].mxu1 %v7777_v32  ;;  %v6531_v44 = vpop.f32.mrb[51].mxu0  ;;  %4812 = vmatprep.subr.bf16.mxu0 %v7710_v25  ;;  %v7781_v32 = vld [vmem:[#allocation32_spill] sm:$0xff] }
 0x40f   : > { %7778 = vst [vmem:[#allocation52_spill] sm:$0xff] %v6531_v44  ;;  %v1852_v28 = vadd.f32 %v1851_v37, %v6392_v51  ;;  %2236 = vmatprep.mubr.f32.mxu1 %v7779_v45  ;;  %3252 = vmatprep.mubr.f32.mxu0 %v2822_v53  ;;  %v3065_v37 = vld [vmem:[%s7615_s9 + $0x1a0] sm:$0xff]  ;;  %v3066_v53 = vld [vmem:[%s7615_s9 + $0x1a8] sm:$0xff] }
 0x410   : > { %3253 = vmatmul.mubr.f32.gmra.mrb[112].mxu0 %v2821_v48  ;;  %v2829_v58 = vmax.f32 %v1850_v3, 0.0  ;;  %v4819_v19 = vpack.c.bf16 %v3066_v53, %v3065_v37 }
 0x411   : > { %v2830_v0 = vmax.f32 %v1852_v28, 0.0  ;;  %v1855_v62 = vpop.f32.mrb[88].mxu1  ;;  %v6542_v50 = vpop.f32.mrb[52].mxu0  ;;  %4814 = vmatpush1.bf16.msra.mxu0 %v4813_v18 }
 0x412   : > { %7780 = vst [vmem:[#allocation31_spill] sm:$0xff] %v6542_v50  ;;  %v1856_v38 = vadd.f32 %v1855_v62, %v6388_v43  ;;  %v1857_v44 = vpop.f32.mrb[89].mxu1  ;;  %2237 = vmatmul.mubr.f32.gmra.mrb[194].mxu1 %v7781_v32  ;;  %v6546_v47 = vpop.f32.mrb[53].mxu0  ;;  %4815 = vmatprep.subr.bf16.mxu0 %v7710_v25  ;;  %v7784_v32 = vld [vmem:[#allocation10_spill] sm:$0xff] }
 0x413   : > { %7782 = vst [vmem:[#allocation53_spill] sm:$0xff] %v6546_v47  ;;  %v1858_v18 = vadd.f32 %v1857_v44, %v6392_v51  ;;  %2564 = vmatprep.mubr.f32.mxu1 %v5973_v1  ;;  %3257 = vmatprep.mubr.f32.mxu0 %v2830_v0  ;;  %v3067_v1 = vld [vmem:[%s7615_s9 + $0x1b0] sm:$0xff]  ;;  %v3068_v44 = vld [vmem:[%s7615_s9 + $0x1b8] sm:$0xff] }
 0x414   : > { %3258 = vmatmul.mubr.f32.gmra.mrb[114].mxu0 %v2829_v58  ;;  %v2837_v28 = vmax.f32 %v1856_v38, 0.0  ;;  %v7785_v38 = vld [vmem:[#allocation11_spill] sm:$0xff] }
 0x415   : > { %v2838_v3 = vmax.f32 %v1858_v18, 0.0  ;;  %v1861_v48 = vpop.f32.mrb[90].mxu1  ;;  %v6557_v36 = vpop.f32.mrb[54].mxu0  ;;  %4817 = vmatpush1.bf16.msra.mxu0 %v4816_v24 }
 0x416   : > { %7783 = vst [vmem:[#allocation54_spill] sm:$0xff] %v6557_v36  ;;  %v1862_v62 = vadd.f32 %v1861_v48, %v6388_v43  ;;  %v1863_v50 = vpop.f32.mrb[91].mxu1  ;;  %v6560_v47 = vpop.f32.mrb[55].mxu0  ;;  %2565 = vmatmul.mubr.f32.vlgmr.msra.gmra.mrb[196].mxu1 %v7784_v32  ;;  %4818 = vmatprep.subr.bf16.mxu0 %v7710_v25  ;;  %v4822_v32 = vpack.c.bf16 %v3068_v44, %v3067_v1 }
 0x417   : > { %v1864_v0 = vadd.f32 %v1863_v50, %v6392_v51  ;;  %2570 = vmatprep.mubr.f32.mxu1 %v7785_v38  ;;  %3262 = vmatprep.mubr.f32.mxu0 %v2838_v3  ;;  %v3069_v50 = vld [vmem:[%s7615_s9 + $0x1c0] sm:$0xff]  ;;  %v3070_v3 = vld [vmem:[%s7615_s9 + $0x1c8] sm:$0xff] }
 0x418   : > { %3263 = vmatmul.mubr.f32.gmra.mrb[116].mxu0 %v2837_v28  ;;  %v2845_v53 = vmax.f32 %v1862_v62, 0.0 }
 0x419   : > { %v2846_v24 = vmax.f32 %v1864_v0, 0.0  ;;  %v1867_v58 = vpop.f32.mrb[92].mxu1  ;;  %v6572_v37 = vpop.f32.mrb[56].mxu0  ;;  %4820 = vmatpush1.bf16.msra.mxu0 %v4819_v19 }
 0x41a   : > { %v1868_v18 = vadd.f32 %v1867_v58, %v6388_v43  ;;  %v1869_v48 = vpop.f32.mrb[93].mxu1  ;;  %v6575_v36 = vpop.f32.mrb[57].mxu0  ;;  %2571 = vmatmul.mubr.f32.gmra.mrb[198].mxu1 %v5989_v4  ;;  %4821 = vmatprep.subr.bf16.mxu0 %v7710_v25  ;;  %v4825_v4 = vpack.c.bf16 %v3070_v3, %v3069_v50 }
 0x41b   : > { %v1870_v19 = vadd.f32 %v1869_v48, %v6392_v51  ;;  %2576 = vmatprep.mubr.f32.mxu1 %v6002_v27  ;;  %3267 = vmatprep.mubr.f32.mxu0 %v2846_v24  ;;  %v3071_v27 = vld [vmem:[%s7615_s9 + $0x1d0] sm:$0xff]  ;;  %v3072_v24 = vld [vmem:[%s7615_s9 + $0x1d8] sm:$0xff] }
 0x41c   : > { %3268 = vmatmul.mubr.f32.gmra.mrb[118].mxu0 %v2845_v53  ;;  %v2853_v44 = vmax.f32 %v1868_v18, 0.0 }
 0x41d   : > { %v2854_v28 = vmax.f32 %v1870_v19, 0.0  ;;  %v1873_v62 = vpop.f32.mrb[94].mxu1  ;;  %v6587_v1 = vpop.f32.mrb[58].mxu0  ;;  %4823 = vmatpush1.bf16.msra.mxu0 %v4822_v32 }
 0x41e   : > { %v1874_v0 = vadd.f32 %v1873_v62, %v6388_v43  ;;  %v1875_v38 = vpop.f32.mrb[95].mxu1  ;;  %v6590_v58 = vpop.f32.mrb[59].mxu0  ;;  %2577 = vmatmul.mubr.f32.gmra.mrb[200].mxu1 %v6004_v8  ;;  %4824 = vmatprep.subr.bf16.mxu0 %v7710_v25  ;;  %v4828_v8 = vpack.c.bf16 %v3072_v24, %v3071_v27 }
 0x41f   : > { %v1876_v32 = vadd.f32 %v1875_v38, %v6392_v51  ;;  %2582 = vmatprep.mubr.f32.mxu1 %v6017_v10  ;;  %3272 = vmatprep.mubr.f32.mxu0 %v2854_v28  ;;  %v3073_v10 = vld [vmem:[%s7615_s9 + $0x1e0] sm:$0xff]  ;;  %v3074_v28 = vld [vmem:[%s7615_s9 + $0x1e8] sm:$0xff] }
 0x420   : > { %3273 = vmatmul.mubr.f32.gmra.mrb[120].mxu0 %v2853_v44  ;;  %v2861_v50 = vmax.f32 %v1874_v0, 0.0 }
 0x421   : > { %v2862_v53 = vmax.f32 %v1876_v32, 0.0  ;;  %v1879_v18 = vpop.f32.mrb[96].mxu1  ;;  %v6602_v48 = vpop.f32.mrb[60].mxu0  ;;  %4826 = vmatpush1.bf16.msra.mxu0 %v4825_v4 }
 0x422   : > { %v1880_v3 = vadd.f32 %v1879_v18, %v6388_v43  ;;  %v1881_v19 = vpop.f32.mrb[97].mxu1  ;;  %v6605_v62 = vpop.f32.mrb[61].mxu0  ;;  %2583 = vmatmul.mubr.f32.gmra.mrb[202].mxu1 %v6019_v22  ;;  %4827 = vmatprep.subr.bf16.mxu0 %v7710_v25  ;;  %v4831_v22 = vpack.c.bf16 %v3074_v28, %v3073_v10 }
 0x423   : > { %v1882_v4 = vadd.f32 %v1881_v19, %v6392_v51  ;;  %2588 = vmatprep.mubr.f32.mxu1 %v6032_v6  ;;  %3277 = vmatprep.mubr.f32.mxu0 %v2862_v53  ;;  %v3075_v6 = vld [vmem:[%s7615_s9 + $0x1f0] sm:$0xff]  ;;  %v3076_v53 = vld [vmem:[%s7615_s9 + $0x1f8] sm:$0xff] }
 0x424   : > { %3278 = vmatmul.mubr.f32.gmra.mrb[122].mxu0 %v2861_v50  ;;  %v2869_v27 = vmax.f32 %v1880_v3, 0.0 }
 0x425   : > { %v2870_v44 = vmax.f32 %v1882_v4, 0.0  ;;  %v1885_v0 = vpop.f32.mrb[98].mxu1  ;;  %v6617_v38 = vpop.f32.mrb[62].mxu0  ;;  %4829 = vmatpush1.bf16.msra.mxu0 %v4828_v8 }
 0x426   : > { %v1886_v24 = vadd.f32 %v1885_v0, %v6388_v43  ;;  %v1887_v32 = vpop.f32.mrb[99].mxu1  ;;  %v6620_v18 = vpop.f32.mrb[63].mxu0  ;;  %2589 = vmatmul.mubr.f32.gmra.mrb[204].mxu1 %v6034_v55  ;;  %4830 = vmatprep.subr.bf16.mxu0 %v7710_v25  ;;  %v4834_v55 = vpack.c.bf16 %v3076_v53, %v3075_v6 }
 0x427   : > { %v1888_v8 = vadd.f32 %v1887_v32, %v6392_v51  ;;  %2594 = vmatprep.mubr.f32.mxu1 %v6047_v60  ;;  %3282 = vmatprep.mubr.f32.mxu0 %v2870_v44 }
 0x428   : > { %3283 = vmatmul.mubr.f32.gmra.mrb[124].mxu0 %v2869_v27  ;;  %v2877_v10 = vmax.f32 %v1886_v24, 0.0 }
 0x429   : > { %v2878_v50 = vmax.f32 %v1888_v8, 0.0  ;;  %v1891_v3 = vpop.f32.mrb[100].mxu1  ;;  %v6632_v19 = vpop.f32.mrb[64].mxu0  ;;  %4832 = vmatpush1.bf16.msra.mxu0 %v4831_v22 }
 0x42a   : > { %v1892_v28 = vadd.f32 %v1891_v3, %v6388_v43  ;;  %v1893_v4 = vpop.f32.mrb[101].mxu1  ;;  %v6635_v0 = vpop.f32.mrb[65].mxu0  ;;  %2595 = vmatmul.mubr.f32.gmra.mrb[206].mxu1 %v6049_v21  ;;  %4833 = vmatprep.subr.bf16.mxu0 %v7710_v25 }
 0x42b   : > { %v1894_v60 = vadd.f32 %v1893_v4, %v6392_v51  ;;  %2600 = vmatprep.mubr.f32.mxu1 %v6062_v39  ;;  %3287 = vmatprep.mubr.f32.mxu0 %v2878_v50 }
 0x42c   : > { %3288 = vmatmul.mubr.f32.gmra.mrb[126].mxu0 %v2877_v10  ;;  %v2885_v24 = vmax.f32 %v1892_v28, 0.0 }
 0x42d   : > { %v2886_v44 = vmax.f32 %v1894_v60, 0.0  ;;  %v1897_v27 = vpop.f32.mrb[102].mxu1  ;;  %v6641_v22 = vpop.f32.mrb[66].mxu0  ;;  %4835 = vmatpush1.bf16.msra.mxu0 %v4834_v55 }
 0x42e   : > { %v1898_v32 = vadd.f32 %v1897_v27, %v6388_v43  ;;  %v1899_v6 = vpop.f32.mrb[103].mxu1  ;;  %v6644_v53 = vpop.f32.mrb[67].mxu0  ;;  %2601 = vmatmul.mubr.f32.gmra.mrb[208].mxu1 %v6064_v2  ;;  %4836 = vmatprep.subr.bf16.mxu0 %v7710_v25 }
 0x42f   : > { %v1900_v21 = vadd.f32 %v1899_v6, %v6392_v51  ;;  %2606 = vmatprep.mubr.f32.mxu1 %v6077_v29  ;;  %3292 = vmatprep.mubr.f32.mxu0 %v2886_v44 }
 0x430   : > { %3293 = vmatmul.mubr.f32.gmra.mrb[128].mxu0 %v2885_v24  ;;  %v2893_v3 = vmax.f32 %v1898_v32, 0.0 }
 0x431   : > { %v2894_v39 = vmax.f32 %v1900_v21, 0.0  ;;  %v1903_v8 = vpop.f32.mrb[104].mxu1  ;;  %v6650_v50 = vpop.f32.mrb[68].mxu0 }
 0x432   : > { %v1904_v55 = vadd.f32 %v1903_v8, %v6388_v43  ;;  %v1905_v10 = vpop.f32.mrb[105].mxu1  ;;  %v6653_v28 = vpop.f32.mrb[69].mxu0  ;;  %2607 = vmatmul.mubr.f32.gmra.mrb[210].mxu1 %v6079_v35 }
 0x433   : > { %v1906_v2 = vadd.f32 %v1905_v10, %v6392_v51  ;;  %2612 = vmatprep.mubr.f32.mxu1 %v6092_v26  ;;  %3297 = vmatprep.mubr.f32.mxu0 %v2894_v39 }
 0x434   : > { %3298 = vmatmul.mubr.f32.gmra.mrb[130].mxu0 %v2893_v3  ;;  %v2901_v44 = vmax.f32 %v1904_v55, 0.0 }
 0x435   : > { %v2902_v29 = vmax.f32 %v1906_v2, 0.0  ;;  %v1909_v4 = vpop.f32.mrb[106].mxu1  ;;  %v6658_v60 = vpop.f32.mrb[70].mxu0 }
 0x436   : > { %v1910_v27 = vadd.f32 %v1909_v4, %v6388_v43  ;;  %v1911_v24 = vpop.f32.mrb[107].mxu1  ;;  %v6661_v32 = vpop.f32.mrb[71].mxu0  ;;  %2613 = vmatmul.mubr.f32.gmra.mrb[212].mxu1 %v6094_v33 }
 0x437   : > { %v1912_v35 = vadd.f32 %v1911_v24, %v6392_v51  ;;  %2618 = vmatprep.mubr.f32.mxu1 %v6101_v14  ;;  %3302 = vmatprep.mubr.f32.mxu0 %v2902_v29 }
 0x438   : > { %3303 = vmatmul.mubr.f32.gmra.mrb[132].mxu0 %v2901_v44  ;;  %v2909_v39 = vmax.f32 %v1910_v27, 0.0 }
 0x439   : > { %v2910_v26 = vmax.f32 %v1912_v35, 0.0  ;;  %v1915_v6 = vpop.f32.mrb[108].mxu1  ;;  %v6666_v21 = vpop.f32.mrb[72].mxu0 }
 0x43a   : > { %v1916_v8 = vadd.f32 %v1915_v6, %v6388_v43  ;;  %v1917_v3 = vpop.f32.mrb[109].mxu1  ;;  %v6669_v55 = vpop.f32.mrb[73].mxu0  ;;  %2619 = vmatmul.mubr.f32.gmra.mrb[214].mxu1 %v6109_v7 }
 0x43b   : > { %v1918_v33 = vadd.f32 %v1917_v3, %v6392_v51  ;;  %2624 = vmatprep.mubr.f32.mxu1 %v6116_v61  ;;  %3307 = vmatprep.mubr.f32.mxu0 %v2910_v26 }
 0x43c   : > { %3308 = vmatmul.mubr.f32.gmra.mrb[134].mxu0 %v2909_v39  ;;  %v2917_v29 = vmax.f32 %v1916_v8, 0.0 }
 0x43d   : > { %v2918_v14 = vmax.f32 %v1918_v33, 0.0  ;;  %v1921_v10 = vpop.f32.mrb[110].mxu1  ;;  %v6674_v2 = vpop.f32.mrb[74].mxu0 }
 0x43e   : > { %v1922_v4 = vadd.f32 %v1921_v10, %v6388_v43  ;;  %v1923_v44 = vpop.f32.mrb[111].mxu1  ;;  %v6677_v27 = vpop.f32.mrb[75].mxu0  ;;  %2625 = vmatmul.mubr.f32.gmra.mrb[216].mxu1 %v6118_v11 }
 0x43f   : > { %v1924_v7 = vadd.f32 %v1923_v44, %v6392_v51  ;;  %2630 = vmatprep.mubr.f32.mxu1 %v6125_v15  ;;  %3312 = vmatprep.mubr.f32.mxu0 %v2918_v14 }
 0x440   : > { %3313 = vmatmul.mubr.f32.gmra.mrb[136].mxu0 %v2917_v29  ;;  %v2925_v26 = vmax.f32 %v1922_v4, 0.0 }
 0x441   : > { %v2926_v61 = vmax.f32 %v1924_v7, 0.0  ;;  %v1927_v24 = vpop.f32.mrb[112].mxu1  ;;  %v6682_v35 = vpop.f32.mrb[76].mxu0 }
 0x442   : > { %v1928_v6 = vadd.f32 %v1927_v24, %v6388_v43  ;;  %v1929_v39 = vpop.f32.mrb[113].mxu1  ;;  %v6685_v8 = vpop.f32.mrb[77].mxu0  ;;  %2631 = vmatmul.mubr.f32.gmra.mrb[218].mxu1 %v6133_v57 }
 0x443   : > { %v1930_v11 = vadd.f32 %v1929_v39, %v6392_v51  ;;  %2636 = vmatprep.mubr.f32.mxu1 %v6139_v12  ;;  %3317 = vmatprep.mubr.f32.mxu0 %v2926_v61 }
 0x444   : > { %3318 = vmatmul.mubr.f32.gmra.mrb[138].mxu0 %v2925_v26  ;;  %v2933_v14 = vmax.f32 %v1928_v6, 0.0 }
 0x445   : > { %v2934_v15 = vmax.f32 %v1930_v11, 0.0  ;;  %v1933_v3 = vpop.f32.mrb[114].mxu1  ;;  %v6690_v33 = vpop.f32.mrb[78].mxu0 }
 0x446   : > { %v1934_v10 = vadd.f32 %v1933_v3, %v6388_v43  ;;  %v1935_v29 = vpop.f32.mrb[115].mxu1  ;;  %v6693_v4 = vpop.f32.mrb[79].mxu0  ;;  %2637 = vmatmul.mubr.f32.gmra.mrb[220].mxu1 %v6141_v46 }
 0x447   : > { %v1936_v57 = vadd.f32 %v1935_v29, %v6392_v51  ;;  %2642 = vmatprep.mubr.f32.mxu1 %v6148_v40  ;;  %3322 = vmatprep.mubr.f32.mxu0 %v2934_v15 }
 0x448   : > { %3323 = vmatmul.mubr.f32.gmra.mrb[140].mxu0 %v2933_v14  ;;  %v2941_v61 = vmax.f32 %v1934_v10, 0.0 }
 0x449   : > { %v2942_v12 = vmax.f32 %v1936_v57, 0.0  ;;  %v1939_v44 = vpop.f32.mrb[116].mxu1  ;;  %v6698_v7 = vpop.f32.mrb[80].mxu0 }
 0x44a   : > { %7786 = vst [vmem:[#allocation10_spill] sm:$0xff] %v6698_v7  ;;  %v1940_v24 = vadd.f32 %v1939_v44, %v6388_v43  ;;  %v1941_v26 = vpop.f32.mrb[117].mxu1  ;;  %v6701_v6 = vpop.f32.mrb[81].mxu0  ;;  %2643 = vmatmul.mubr.f32.gmra.mrb[222].mxu1 %v6156_v30 }
 0x44b   : > { %v1942_v46 = vadd.f32 %v1941_v26, %v6392_v51  ;;  %2648 = vmatprep.mubr.f32.mxu1 %v6162_v41  ;;  %3327 = vmatprep.mubr.f32.mxu0 %v2942_v12 }
 0x44c   : > { %3328 = vmatmul.mubr.f32.gmra.mrb[142].mxu0 %v2941_v61  ;;  %v2949_v15 = vmax.f32 %v1940_v24, 0.0 }
 0x44d   : > { %v2950_v40 = vmax.f32 %v1942_v46, 0.0  ;;  %v1945_v39 = vpop.f32.mrb[118].mxu1  ;;  %v6706_v11 = vpop.f32.mrb[82].mxu0 }
 0x44e   : > { %7787 = vst [vmem:[#allocation11_spill] sm:$0xff] %v6706_v11  ;;  %v1946_v3 = vadd.f32 %v1945_v39, %v6388_v43  ;;  %v1947_v14 = vpop.f32.mrb[119].mxu1  ;;  %v6709_v10 = vpop.f32.mrb[83].mxu0  ;;  %2649 = vmatmul.mubr.f32.gmra.mrb[224].mxu1 %v6164_v42 }
 0x44f   : > { %7788 = vst [vmem:[#allocation55_spill] sm:$0xff] %v6709_v10  ;;  %v1948_v30 = vadd.f32 %v1947_v14, %v6392_v51  ;;  %2654 = vmatprep.mubr.f32.mxu1 %v6171_v20  ;;  %3332 = vmatprep.mubr.f32.mxu0 %v2950_v40 }
 0x450   : > { %3333 = vmatmul.mubr.f32.gmra.mrb[144].mxu0 %v2949_v15  ;;  %v2957_v12 = vmax.f32 %v1946_v3, 0.0 }
 0x451   : > { %v2958_v41 = vmax.f32 %v1948_v30, 0.0  ;;  %v1951_v29 = vpop.f32.mrb[120].mxu1  ;;  %v6714_v57 = vpop.f32.mrb[84].mxu0 }
 0x452   : > { %7789 = vst [vmem:[#allocation56_spill] sm:$0xff] %v6714_v57  ;;  %v1952_v44 = vadd.f32 %v1951_v29, %v6388_v43  ;;  %v1953_v61 = vpop.f32.mrb[121].mxu1  ;;  %v6717_v24 = vpop.f32.mrb[85].mxu0  ;;  %2655 = vmatmul.mubr.f32.gmra.mrb[226].mxu1 %v6179_v9 }
 0x453   : > { %7790 = vst [vmem:[#allocation57_spill] sm:$0xff] %v6717_v24  ;;  %v1954_v42 = vadd.f32 %v1953_v61, %v6392_v51  ;;  %2660 = vmatprep.mubr.f32.mxu1 %v6185_v56  ;;  %3337 = vmatprep.mubr.f32.mxu0 %v2958_v41 }
 0x454   : > { %3338 = vmatmul.mubr.f32.gmra.mrb[146].mxu0 %v2957_v12  ;;  %v2965_v40 = vmax.f32 %v1952_v44, 0.0 }
 0x455   : > { %v2966_v20 = vmax.f32 %v1954_v42, 0.0  ;;  %v1957_v26 = vpop.f32.mrb[122].mxu1  ;;  %v6722_v46 = vpop.f32.mrb[86].mxu0 }
 0x456   : > { %7791 = vst [vmem:[#allocation58_spill] sm:$0xff] %v6722_v46  ;;  %v1958_v39 = vadd.f32 %v1957_v26, %v6388_v43  ;;  %v1959_v15 = vpop.f32.mrb[123].mxu1  ;;  %v6725_v3 = vpop.f32.mrb[87].mxu0  ;;  %2661 = vmatmul.mubr.f32.gmra.mrb[228].mxu1 %v6187_v59  ;;  %v3109_v59 = vld [vmem:[%s7615_s9 + $0x300] sm:$0xff] }
 0x457   : > { %7792 = vst [vmem:[#allocation59_spill] sm:$0xff] %v6725_v3  ;;  %v1960_v9 = vadd.f32 %v1959_v15, %v6392_v51  ;;  %2666 = vmatprep.mubr.f32.mxu1 %v6194_v54  ;;  %3342 = vmatprep.mubr.f32.mxu0 %v2966_v20  ;;  %v3110_v54 = vld [vmem:[%s7615_s9 + $0x308] sm:$0xff] }
 0x458   : > { %3343 = vmatmul.mubr.f32.gmra.mrb[148].mxu0 %v2965_v40  ;;  %v2973_v41 = vmax.f32 %v1958_v39, 0.0  ;;  %v6744_v42 = vpack.c.bf16 %v3110_v54, %v3109_v59 }
 0x459   : > { %v2974_v56 = vmax.f32 %v1960_v9, 0.0  ;;  %v1963_v14 = vpop.f32.mrb[124].mxu1  ;;  %v6730_v30 = vpop.f32.mrb[88].mxu0 }
 0x45a   : > { %7793 = vst [vmem:[#allocation60_spill] sm:$0xff] %v6730_v30  ;;  %v1964_v29 = vadd.f32 %v1963_v14, %v6388_v43  ;;  %v1965_v12 = vpop.f32.mrb[125].mxu1  ;;  %v6733_v44 = vpop.f32.mrb[89].mxu0  ;;  %2667 = vmatmul.mubr.f32.gmra.mrb[230].mxu1 %v6202_v5 }
 0x45b   : > { %7794 = vst [vmem:[#allocation61_spill] sm:$0xff] %v6733_v44  ;;  %v1966_v61 = vadd.f32 %v1965_v12, %v6392_v51  ;;  %2672 = vmatprep.mubr.f32.mxu1 %v6208_v16  ;;  %3347 = vmatprep.mubr.f32.mxu0 %v2974_v56 }
 0x45c   : > { %3348 = vmatmul.mubr.f32.gmra.mrb[150].mxu0 %v2973_v41  ;;  %4948 = vmatpush1.bf16.msra.mxu1 %v6744_v42  ;;  %v2981_v5 = vmax.f32 %v1964_v29, 0.0 }
 0x45d   : > { %v2982_v20 = vmax.f32 %v1966_v61, 0.0  ;;  %v1969_v26 = vpop.f32.mrb[126].mxu1  ;;  %v6746_v40 = vpop.f32.mrb[90].mxu0  ;;  %4933 = vmatprep.subr.bf16.mxu1 %v7710_v25  ;;  %v3112_v61 = vld [vmem:[%s7615_s9 + $0x318] sm:$0xff] }
 0x45e   : > { %7795 = vst [vmem:[#allocation62_spill] sm:$0xff] %v6746_v40  ;;  %v1970_v39 = vadd.f32 %v1969_v26, %v6388_v43  ;;  %v1971_v15 = vpop.f32.mrb[127].mxu1  ;;  %v6750_v9 = vpop.f32.mrb[91].mxu0  ;;  %2673 = vmatmul.mubr.f32.gmra.mrb[232].mxu1 %v6210_v52  ;;  %v1699_v52 = vsub.s32 2, %v6374_v31  ;;  %v1703_v26 = vsub.s32 3, %v6374_v31 }
 0x45f   : > { %7796 = vst [vmem:[#allocation63_spill] sm:$0xff] %v6750_v9  ;;  %v1972_v16 = vadd.f32 %v1971_v15, %v6392_v51  ;;  %2678 = vmatprep.mubr.f32.mxu1 %v6217_v13  ;;  %3352 = vmatprep.mubr.f32.mxu0 %v2982_v20  ;;  %v3111_v13 = vld [vmem:[%s7615_s9 + $0x310] sm:$0xff] }
 0x460   : > { %3353 = vmatmul.mubr.f32.gmra.mrb[152].mxu0 %v2981_v5  ;;  %v2989_v29 = vmax.f32 %v1970_v39, 0.0  ;;  %v6772_v5 = vpack.c.bf16 %v3112_v61, %v3111_v13  ;;  %v7801_v61 = vld [vmem:[#allocation12_spill] sm:$0xff] }
 0x461   : > { %v2990_v56 = vmax.f32 %v1972_v16, 0.0  ;;  %v1975_v14 = vpop.f32.mrb[128].mxu1  ;;  %v6756_v41 = vpop.f32.mrb[92].mxu0 }
 0x462   : > { %7797 = vst [vmem:[#allocation64_spill] sm:$0xff] %v6756_v41  ;;  %v1976_v12 = vadd.f32 %v1975_v14, %v6388_v43  ;;  %v1977_v59 = vpop.f32.mrb[129].mxu1  ;;  %v6759_v54 = vpop.f32.mrb[93].mxu0  ;;  %2679 = vmatmul.mubr.f32.gmra.mrb[234].mxu1 %v6225_v63 }
 0x463   : > { %7798 = vst [vmem:[#allocation65_spill] sm:$0xff] %v6759_v54  ;;  %v1978_v20 = vadd.f32 %v1977_v59, %v6392_v51  ;;  %2684 = vmatprep.mubr.f32.mxu1 %v6231_v23  ;;  %3357 = vmatprep.mubr.f32.mxu0 %v2990_v56  ;;  %v6782_v23 = vrot.slane %v6383_v17, %v1699_v52 }
 0x464   : > { %3358 = vmatmul.mubr.f32.gmra.mrb[154].mxu0 %v2989_v29  ;;  %4949 = vmatpush1.bf16.msra.mxu1 %v6772_v5  ;;  %v2997_v16 = vmax.f32 %v1976_v12, 0.0  ;;  %v6788_v29 = vrot.slane %v6383_v17, %v1703_v26  ;;  %v3078_v17 = vld [vmem:[%s7615_s9 + $0x208] sm:$0xff] }
 0x465   : > { %v2998_v63 = vmax.f32 %v1978_v20, 0.0  ;;  %v1981_v39 = vpop.f32.mrb[130].mxu1  ;;  %v6774_v15 = vpop.f32.mrb[94].mxu0  ;;  %4934 = vmatprep.subr.bf16.mxu1 %v7710_v25  ;;  %v7802_v20 = vld [vmem:[#allocation13_spill] sm:$0xff] }
 0x466   : > { %7799 = vst [vmem:[#allocation66_spill] sm:$0xff] %v6774_v15  ;;  %v1982_v14 = vadd.f32 %v1981_v39, %v6388_v43  ;;  %v1983_v41 = vpop.f32.mrb[131].mxu1  ;;  %v6778_v54 = vpop.f32.mrb[95].mxu0  ;;  %2685 = vmatmul.mubr.f32.gmra.mrb[236].mxu1 %v6233_v34  ;;  %v3113_v34 = vld [vmem:[%s7615_s9 + $0x320] sm:$0xff] }
 0x467   : > { %7800 = vst [vmem:[#allocation67_spill] sm:$0xff] %v6778_v54  ;;  %v1984_v56 = vadd.f32 %v1983_v41, %v6392_v51  ;;  %2690 = vmatprep.mubr.f32.mxu1 %v6240_v49  ;;  %3362 = vmatprep.mubr.f32.mxu0 %v2998_v63  ;;  %v3077_v49 = vld [vmem:[%s7615_s9 + $0x200] sm:$0xff]  ;;  %v3114_v51 = vld [vmem:[%s7615_s9 + $0x328] sm:$0xff]  ;;  %v7805_v54 = vld [vmem:[#allocation16_spill] sm:$0xff] }
 0x468   : > { %3363 = vmatmul.mubr.f32.gmra.mrb[156].mxu0 %v2997_v16  ;;  %v3005_v59 = vmax.f32 %v1982_v14, 0.0  ;;  %v6806_v26 = vpack.c.bf16 %v3114_v51, %v3113_v34  ;;  %v4837_v16 = vpack.c.bf16 %v3078_v17, %v3077_v49  ;;  %v3079_v14 = vld [vmem:[%s7615_s9 + $0x210] sm:$0xff] }
 0x469   : > { %v3006_v43 = vmax.f32 %v1984_v56, 0.0  ;;  %v2052_v12 = vpop.f32.mrb[132].mxu1  ;;  %v3115_v34 = vld [vmem:[%s7615_s9 + $0x330] sm:$0xff] }
 0x46a   : > { %v2053_v52 = vadd.f32 %v2052_v12, %v6782_v23  ;;  %v2054_v13 = vpop.f32.mrb[133].mxu1  ;;  %2691 = vmatmul.mubr.f32.gmra.mrb[238].mxu1 %v7801_v61  ;;  %v7804_v49 = vld [vmem:[#allocation15_spill] sm:$0xff] }
 0x46b   : > { %v2055_v41 = vadd.f32 %v2054_v13, %v6788_v29  ;;  %2696 = vmatprep.mubr.f32.mxu1 %v7802_v20  ;;  %3367 = vmatprep.mubr.f32.mxu0 %v3006_v43  ;;  %v7803_v13 = vld [vmem:[#allocation14_spill] sm:$0xff]  ;;  %v3080_v43 = vld [vmem:[%s7615_s9 + $0x218] sm:$0xff] }
 0x46c   : > { %3368 = vmatmul.mubr.f32.gmra.mrb[158].mxu0 %v3005_v59  ;;  %4950 = vmatpush1.bf16.msra.mxu1 %v6806_v26  ;;  %v2759_v56 = vmax.f32 %v2053_v52, 0.0  ;;  %v3116_v59 = vld [vmem:[%s7615_s9 + $0x338] sm:$0xff]  ;;  %v4840_v20 = vpack.c.bf16 %v3080_v43, %v3079_v14  ;;  %v3118_v14 = vld [vmem:[%s7615_s9 + $0x348] sm:$0xff] }
 0x46d   : > { %v2760_v63 = vmax.f32 %v2055_v41, 0.0  ;;  %v2058_v39 = vpop.f32.mrb[134].mxu1  ;;  %4935 = vmatprep.subr.bf16.mxu1 %v7710_v25  ;;  %v6826_v17 = vpack.c.bf16 %v3116_v59, %v3115_v34 }
 0x46e   : > { %v2059_v12 = vadd.f32 %v2058_v39, %v6782_v23  ;;  %v2060_v61 = vpop.f32.mrb[135].mxu1  ;;  %2697 = vmatmul.mubr.f32.gmra.mrb[240].mxu1 %v7803_v13  ;;  %v3081_v39 = vld [vmem:[%s7615_s9 + $0x220] sm:$0xff] }
 0x46f   : > { %v2061_v52 = vadd.f32 %v2060_v61, %v6788_v29  ;;  %2702 = vmatprep.mubr.f32.mxu1 %v7804_v49  ;;  %3437 = vmatprep.mubr.f32.mxu0 %v2760_v63  ;;  %v3082_v63 = vld [vmem:[%s7615_s9 + $0x228] sm:$0xff] }
 0x470   : > { %3438 = vmatmul.mubr.f32.vlgmr.msra.gmra.mrb[96].mxu0 %v2759_v56  ;;  %4951 = vmatpush1.bf16.msra.mxu1 %v6826_v17  ;;  %v2767_v13 = vmax.f32 %v2059_v12, 0.0  ;;  %v7806_v12 = vld [vmem:[#allocation17_spill] sm:$0xff]  ;;  %v4843_v59 = vpack.c.bf16 %v3082_v63, %v3081_v39  ;;  %v3120_v39 = vld [vmem:[%s7615_s9 + $0x358] sm:$0xff]  ;;  %v7808_v63 = vld [vmem:[#allocation19_spill] sm:$0xff] }
 0x471   : > { %v2768_v51 = vmax.f32 %v2061_v52, 0.0  ;;  %4838 = vmatpush1.bf16.msra.mxu0 %v4837_v16  ;;  %v2064_v41 = vpop.f32.mrb[136].mxu1  ;;  %v3117_v16 = vld [vmem:[%s7615_s9 + $0x340] sm:$0xff]  ;;  %4936 = vmatprep.subr.bf16.mxu1 %v7710_v25  ;;  %v3083_v52 = vld [vmem:[%s7615_s9 + $0x230] sm:$0xff] }
 0x472   : > { %v2065_v15 = vadd.f32 %v2064_v41, %v6782_v23  ;;  %v2066_v61 = vpop.f32.mrb[137].mxu1  ;;  %2703 = vmatmul.mubr.f32.gmra.mrb[242].mxu1 %v7805_v54  ;;  %4839 = vmatprep.subr.bf16.mxu0 %v7710_v25  ;;  %v6846_v54 = vpack.c.bf16 %v3118_v14, %v3117_v16 }
 0x473   : > { %v2067_v56 = vadd.f32 %v2066_v61, %v6788_v29  ;;  %2708 = vmatprep.mubr.f32.mxu1 %v7806_v12  ;;  %3442 = vmatprep.mubr.f32.mxu0 %v2768_v51  ;;  %v7807_v51 = vld [vmem:[#allocation18_spill] sm:$0xff] }
 0x474   : > { %3443 = vmatmul.mubr.f32.gmra.mrb[98].mxu0 %v2767_v13  ;;  %4952 = vmatpush1.bf16.msra.mxu1 %v6846_v54  ;;  %v2775_v49 = vmax.f32 %v2065_v15, 0.0  ;;  %v3084_v13 = vld [vmem:[%s7615_s9 + $0x238] sm:$0xff] }
 0x475   : > { %v2776_v43 = vmax.f32 %v2067_v56, 0.0  ;;  %v2070_v34 = vpop.f32.mrb[138].mxu1  ;;  %4841 = vmatpush1.bf16.msra.mxu0 %v4840_v20  ;;  %v3119_v20 = vld [vmem:[%s7615_s9 + $0x350] sm:$0xff]  ;;  %4937 = vmatprep.subr.bf16.mxu1 %v7710_v25  ;;  %v4846_v12 = vpack.c.bf16 %v3084_v13, %v3083_v52  ;;  %v3122_v52 = vld [vmem:[%s7615_s9 + $0x368] sm:$0xff]  ;;  %v7810_v13 = vld [vmem:[#allocation21_spill] sm:$0xff] }
 0x476   : > { %v2071_v41 = vadd.f32 %v2070_v34, %v6782_v23  ;;  %v2072_v61 = vpop.f32.mrb[139].mxu1  ;;  %2709 = vmatmul.mubr.f32.gmra.mrb[244].mxu1 %v7807_v51  ;;  %4842 = vmatprep.subr.bf16.mxu0 %v7710_v25  ;;  %v6867_v16 = vpack.c.bf16 %v3120_v39, %v3119_v20  ;;  %v3085_v34 = vld [vmem:[%s7615_s9 + $0x240] sm:$0xff] }
 0x477   : > { %v2073_v15 = vadd.f32 %v2072_v61, %v6788_v29  ;;  %2714 = vmatprep.mubr.f32.mxu1 %v7808_v63  ;;  %3447 = vmatprep.mubr.f32.mxu0 %v2776_v43  ;;  %v7809_v43 = vld [vmem:[#allocation20_spill] sm:$0xff] }
 0x478   : > { %3448 = vmatmul.mubr.f32.gmra.mrb[100].mxu0 %v2775_v49  ;;  %4953 = vmatpush1.bf16.msra.mxu1 %v6867_v16  ;;  %v2783_v51 = vmax.f32 %v2071_v41, 0.0  ;;  %v3086_v49 = vld [vmem:[%s7615_s9 + $0x248] sm:$0xff] }
 0x479   : > { %v2784_v14 = vmax.f32 %v2073_v15, 0.0  ;;  %v2076_v56 = vpop.f32.mrb[140].mxu1  ;;  %4844 = vmatpush1.bf16.msra.mxu0 %v4843_v59  ;;  %v3121_v59 = vld [vmem:[%s7615_s9 + $0x360] sm:$0xff]  ;;  %4938 = vmatprep.subr.bf16.mxu1 %v7710_v25 }
 0x47a   : > { %v2077_v61 = vadd.f32 %v2076_v56, %v6782_v23  ;;  %v2078_v63 = vpop.f32.mrb[141].mxu1  ;;  %2715 = vmatmul.mubr.f32.gmra.mrb[246].mxu1 %v7809_v43  ;;  %4845 = vmatprep.subr.bf16.mxu0 %v7710_v25  ;;  %v6888_v20 = vpack.c.bf16 %v3122_v52, %v3121_v59  ;;  %v4849_v56 = vpack.c.bf16 %v3086_v49, %v3085_v34  ;;  %v3087_v43 = vld [vmem:[%s7615_s9 + $0x250] sm:$0xff]  ;;  %v3124_v34 = vld [vmem:[%s7615_s9 + $0x378] sm:$0xff] }
 0x47b   : > { %v2079_v41 = vadd.f32 %v2078_v63, %v6788_v29  ;;  %2720 = vmatprep.mubr.f32.mxu1 %v7810_v13  ;;  %3452 = vmatprep.mubr.f32.mxu0 %v2784_v14  ;;  %v7811_v14 = vld [vmem:[#allocation22_spill] sm:$0xff]  ;;  %v7812_v49 = vld [vmem:[#allocation23_spill] sm:$0xff] }
 0x47c   : > { %3453 = vmatmul.mubr.f32.gmra.mrb[102].mxu0 %v2783_v51  ;;  %4954 = vmatpush1.bf16.msra.mxu1 %v6888_v20  ;;  %v2791_v40 = vmax.f32 %v2077_v61, 0.0  ;;  %v3088_v51 = vld [vmem:[%s7615_s9 + $0x258] sm:$0xff] }
 0x47d   : > { %v2792_v39 = vmax.f32 %v2079_v41, 0.0  ;;  %v2082_v15 = vpop.f32.mrb[142].mxu1  ;;  %4847 = vmatpush1.bf16.msra.mxu0 %v4846_v12  ;;  %v3123_v12 = vld [vmem:[%s7615_s9 + $0x370] sm:$0xff]  ;;  %4939 = vmatprep.subr.bf16.mxu1 %v7710_v25 }
 0x47e   : > { %v2083_v63 = vadd.f32 %v2082_v15, %v6782_v23  ;;  %v2084_v13 = vpop.f32.mrb[143].mxu1  ;;  %2721 = vmatmul.mubr.f32.gmra.mrb[248].mxu1 %v7811_v14  ;;  %4848 = vmatprep.subr.bf16.mxu0 %v7710_v25  ;;  %v6909_v59 = vpack.c.bf16 %v3124_v34, %v3123_v12  ;;  %v4852_v15 = vpack.c.bf16 %v3088_v51, %v3087_v43  ;;  %v3089_v14 = vld [vmem:[%s7615_s9 + $0x260] sm:$0xff]  ;;  %v3126_v43 = vld [vmem:[%s7615_s9 + $0x388] sm:$0xff] }
 0x47f   : > { %v2085_v61 = vadd.f32 %v2084_v13, %v6788_v29  ;;  %2726 = vmatprep.mubr.f32.mxu1 %v7812_v49  ;;  %3457 = vmatprep.mubr.f32.mxu0 %v2792_v39  ;;  %v7813_v39 = vld [vmem:[#allocation24_spill] sm:$0xff]  ;;  %v7814_v51 = vld [vmem:[#allocation25_spill] sm:$0xff] }
 0x480   : > { %3458 = vmatmul.mubr.f32.gmra.mrb[104].mxu0 %v2791_v40  ;;  %4955 = vmatpush1.bf16.msra.mxu1 %v6909_v59  ;;  %v2799_v9 = vmax.f32 %v2083_v63, 0.0  ;;  %v3090_v40 = vld [vmem:[%s7615_s9 + $0x268] sm:$0xff] }
 0x481   : > { %v2800_v52 = vmax.f32 %v2085_v61, 0.0  ;;  %v2088_v41 = vpop.f32.mrb[144].mxu1  ;;  %4850 = vmatpush1.bf16.msra.mxu0 %v4849_v56  ;;  %v3125_v56 = vld [vmem:[%s7615_s9 + $0x380] sm:$0xff]  ;;  %4940 = vmatprep.subr.bf16.mxu1 %v7710_v25 }
 0x482   : > { %v2089_v13 = vadd.f32 %v2088_v41, %v6782_v23  ;;  %v2090_v49 = vpop.f32.mrb[145].mxu1  ;;  %2727 = vmatmul.mubr.f32.gmra.mrb[250].mxu1 %v7813_v39  ;;  %4851 = vmatprep.subr.bf16.mxu0 %v7710_v25  ;;  %v6930_v12 = vpack.c.bf16 %v3126_v43, %v3125_v56  ;;  %v4855_v41 = vpack.c.bf16 %v3090_v40, %v3089_v14  ;;  %v3091_v39 = vld [vmem:[%s7615_s9 + $0x270] sm:$0xff]  ;;  %v3128_v14 = vld [vmem:[%s7615_s9 + $0x398] sm:$0xff] }
 0x483   : > { %v2091_v63 = vadd.f32 %v2090_v49, %v6788_v29  ;;  %2732 = vmatprep.mubr.f32.mxu1 %v7814_v51  ;;  %3462 = vmatprep.mubr.f32.mxu0 %v2800_v52  ;;  %v7815_v52 = vld [vmem:[#allocation26_spill] sm:$0xff]  ;;  %v7816_v40 = vld [vmem:[#allocation27_spill] sm:$0xff] }
 0x484   : > { %3463 = vmatmul.mubr.f32.gmra.mrb[106].mxu0 %v2799_v9  ;;  %4956 = vmatpush1.bf16.msra.mxu1 %v6930_v12  ;;  %v2807_v30 = vmax.f32 %v2089_v13, 0.0  ;;  %v3092_v9 = vld [vmem:[%s7615_s9 + $0x278] sm:$0xff] }
 0x485   : > { %v2808_v34 = vmax.f32 %v2091_v63, 0.0  ;;  %v2094_v61 = vpop.f32.mrb[146].mxu1  ;;  %4853 = vmatpush1.bf16.msra.mxu0 %v4852_v15  ;;  %v3127_v15 = vld [vmem:[%s7615_s9 + $0x390] sm:$0xff]  ;;  %4941 = vmatprep.subr.bf16.mxu1 %v7710_v25 }
 0x486   : > { %v2095_v49 = vadd.f32 %v2094_v61, %v6782_v23  ;;  %v2096_v51 = vpop.f32.mrb[147].mxu1  ;;  %2733 = vmatmul.mubr.f32.gmra.mrb[252].mxu1 %v7815_v52  ;;  %4854 = vmatprep.subr.bf16.mxu0 %v7710_v25  ;;  %v6951_v56 = vpack.c.bf16 %v3128_v14, %v3127_v15  ;;  %v4858_v61 = vpack.c.bf16 %v3092_v9, %v3091_v39  ;;  %v3093_v52 = vld [vmem:[%s7615_s9 + $0x280] sm:$0xff]  ;;  %v3130_v39 = vld [vmem:[%s7615_s9 + $0x3a8] sm:$0xff] }
 0x487   : > { %v2097_v13 = vadd.f32 %v2096_v51, %v6788_v29  ;;  %2738 = vmatprep.mubr.f32.mxu1 %v7816_v40  ;;  %3467 = vmatprep.mubr.f32.mxu0 %v2808_v34  ;;  %v7817_v34 = vld [vmem:[#allocation28_spill] sm:$0xff]  ;;  %v7818_v9 = vld [vmem:[#allocation29_spill] sm:$0xff] }
 0x488   : > { %3468 = vmatmul.mubr.f32.gmra.mrb[108].mxu0 %v2807_v30  ;;  %4957 = vmatpush1.bf16.msra.mxu1 %v6951_v56  ;;  %v2815_v44 = vmax.f32 %v2095_v49, 0.0  ;;  %v3094_v30 = vld [vmem:[%s7615_s9 + $0x288] sm:$0xff] }
 0x489   : > { %v2816_v43 = vmax.f32 %v2097_v13, 0.0  ;;  %v2100_v63 = vpop.f32.mrb[148].mxu1  ;;  %4856 = vmatpush1.bf16.msra.mxu0 %v4855_v41  ;;  %v3129_v41 = vld [vmem:[%s7615_s9 + $0x3a0] sm:$0xff]  ;;  %4942 = vmatprep.subr.bf16.mxu1 %v7710_v25 }
 0x48a   : > { %v2101_v51 = vadd.f32 %v2100_v63, %v6782_v23  ;;  %v2102_v40 = vpop.f32.mrb[149].mxu1  ;;  %2739 = vmatmul.mubr.f32.gmra.mrb[254].mxu1 %v7817_v34  ;;  %4857 = vmatprep.subr.bf16.mxu0 %v7710_v25  ;;  %v6972_v15 = vpack.c.bf16 %v3130_v39, %v3129_v41  ;;  %v4861_v63 = vpack.c.bf16 %v3094_v30, %v3093_v52  ;;  %v3095_v34 = vld [vmem:[%s7615_s9 + $0x290] sm:$0xff]  ;;  %v3132_v52 = vld [vmem:[%s7615_s9 + $0x3b8] sm:$0xff] }
 0x48b   : > { %v2103_v49 = vadd.f32 %v2102_v40, %v6788_v29  ;;  %2744 = vmatprep.mubr.f32.mxu1 %v7818_v9  ;;  %3472 = vmatprep.mubr.f32.mxu0 %v2816_v43  ;;  %v7819_v43 = vld [vmem:[#allocation30_spill] sm:$0xff] }
 0x48c   : > { %3473 = vmatmul.mubr.f32.gmra.mrb[110].mxu0 %v2815_v44  ;;  %4958 = vmatpush1.bf16.msra.mxu1 %v6972_v15  ;;  %v2823_v46 = vmax.f32 %v2101_v51, 0.0  ;;  %v3096_v44 = vld [vmem:[%s7615_s9 + $0x298] sm:$0xff] }
 0x48d   : > { %v2824_v14 = vmax.f32 %v2103_v49, 0.0  ;;  %v2106_v13 = vpop.f32.mrb[150].mxu1  ;;  %4859 = vmatpush1.bf16.msra.mxu0 %v4858_v61  ;;  %v3131_v61 = vld [vmem:[%s7615_s9 + $0x3b0] sm:$0xff]  ;;  %4943 = vmatprep.subr.bf16.mxu1 %v7710_v25  ;;  %v4864_v49 = vpack.c.bf16 %v3096_v44, %v3095_v34  ;;  %v3134_v34 = vld [vmem:[%s7615_s9 + $0x3c8] sm:$0xff] }
 0x48e   : > { %v2107_v40 = vadd.f32 %v2106_v13, %v6782_v23  ;;  %v2108_v9 = vpop.f32.mrb[151].mxu1  ;;  %2745 = vmatmul.mubr.f32.gmra.mrb[0].mxu1 %v7819_v43  ;;  %4860 = vmatprep.subr.bf16.mxu0 %v7710_v25  ;;  %v6993_v30 = vpack.c.bf16 %v3132_v52, %v3131_v61  ;;  %v3097_v13 = vld [vmem:[%s7615_s9 + $0x2a0] sm:$0xff] }
 0x48f   : > { %v2109_v51 = vadd.f32 %v2108_v9, %v6788_v29  ;;  %2750 = vmatprep.mubr.f32.mxu1 %v7779_v45  ;;  %3477 = vmatprep.mubr.f32.mxu0 %v2824_v14  ;;  %v7820_v14 = vld [vmem:[#allocation32_spill] sm:$0xff] }
 0x490   : > { %3478 = vmatmul.mubr.f32.gmra.mrb[112].mxu0 %v2823_v46  ;;  %4959 = vmatpush1.bf16.msra.mxu1 %v6993_v30  ;;  %v2831_v43 = vmax.f32 %v2107_v40, 0.0  ;;  %v3098_v46 = vld [vmem:[%s7615_s9 + $0x2a8] sm:$0xff] }
 0x491   : > { %v2832_v41 = vmax.f32 %v2109_v51, 0.0  ;;  %v2112_v39 = vpop.f32.mrb[152].mxu1  ;;  %4862 = vmatpush1.bf16.msra.mxu0 %v4861_v63  ;;  %v3133_v63 = vld [vmem:[%s7615_s9 + $0x3c0] sm:$0xff]  ;;  %4944 = vmatprep.subr.bf16.mxu1 %v7710_v25  ;;  %v4867_v51 = vpack.c.bf16 %v3098_v46, %v3097_v13  ;;  %v3136_v13 = vld [vmem:[%s7615_s9 + $0x3d8] sm:$0xff] }
 0x492   : > { %v2113_v9 = vadd.f32 %v2112_v39, %v6782_v23  ;;  %v2114_v45 = vpop.f32.mrb[153].mxu1  ;;  %2751 = vmatmul.mubr.f32.gmra.mrb[2].mxu1 %v7820_v14  ;;  %4863 = vmatprep.subr.bf16.mxu0 %v7710_v25  ;;  %v7014_v44 = vpack.c.bf16 %v3134_v34, %v3133_v63  ;;  %v3099_v39 = vld [vmem:[%s7615_s9 + $0x2b0] sm:$0xff] }
 0x493   : > { %v2115_v40 = vadd.f32 %v2114_v45, %v6788_v29  ;;  %3482 = vmatprep.mubr.f32.mxu0 %v2832_v41  ;;  %v3100_v41 = vld [vmem:[%s7615_s9 + $0x2b8] sm:$0xff] }
 0x494   : > { %3483 = vmatmul.mubr.f32.gmra.mrb[114].mxu0 %v2831_v43  ;;  %4960 = vmatpush1.bf16.msra.mxu1 %v7014_v44  ;;  %v2839_v14 = vmax.f32 %v2113_v9, 0.0  ;;  %v4870_v34 = vpack.c.bf16 %v3100_v41, %v3099_v39  ;;  %v3138_v39 = vld [vmem:[%s7615_s9 + $0x3e8] sm:$0xff] }
 0x495   : > { %v2840_v61 = vmax.f32 %v2115_v40, 0.0  ;;  %v2118_v52 = vpop.f32.mrb[154].mxu1  ;;  %4865 = vmatpush1.bf16.msra.mxu0 %v4864_v49  ;;  %4945 = vmatprep.subr.bf16.mxu1 %v7710_v25  ;;  %v3135_v49 = vld [vmem:[%s7615_s9 + $0x3d0] sm:$0xff]  ;;  %v3101_v40 = vld [vmem:[%s7615_s9 + $0x2c0] sm:$0xff] }
 0x496   : > { %v2119_v3 = vadd.f32 %v2118_v52, %v6782_v23  ;;  %v2120_v45 = vpop.f32.mrb[155].mxu1  ;;  %4866 = vmatprep.subr.bf16.mxu0 %v7710_v25  ;;  %v7033_v9 = vpack.c.bf16 %v3136_v13, %v3135_v49  ;;  %v3103_v13 = vld [vmem:[%s7615_s9 + $0x2d0] sm:$0xff] }
 0x497   : > { %v2121_v43 = vadd.f32 %v2120_v45, %v6788_v29  ;;  %3487 = vmatprep.mubr.f32.mxu0 %v2840_v61  ;;  %v3102_v61 = vld [vmem:[%s7615_s9 + $0x2c8] sm:$0xff] }
 0x498   : > { %3488 = vmatmul.mubr.f32.gmra.mrb[116].mxu0 %v2839_v14  ;;  %4961 = vmatpush1.bf16.msra.mxu1 %v7033_v9  ;;  %v2847_v52 = vmax.f32 %v2119_v3, 0.0  ;;  %v4873_v49 = vpack.c.bf16 %v3102_v61, %v3101_v40 }
 0x499   : > { %v2848_v46 = vmax.f32 %v2121_v43, 0.0  ;;  %v2124_v63 = vpop.f32.mrb[156].mxu1  ;;  %4868 = vmatpush1.bf16.msra.mxu0 %v4867_v51  ;;  %4946 = vmatprep.subr.bf16.mxu1 %v7710_v25  ;;  %v3137_v51 = vld [vmem:[%s7615_s9 + $0x3e0] sm:$0xff] }
 0x49a   : > { %v2125_v57 = vadd.f32 %v2124_v63, %v6782_v23  ;;  %v2126_v24 = vpop.f32.mrb[157].mxu1  ;;  %4869 = vmatprep.subr.bf16.mxu0 %v7710_v25  ;;  %v7052_v14 = vpack.c.bf16 %v3138_v39, %v3137_v51 }
 0x49b   : > { %v2127_v3 = vadd.f32 %v2126_v24, %v6788_v29  ;;  %3492 = vmatprep.mubr.f32.mxu0 %v2848_v46  ;;  %v3104_v24 = vld [vmem:[%s7615_s9 + $0x2d8] sm:$0xff]  ;;  %v3139_v46 = vld [vmem:[%s7615_s9 + $0x3f0] sm:$0xff] }
 0x49c   : > { %3493 = vmatmul.mubr.f32.gmra.mrb[118].mxu0 %v2847_v52  ;;  %4962 = vmatpush1.bf16.msra.mxu1 %v7052_v14  ;;  %v2855_v43 = vmax.f32 %v2125_v57, 0.0  ;;  %v4876_v51 = vpack.c.bf16 %v3104_v24, %v3103_v13 }
 0x49d   : > { %v2856_v45 = vmax.f32 %v2127_v3, 0.0  ;;  %v2130_v41 = vpop.f32.mrb[158].mxu1  ;;  %4871 = vmatpush1.bf16.msra.mxu0 %v4870_v34  ;;  %4947 = vmatprep.subr.bf16.mxu1 %v7710_v25  ;;  %v3140_v34 = vld [vmem:[%s7615_s9 + $0x3f8] sm:$0xff] }
 0x49e   : > { %v2131_v63 = vadd.f32 %v2130_v41, %v6782_v23  ;;  %v2132_v11 = vpop.f32.mrb[159].mxu1  ;;  %4872 = vmatprep.subr.bf16.mxu0 %v7710_v25  ;;  %v7071_v40 = vpack.c.bf16 %v3140_v34, %v3139_v46 }
 0x49f   : > { %v2133_v57 = vadd.f32 %v2132_v11, %v6788_v29  ;;  %3497 = vmatprep.mubr.f32.mxu0 %v2856_v45  ;;  %v3105_v11 = vld [vmem:[%s7615_s9 + $0x2e0] sm:$0xff]  ;;  %v3106_v45 = vld [vmem:[%s7615_s9 + $0x2e8] sm:$0xff] }
 0x4a0   : > { %3498 = vmatmul.mubr.f32.gmra.mrb[120].mxu0 %v2855_v43  ;;  %4963 = vmatpush1.bf16.msra.mxu1 %v7071_v40  ;;  %v2863_v39 = vmax.f32 %v2131_v63, 0.0  ;;  %v4879_v63 = vpack.c.bf16 %v3106_v45, %v3105_v11 }
 0x4a1   : > { %v2864_v52 = vmax.f32 %v2133_v57, 0.0  ;;  %v2136_v61 = vpop.f32.mrb[160].mxu1  ;;  %4874 = vmatpush1.bf16.msra.mxu0 %v4873_v49  ;;  %v3107_v57 = vld [vmem:[%s7615_s9 + $0x2f0] sm:$0xff] }
 0x4a2   : > { %v2137_v3 = vadd.f32 %v2136_v61, %v6782_v23  ;;  %v2138_v41 = vpop.f32.mrb[161].mxu1  ;;  %4875 = vmatprep.subr.bf16.mxu0 %v7710_v25  ;;  %v3108_v61 = vld [vmem:[%s7615_s9 + $0x2f8] sm:$0xff] }
 0x4a3   : > { %v2139_v43 = vadd.f32 %v2138_v41, %v6788_v29  ;;  %3502 = vmatprep.mubr.f32.mxu0 %v2864_v52 }
 0x4a4   : > { %3503 = vmatmul.mubr.f32.gmra.mrb[122].mxu0 %v2863_v39  ;;  %v2871_v24 = vmax.f32 %v2137_v3, 0.0  ;;  %v4882_v3 = vpack.c.bf16 %v3108_v61, %v3107_v57 }
 0x4a5   : > { %v2872_v49 = vmax.f32 %v2139_v43, 0.0  ;;  %v2142_v13 = vpop.f32.mrb[162].mxu1  ;;  %4877 = vmatpush1.bf16.msra.mxu0 %v4876_v51 }
 0x4a6   : > { %v2143_v46 = vadd.f32 %v2142_v13, %v6782_v23  ;;  %v2144_v34 = vpop.f32.mrb[163].mxu1  ;;  %4878 = vmatprep.subr.bf16.mxu0 %v7710_v25 }
 0x4a7   : > { %v2145_v52 = vadd.f32 %v2144_v34, %v6788_v29  ;;  %3507 = vmatprep.mubr.f32.mxu0 %v2872_v49 }
 0x4a8   : > { %3508 = vmatmul.mubr.f32.gmra.mrb[124].mxu0 %v2871_v24  ;;  %v2879_v41 = vmax.f32 %v2143_v46, 0.0 }
 0x4a9   : > { %v2880_v51 = vmax.f32 %v2145_v52, 0.0  ;;  %v2148_v39 = vpop.f32.mrb[164].mxu1  ;;  %4880 = vmatpush1.bf16.msra.mxu0 %v4879_v63 }
 0x4aa   : > { %v2149_v11 = vadd.f32 %v2148_v39, %v6782_v23  ;;  %v2150_v45 = vpop.f32.mrb[165].mxu1  ;;  %4881 = vmatprep.subr.bf16.mxu0 %v7710_v25 }
 0x4ab   : > { %v2151_v43 = vadd.f32 %v2150_v45, %v6788_v29  ;;  %3512 = vmatprep.mubr.f32.mxu0 %v2880_v51 }
 0x4ac   : > { %3513 = vmatmul.mubr.f32.gmra.mrb[126].mxu0 %v2879_v41  ;;  %v2887_v34 = vmax.f32 %v2149_v11, 0.0 }
 0x4ad   : > { %v2888_v13 = vmax.f32 %v2151_v43, 0.0  ;;  %v2154_v10 = vpop.f32.mrb[166].mxu1  ;;  %4883 = vmatpush1.bf16.msra.mxu0 %v4882_v3 }
 0x4ae   : > { %v2155_v49 = vadd.f32 %v2154_v10, %v6782_v23  ;;  %v2156_v24 = vpop.f32.mrb[167].mxu1  ;;  %4884 = vmatprep.subr.bf16.mxu0 %v7710_v25 }
 0x4af   : > { %v2157_v63 = vadd.f32 %v2156_v24, %v6788_v29  ;;  %3517 = vmatprep.mubr.f32.mxu0 %v2888_v13 }
 0x4b0   : > { %3518 = vmatmul.mubr.f32.gmra.mrb[128].mxu0 %v2887_v34  ;;  %v2895_v61 = vmax.f32 %v2155_v49, 0.0 }
 0x4b1   : > { %v2896_v46 = vmax.f32 %v2157_v63, 0.0  ;;  %v2160_v57 = vpop.f32.mrb[168].mxu1 }
 0x4b2   : > { %v2161_v52 = vadd.f32 %v2160_v57, %v6782_v23  ;;  %v2162_v51 = vpop.f32.mrb[169].mxu1 }
 0x4b3   : > { %v2163_v39 = vadd.f32 %v2162_v51, %v6788_v29  ;;  %3522 = vmatprep.mubr.f32.mxu0 %v2896_v46 }
 0x4b4   : > { %3523 = vmatmul.mubr.f32.gmra.mrb[130].mxu0 %v2895_v61  ;;  %v2903_v10 = vmax.f32 %v2161_v52, 0.0 }
 0x4b5   : > { %v2904_v3 = vmax.f32 %v2163_v39, 0.0  ;;  %v2166_v41 = vpop.f32.mrb[170].mxu1 }
 0x4b6   : > { %v2167_v11 = vadd.f32 %v2166_v41, %v6782_v23  ;;  %v2168_v45 = vpop.f32.mrb[171].mxu1 }
 0x4b7   : > { %v2169_v43 = vadd.f32 %v2168_v45, %v6788_v29  ;;  %3527 = vmatprep.mubr.f32.mxu0 %v2904_v3 }
 0x4b8   : > { %3528 = vmatmul.mubr.f32.gmra.mrb[132].mxu0 %v2903_v10  ;;  %v2911_v49 = vmax.f32 %v2167_v11, 0.0 }
 0x4b9   : > { %v2912_v13 = vmax.f32 %v2169_v43, 0.0  ;;  %v2172_v34 = vpop.f32.mrb[172].mxu1 }
 0x4ba   : > { %v2173_v24 = vadd.f32 %v2172_v34, %v6782_v23  ;;  %v2174_v63 = vpop.f32.mrb[173].mxu1 }
 0x4bb   : > { %v2175_v57 = vadd.f32 %v2174_v63, %v6788_v29  ;;  %3532 = vmatprep.mubr.f32.mxu0 %v2912_v13 }
 0x4bc   : > { %3533 = vmatmul.mubr.f32.gmra.mrb[134].mxu0 %v2911_v49  ;;  %v2919_v52 = vmax.f32 %v2173_v24, 0.0 }
 0x4bd   : > { %v2920_v46 = vmax.f32 %v2175_v57, 0.0  ;;  %v2178_v61 = vpop.f32.mrb[174].mxu1 }
 0x4be   : > { %v2179_v51 = vadd.f32 %v2178_v61, %v6782_v23  ;;  %v2180_v39 = vpop.f32.mrb[175].mxu1 }
 0x4bf   : > { %v2181_v41 = vadd.f32 %v2180_v39, %v6788_v29  ;;  %3537 = vmatprep.mubr.f32.mxu0 %v2920_v46 }
 0x4c0   : > { %3538 = vmatmul.mubr.f32.gmra.mrb[136].mxu0 %v2919_v52  ;;  %v2927_v11 = vmax.f32 %v2179_v51, 0.0 }
 0x4c1   : > { %v2928_v3 = vmax.f32 %v2181_v41, 0.0  ;;  %v2184_v10 = vpop.f32.mrb[176].mxu1 }
 0x4c2   : > { %v2185_v45 = vadd.f32 %v2184_v10, %v6782_v23  ;;  %v2186_v43 = vpop.f32.mrb[177].mxu1 }
 0x4c3   : > { %v2187_v34 = vadd.f32 %v2186_v43, %v6788_v29  ;;  %3542 = vmatprep.mubr.f32.mxu0 %v2928_v3 }
 0x4c4   : > { %3543 = vmatmul.mubr.f32.gmra.mrb[138].mxu0 %v2927_v11  ;;  %v2935_v24 = vmax.f32 %v2185_v45, 0.0 }
 0x4c5   : > { %v2936_v13 = vmax.f32 %v2187_v34, 0.0  ;;  %v2190_v49 = vpop.f32.mrb[178].mxu1 }
 0x4c6   : > { %v2191_v63 = vadd.f32 %v2190_v49, %v6782_v23  ;;  %v2192_v57 = vpop.f32.mrb[179].mxu1 }
 0x4c7   : > { %v2193_v61 = vadd.f32 %v2192_v57, %v6788_v29  ;;  %3547 = vmatprep.mubr.f32.mxu0 %v2936_v13 }
 0x4c8   : > { %3548 = vmatmul.mubr.f32.gmra.mrb[140].mxu0 %v2935_v24  ;;  %v2943_v51 = vmax.f32 %v2191_v63, 0.0 }
 0x4c9   : > { %v2944_v46 = vmax.f32 %v2193_v61, 0.0  ;;  %v2196_v52 = vpop.f32.mrb[180].mxu1 }
 0x4ca   : > { %v2197_v39 = vadd.f32 %v2196_v52, %v6782_v23  ;;  %v2198_v41 = vpop.f32.mrb[181].mxu1 }
 0x4cb   : > { %v2199_v10 = vadd.f32 %v2198_v41, %v6788_v29  ;;  %3552 = vmatprep.mubr.f32.mxu0 %v2944_v46 }
 0x4cc   : > { %3553 = vmatmul.mubr.f32.gmra.mrb[142].mxu0 %v2943_v51  ;;  %v2951_v45 = vmax.f32 %v2197_v39, 0.0 }
 0x4cd   : > { %v2952_v3 = vmax.f32 %v2199_v10, 0.0  ;;  %v2202_v11 = vpop.f32.mrb[182].mxu1 }
 0x4ce   : > { %v2203_v43 = vadd.f32 %v2202_v11, %v6782_v23  ;;  %v2204_v34 = vpop.f32.mrb[183].mxu1 }
 0x4cf   : > { %v2205_v49 = vadd.f32 %v2204_v34, %v6788_v29  ;;  %3557 = vmatprep.mubr.f32.mxu0 %v2952_v3 }
 0x4d0   : > { %3558 = vmatmul.mubr.f32.gmra.mrb[144].mxu0 %v2951_v45  ;;  %v2959_v63 = vmax.f32 %v2203_v43, 0.0 }
 0x4d1   : > { %v2960_v13 = vmax.f32 %v2205_v49, 0.0  ;;  %v2208_v24 = vpop.f32.mrb[184].mxu1 }
 0x4d2   : > { %v2209_v57 = vadd.f32 %v2208_v24, %v6782_v23  ;;  %v2210_v61 = vpop.f32.mrb[185].mxu1 }
 0x4d3   : > { %v2211_v52 = vadd.f32 %v2210_v61, %v6788_v29  ;;  %3562 = vmatprep.mubr.f32.mxu0 %v2960_v13 }
 0x4d4   : > { %3563 = vmatmul.mubr.f32.gmra.mrb[146].mxu0 %v2959_v63  ;;  %v2967_v39 = vmax.f32 %v2209_v57, 0.0 }
 0x4d5   : > { %v2968_v46 = vmax.f32 %v2211_v52, 0.0  ;;  %v2214_v51 = vpop.f32.mrb[186].mxu1 }
 0x4d6   : > { %v2215_v41 = vadd.f32 %v2214_v51, %v6782_v23  ;;  %v2216_v10 = vpop.f32.mrb[187].mxu1  ;;  %v1711_v51 = vsub.s32 5, %v6374_v31 }
 0x4d7   : > { %v2217_v11 = vadd.f32 %v2216_v10, %v6788_v29  ;;  %3567 = vmatprep.mubr.f32.mxu0 %v2968_v46  ;;  %v1707_v10 = vsub.s32 4, %v6374_v31 }
 0x4d8   : > { %3568 = vmatmul.mubr.f32.gmra.mrb[148].mxu0 %v2967_v39  ;;  %v2975_v43 = vmax.f32 %v2215_v41, 0.0 }
 0x4d9   : > { %v2976_v3 = vmax.f32 %v2217_v11, 0.0  ;;  %v2220_v45 = vpop.f32.mrb[188].mxu1 }
 0x4da   : > { %v2221_v34 = vadd.f32 %v2220_v45, %v6782_v23  ;;  %v2222_v49 = vpop.f32.mrb[189].mxu1 }
 0x4db   : > { %v2223_v24 = vadd.f32 %v2222_v49, %v6788_v29  ;;  %3572 = vmatprep.mubr.f32.mxu0 %v2976_v3 }
 0x4dc   : > { %3573 = vmatmul.mubr.f32.gmra.mrb[150].mxu0 %v2975_v43  ;;  %v2983_v57 = vmax.f32 %v2221_v34, 0.0  ;;  %v7128_v43 = vld [vmem:[%s7614_s8] sm:$0xff] }
 0x4dd   : > { %v2984_v13 = vmax.f32 %v2223_v24, 0.0  ;;  %v2226_v63 = vpop.f32.mrb[190].mxu1  ;;  %v7131_v34 = vrot.slane %v7128_v43, %v1711_v51 }
 0x4de   : > { %v2227_v61 = vadd.f32 %v2226_v63, %v6782_v23  ;;  %v2228_v52 = vpop.f32.mrb[191].mxu1  ;;  %v7135_v63 = vrot.slane %v7128_v43, %v1707_v10 }
 0x4df   : > { %v2229_v46 = vadd.f32 %v2228_v52, %v6788_v29  ;;  %3577 = vmatprep.mubr.f32.mxu0 %v2984_v13 }
 0x4e0   : > { %3578 = vmatmul.mubr.f32.gmra.mrb[152].mxu0 %v2983_v57  ;;  %v2991_v11 = vmax.f32 %v2227_v61, 0.0 }
 0x4e1   : > { %v2992_v39 = vmax.f32 %v2229_v46, 0.0  ;;  %v2232_v41 = vpop.f32.mrb[192].mxu1  ;;  %v7821_v46 = vld [vmem:[#allocation34_spill] sm:$0xff] }
 0x4e2   : > { %v2233_v3 = vadd.f32 %v2232_v41, %v6782_v23  ;;  %v2234_v45 = vpop.f32.mrb[193].mxu1  ;;  %v2312_v41 = vadd.f32 %v7821_v46, %v7131_v34 }
 0x4e3   : > { %v2235_v49 = vadd.f32 %v2234_v45, %v6788_v29  ;;  %3582 = vmatprep.mubr.f32.mxu0 %v2992_v39  ;;  %v7822_v39 = vld [vmem:[#allocation33_spill] sm:$0xff] }
 0x4e4   : > { %3583 = vmatmul.mubr.f32.gmra.mrb[154].mxu0 %v2991_v11  ;;  %v2999_v57 = vmax.f32 %v2233_v3, 0.0  ;;  %v2310_v11 = vadd.f32 %v7822_v39, %v7135_v63  ;;  %v2762_v3 = vmax.f32 %v2312_v41, 0.0 }
 0x4e5   : > { %v3000_v24 = vmax.f32 %v2235_v49, 0.0  ;;  %v2238_v13 = vpop.f32.mrb[194].mxu1 }
 0x4e6   : > { %v2239_v61 = vadd.f32 %v2238_v13, %v6782_v23  ;;  %v2240_v52 = vpop.f32.mrb[195].mxu1  ;;  %v7823_v23 = vld [vmem:[#allocation36_spill] sm:$0xff] }
 0x4e7   : > { %v2241_v7 = vadd.f32 %v2240_v52, %v6788_v29  ;;  %3587 = vmatprep.mubr.f32.mxu0 %v3000_v24  ;;  %v2318_v13 = vadd.f32 %v7823_v23, %v7131_v34  ;;  %v2761_v29 = vmax.f32 %v2310_v11, 0.0 }
 0x4e8   : > { %3588 = vmatmul.mubr.f32.gmra.mrb[156].mxu0 %v2999_v57  ;;  %v3007_v49 = vmax.f32 %v2239_v61, 0.0  ;;  %v7825_v61 = vld [vmem:[#allocation38_spill] sm:$0xff] }
 0x4e9   : > { %v3008_v51 = vmax.f32 %v2241_v7, 0.0  ;;  %v7141_v45 = vpop.f32.mrb[196].mxu1  ;;  %v7824_v7 = vld [vmem:[#allocation35_spill] sm:$0xff]  ;;  %v2770_v52 = vmax.f32 %v2318_v13, 0.0  ;;  %v2324_v39 = vadd.f32 %v7825_v61, %v7131_v34  ;;  %v7828_v13 = vld [vmem:[#allocation40_spill] sm:$0xff] }
 0x4ea   : > { %v7145_v10 = vpop.f32.mrb[197].mxu1  ;;  %v2316_v24 = vadd.f32 %v7824_v7, %v7135_v63  ;;  %v2330_v7 = vadd.f32 %v7828_v13, %v7131_v34 }
 0x4eb   : > { %3592 = vmatprep.mubr.f32.mxu0 %v3008_v51  ;;  %v2778_v23 = vmax.f32 %v2324_v39, 0.0  ;;  %v7831_v39 = vld [vmem:[#allocation42_spill] sm:$0xff] }
 0x4ec   : > { %3593 = vmatmul.mubr.f32.gmra.mrb[158].mxu0 %v3007_v49  ;;  %v2769_v51 = vmax.f32 %v2316_v24, 0.0  ;;  %v7827_v49 = vld [vmem:[#allocation37_spill] sm:$0xff] }
 0x4ed   : > { %v7149_v46 = vpop.f32.mrb[198].mxu1  ;;  %3662 = vmatprep.mubr.f32.mxu0 %v2762_v3  ;;  %v2322_v3 = vadd.f32 %v7827_v49, %v7135_v63  ;;  %v2786_v49 = vmax.f32 %v2330_v7, 0.0  ;;  %v7834_v7 = vld [vmem:[#allocation44_spill] sm:$0xff] }
 0x4ee   : > { %v7153_v57 = vpop.f32.mrb[199].mxu1 }
 0x4f0   : > { %3663 = vmatmul.mubr.f32.vlgmr.msra.gmra.mrb[96].mxu0 %v2761_v29  ;;  %v7830_v29 = vld [vmem:[#allocation39_spill] sm:$0xff] }
 0x4f1   : > { %4886 = vmatpush1.bf16.msra.mxu0 %v6744_v42  ;;  %v7158_v41 = vpop.f32.mrb[200].mxu1  ;;  %3667 = vmatprep.mubr.f32.mxu0 %v2770_v52  ;;  %v2777_v42 = vmax.f32 %v2322_v3, 0.0  ;;  %v2328_v24 = vadd.f32 %v7830_v29, %v7135_v63 }
 0x4f2   : > { %7826 = vst [vmem:[#allocation12_spill] sm:$0xff] %v7158_v41  ;;  %v7162_v11 = vpop.f32.mrb[201].mxu1  ;;  %4887 = vmatprep.subr.bf16.mxu0 %v7710_v25  ;;  %v2336_v41 = vadd.f32 %v7831_v39, %v7131_v34 }
 0x4f4   : > { %3668 = vmatmul.mubr.f32.gmra.mrb[98].mxu0 %v2769_v51  ;;  %v2785_v51 = vmax.f32 %v2328_v24, 0.0  ;;  %v2794_v29 = vmax.f32 %v2336_v41, 0.0  ;;  %v7837_v41 = vld [vmem:[#allocation46_spill] sm:$0xff] }
 0x4f5   : > { %v7167_v61 = vpop.f32.mrb[202].mxu1  ;;  %3672 = vmatprep.mubr.f32.mxu0 %v2778_v23  ;;  %4889 = vmatpush1.bf16.msra.mxu0 %v6772_v5  ;;  %v7833_v5 = vld [vmem:[#allocation41_spill] sm:$0xff] }
 0x4f6   : > { %7829 = vst [vmem:[#allocation13_spill] sm:$0xff] %v7167_v61  ;;  %v7172_v52 = vpop.f32.mrb[203].mxu1  ;;  %4890 = vmatprep.subr.bf16.mxu0 %v7710_v25  ;;  %v2334_v3 = vadd.f32 %v7833_v5, %v7135_v63  ;;  %v2342_v61 = vadd.f32 %v7834_v7, %v7131_v34 }
 0x4f8   : > { %3673 = vmatmul.mubr.f32.gmra.mrb[100].mxu0 %v2777_v42  ;;  %v2793_v42 = vmax.f32 %v2334_v3, 0.0  ;;  %v2802_v5 = vmax.f32 %v2342_v61, 0.0  ;;  %v7840_v61 = vld [vmem:[#allocation48_spill] sm:$0xff] }
 0x4f9   : > { %v7177_v13 = vpop.f32.mrb[204].mxu1  ;;  %3677 = vmatprep.mubr.f32.mxu0 %v2786_v49  ;;  %4892 = vmatpush1.bf16.msra.mxu0 %v6806_v26  ;;  %v7836_v26 = vld [vmem:[#allocation43_spill] sm:$0xff] }
 0x4fa   : > { %7832 = vst [vmem:[#allocation14_spill] sm:$0xff] %v7177_v13  ;;  %v7182_v23 = vpop.f32.mrb[205].mxu1  ;;  %4893 = vmatprep.subr.bf16.mxu0 %v7710_v25  ;;  %v2340_v24 = vadd.f32 %v7836_v26, %v7135_v63  ;;  %v2348_v13 = vadd.f32 %v7837_v41, %v7131_v34 }
 0x4fc   : > { %3678 = vmatmul.mubr.f32.gmra.mrb[102].mxu0 %v2785_v51  ;;  %v2801_v51 = vmax.f32 %v2340_v24, 0.0  ;;  %v2810_v26 = vmax.f32 %v2348_v13, 0.0  ;;  %v7843_v13 = vld [vmem:[#allocation50_spill] sm:$0xff] }
 0x4fd   : > { %v7187_v39 = vpop.f32.mrb[206].mxu1  ;;  %3682 = vmatprep.mubr.f32.mxu0 %v2794_v29  ;;  %4895 = vmatpush1.bf16.msra.mxu0 %v6826_v17  ;;  %v7839_v17 = vld [vmem:[#allocation45_spill] sm:$0xff] }
 0x4fe   : > { %7835 = vst [vmem:[#allocation15_spill] sm:$0xff] %v7187_v39  ;;  %v7192_v49 = vpop.f32.mrb[207].mxu1  ;;  %4896 = vmatprep.subr.bf16.mxu0 %v7710_v25  ;;  %v2346_v3 = vadd.f32 %v7839_v17, %v7135_v63  ;;  %v2354_v39 = vadd.f32 %v7840_v61, %v7131_v34 }
 0x500   : > { %3683 = vmatmul.mubr.f32.gmra.mrb[104].mxu0 %v2793_v42  ;;  %v2809_v42 = vmax.f32 %v2346_v3, 0.0  ;;  %v2818_v17 = vmax.f32 %v2354_v39, 0.0  ;;  %v7846_v39 = vld [vmem:[#allocation52_spill] sm:$0xff] }
 0x501   : > { %v7197_v7 = vpop.f32.mrb[208].mxu1  ;;  %3687 = vmatprep.mubr.f32.mxu0 %v2802_v5  ;;  %4898 = vmatpush1.bf16.msra.mxu0 %v6846_v54  ;;  %v7842_v54 = vld [vmem:[#allocation47_spill] sm:$0xff] }
 0x502   : > { %7838 = vst [vmem:[#allocation16_spill] sm:$0xff] %v7197_v7  ;;  %v7202_v29 = vpop.f32.mrb[209].mxu1  ;;  %4899 = vmatprep.subr.bf16.mxu0 %v7710_v25  ;;  %v2352_v24 = vadd.f32 %v7842_v54, %v7135_v63  ;;  %v2360_v7 = vadd.f32 %v7843_v13, %v7131_v34 }
 0x504   : > { %3688 = vmatmul.mubr.f32.gmra.mrb[106].mxu0 %v2801_v51  ;;  %v2817_v51 = vmax.f32 %v2352_v24, 0.0  ;;  %v2826_v54 = vmax.f32 %v2360_v7, 0.0  ;;  %v7848_v7 = vld [vmem:[#allocation53_spill] sm:$0xff] }
 0x505   : > { %v7207_v41 = vpop.f32.mrb[210].mxu1  ;;  %3692 = vmatprep.mubr.f32.mxu0 %v2810_v26  ;;  %4901 = vmatpush1.bf16.msra.mxu0 %v6867_v16  ;;  %v7845_v16 = vld [vmem:[#allocation49_spill] sm:$0xff] }
 0x506   : > { %7841 = vst [vmem:[#allocation17_spill] sm:$0xff] %v7207_v41  ;;  %v7212_v5 = vpop.f32.mrb[211].mxu1  ;;  %4902 = vmatprep.subr.bf16.mxu0 %v7710_v25  ;;  %v2358_v3 = vadd.f32 %v7845_v16, %v7135_v63  ;;  %v2366_v41 = vadd.f32 %v7846_v39, %v7131_v34 }
 0x508   : > { %3693 = vmatmul.mubr.f32.gmra.mrb[108].mxu0 %v2809_v42  ;;  %v2825_v42 = vmax.f32 %v2358_v3, 0.0  ;;  %v2834_v16 = vmax.f32 %v2366_v41, 0.0  ;;  %v2378_v41 = vadd.f32 %v6560_v47, %v7131_v34  ;;  %v1715_v47 = vsub.s32 6, %v6374_v31 }
 0x509   : > { %v7217_v61 = vpop.f32.mrb[212].mxu1  ;;  %3697 = vmatprep.mubr.f32.mxu0 %v2818_v17  ;;  %4904 = vmatpush1.bf16.msra.mxu0 %v6888_v20  ;;  %v7847_v20 = vld [vmem:[#allocation51_spill] sm:$0xff] }
 0x50a   : > { %7844 = vst [vmem:[#allocation18_spill] sm:$0xff] %v7217_v61  ;;  %v7222_v26 = vpop.f32.mrb[213].mxu1  ;;  %4905 = vmatprep.subr.bf16.mxu0 %v7710_v25  ;;  %v2364_v24 = vadd.f32 %v7847_v20, %v7135_v63  ;;  %v2372_v61 = vadd.f32 %v7848_v7, %v7131_v34 }
 0x50c   : > { %3698 = vmatmul.mubr.f32.gmra.mrb[110].mxu0 %v2817_v51  ;;  %v2833_v51 = vmax.f32 %v2364_v24, 0.0  ;;  %v2842_v20 = vmax.f32 %v2372_v61, 0.0  ;;  %v2384_v61 = vadd.f32 %v6575_v36, %v7131_v34  ;;  %v2390_v36 = vadd.f32 %v6590_v58, %v7131_v34 }
 0x50d   : > { %v7227_v13 = vpop.f32.mrb[214].mxu1  ;;  %3702 = vmatprep.mubr.f32.mxu0 %v2826_v54  ;;  %4907 = vmatpush1.bf16.msra.mxu0 %v6909_v59  ;;  %v7849_v59 = vld [vmem:[#allocation31_spill] sm:$0xff] }
 0x50e   : > { %v7232_v17 = vpop.f32.mrb[215].mxu1  ;;  %4908 = vmatprep.subr.bf16.mxu0 %v7710_v25  ;;  %v2370_v3 = vadd.f32 %v7849_v59, %v7135_v63  ;;  %v2850_v59 = vmax.f32 %v2378_v41, 0.0  ;;  %v2858_v41 = vmax.f32 %v2384_v61, 0.0  ;;  %v2866_v58 = vmax.f32 %v2390_v36, 0.0 }
 0x510   : > { %3703 = vmatmul.mubr.f32.gmra.mrb[112].mxu0 %v2825_v42  ;;  %v2841_v42 = vmax.f32 %v2370_v3, 0.0  ;;  %v2382_v3 = vadd.f32 %v6572_v37, %v7135_v63 }
 0x511   : > { %v7237_v39 = vpop.f32.mrb[216].mxu1  ;;  %3707 = vmatprep.mubr.f32.mxu0 %v2834_v16  ;;  %4910 = vmatpush1.bf16.msra.mxu0 %v6930_v12  ;;  %v7850_v12 = vld [vmem:[#allocation54_spill] sm:$0xff] }
 0x512   : > { %v7242_v54 = vpop.f32.mrb[217].mxu1  ;;  %4911 = vmatprep.subr.bf16.mxu0 %v7710_v25  ;;  %v2376_v24 = vadd.f32 %v7850_v12, %v7135_v63  ;;  %v2857_v37 = vmax.f32 %v2382_v3, 0.0 }
 0x514   : > { %3708 = vmatmul.mubr.f32.gmra.mrb[114].mxu0 %v2833_v51  ;;  %v1719_v51 = vsub.s32 7, %v6374_v31 }
 0x515   : > { %v7247_v7 = vpop.f32.mrb[218].mxu1  ;;  %3712 = vmatprep.mubr.f32.mxu0 %v2842_v20  ;;  %4913 = vmatpush1.bf16.msra.mxu0 %v6951_v56  ;;  %v2849_v56 = vmax.f32 %v2376_v24, 0.0  ;;  %v2388_v24 = vadd.f32 %v6587_v1, %v7135_v63  ;;  %v2394_v1 = vadd.f32 %v6602_v48, %v7135_v63 }
 0x516   : > { %v7252_v16 = vpop.f32.mrb[219].mxu1  ;;  %4914 = vmatprep.subr.bf16.mxu0 %v7710_v25  ;;  %v7273_v31 = vrot.slane %v7128_v43, %v1719_v51 }
 0x517   : > { %v2873_v48 = vmax.f32 %v2394_v1, 0.0 }
 0x518   : > { %3713 = vmatmul.mubr.f32.gmra.mrb[116].mxu0 %v2841_v42  ;;  %v7270_v42 = vrot.slane %v7128_v43, %v1715_v47  ;;  %v2396_v47 = vadd.f32 %v6605_v62, %v7131_v34  ;;  %v2402_v62 = vadd.f32 %v6620_v18, %v7131_v34 }
 0x519   : > { %v7259_v20 = vpop.f32.mrb[220].mxu1  ;;  %3717 = vmatprep.mubr.f32.mxu0 %v2850_v59  ;;  %4916 = vmatpush1.bf16.msra.mxu0 %v6972_v15 }
 0x51a   : > { %v7264_v12 = vpop.f32.mrb[221].mxu1  ;;  %4917 = vmatprep.subr.bf16.mxu0 %v7710_v25  ;;  %v2874_v36 = vmax.f32 %v2396_v47, 0.0  ;;  %v2882_v18 = vmax.f32 %v2402_v62, 0.0 }
 0x51c   : > { %3718 = vmatmul.mubr.f32.gmra.mrb[118].mxu0 %v2849_v56 }
 0x51d   : > { %v2644_v15 = vpop.f32.mrb[222].mxu1  ;;  %3722 = vmatprep.mubr.f32.mxu0 %v2858_v41  ;;  %4919 = vmatpush1.bf16.msra.mxu0 %v6993_v30  ;;  %v2865_v30 = vmax.f32 %v2388_v24, 0.0 }
 0x51e   : > { %v2645_v59 = vadd.f32 %v2644_v15, %v7270_v42  ;;  %v2646_v61 = vpop.f32.mrb[223].mxu1  ;;  %4920 = vmatprep.subr.bf16.mxu0 %v7710_v25 }
 0x51f   : > { %v2647_v43 = vadd.f32 %v2646_v61, %v7273_v31 }
 0x520   : > { %3723 = vmatmul.mubr.f32.gmra.mrb[120].mxu0 %v2857_v37  ;;  %v2867_v3 = vmax.f32 %v2645_v59, 0.0  ;;  %v2400_v59 = vadd.f32 %v6617_v38, %v7135_v63 }
 0x521   : > { %v2868_v51 = vmax.f32 %v2647_v43, 0.0  ;;  %v2650_v56 = vpop.f32.mrb[224].mxu1  ;;  %3727 = vmatprep.mubr.f32.mxu0 %v2866_v58  ;;  %4922 = vmatpush1.bf16.msra.mxu0 %v7014_v44  ;;  %v2408_v43 = vadd.f32 %v6635_v0, %v7131_v34 }
 0x522   : > { %v2651_v41 = vadd.f32 %v2650_v56, %v7270_v42  ;;  %v2652_v15 = vpop.f32.mrb[225].mxu1  ;;  %4923 = vmatprep.subr.bf16.mxu0 %v7710_v25  ;;  %v2881_v38 = vmax.f32 %v2400_v59, 0.0 }
 0x523   : > { %v2653_v37 = vadd.f32 %v2652_v15, %v7273_v31  ;;  %3952 = vmatprep.mubr.f32.mxu1 %v2868_v51  ;;  %v2890_v0 = vmax.f32 %v2408_v43, 0.0  ;;  %v2414_v15 = vadd.f32 %v6644_v53, %v7131_v34  ;;  %v2420_v53 = vadd.f32 %v6653_v28, %v7131_v34 }
 0x524   : > { %3728 = vmatmul.mubr.f32.gmra.mrb[122].mxu0 %v2865_v30  ;;  %3953 = vmatmul.mubr.f32.vlgmr.msra.gmra.mrb[4].mxu1 %v2867_v3  ;;  %v2875_v61 = vmax.f32 %v2651_v41, 0.0  ;;  %v2406_v30 = vadd.f32 %v6632_v19, %v7135_v63  ;;  %v2426_v28 = vadd.f32 %v6661_v32, %v7131_v34  ;;  %v2432_v32 = vadd.f32 %v6669_v55, %v7131_v34 }
 0x525   : > { %v2876_v44 = vmax.f32 %v2653_v37, 0.0  ;;  %v2656_v24 = vpop.f32.mrb[226].mxu1  ;;  %3732 = vmatprep.mubr.f32.mxu0 %v2874_v36  ;;  %4925 = vmatpush1.bf16.msra.mxu0 %v7033_v9  ;;  %v2412_v37 = vadd.f32 %v6641_v22, %v7135_v63  ;;  %v2418_v22 = vadd.f32 %v6650_v50, %v7135_v63  ;;  %v2424_v50 = vadd.f32 %v6658_v60, %v7135_v63 }
 0x526   : > { %v2657_v58 = vadd.f32 %v2656_v24, %v7270_v42  ;;  %v2658_v47 = vpop.f32.mrb[227].mxu1  ;;  %4926 = vmatprep.subr.bf16.mxu0 %v7710_v25  ;;  %v2889_v19 = vmax.f32 %v2406_v30, 0.0  ;;  %v2430_v60 = vadd.f32 %v6666_v21, %v7135_v63  ;;  %v2438_v55 = vadd.f32 %v6677_v27, %v7131_v34 }
 0x527   : > { %v2659_v51 = vadd.f32 %v2658_v47, %v7273_v31  ;;  %3957 = vmatprep.mubr.f32.mxu1 %v2876_v44  ;;  %v2905_v30 = vmax.f32 %v2418_v22, 0.0  ;;  %v2436_v21 = vadd.f32 %v6674_v2, %v7135_v63  ;;  %v2444_v27 = vadd.f32 %v6685_v8, %v7131_v34 }
 0x528   : > { %3733 = vmatmul.mubr.f32.gmra.mrb[124].mxu0 %v2873_v48  ;;  %3958 = vmatmul.mubr.f32.gmra.mrb[6].mxu1 %v2875_v61  ;;  %v2883_v1 = vmax.f32 %v2657_v58, 0.0  ;;  %v2898_v48 = vmax.f32 %v2414_v15, 0.0  ;;  %v2930_v22 = vmax.f32 %v2438_v55, 0.0  ;;  %v2442_v2 = vadd.f32 %v6682_v35, %v7135_v63 }
 0x529   : > { %v2884_v9 = vmax.f32 %v2659_v51, 0.0  ;;  %v2662_v56 = vpop.f32.mrb[228].mxu1  ;;  %3737 = vmatprep.mubr.f32.mxu0 %v2882_v18  ;;  %4928 = vmatpush1.bf16.msra.mxu0 %v7052_v14  ;;  %v2906_v51 = vmax.f32 %v2420_v53, 0.0  ;;  %v2450_v8 = vadd.f32 %v6693_v4, %v7131_v34  ;;  %v2448_v35 = vadd.f32 %v6690_v33, %v7135_v63 }
 0x52a   : > { %v2663_v3 = vadd.f32 %v2662_v56, %v7270_v42  ;;  %v2664_v41 = vpop.f32.mrb[229].mxu1  ;;  %4929 = vmatprep.subr.bf16.mxu0 %v7710_v25  ;;  %v2456_v4 = vadd.f32 %v6701_v6, %v7131_v34 }
 0x52b   : > { %v2665_v36 = vadd.f32 %v2664_v41, %v7273_v31  ;;  %3962 = vmatprep.mubr.f32.mxu1 %v2884_v9 }
 0x52c   : > { %3738 = vmatmul.mubr.f32.gmra.mrb[126].mxu0 %v2881_v38  ;;  %3963 = vmatmul.mubr.f32.gmra.mrb[8].mxu1 %v2883_v1  ;;  %v2891_v44 = vmax.f32 %v2663_v3, 0.0  ;;  %v2954_v55 = vmax.f32 %v2456_v4, 0.0  ;;  %v7857_v4 = vld [vmem:[#allocation58_spill] sm:$0xff] }
 0x52d   : > { %v2892_v14 = vmax.f32 %v2665_v36, 0.0  ;;  %v2668_v62 = vpop.f32.mrb[230].mxu1  ;;  %3742 = vmatprep.mubr.f32.mxu0 %v2890_v0  ;;  %4931 = vmatpush1.bf16.msra.mxu0 %v7071_v40  ;;  %v2897_v40 = vmax.f32 %v2412_v37, 0.0  ;;  %v2914_v0 = vmax.f32 %v2426_v28, 0.0 }
 0x52e   : > { %v2669_v25 = vadd.f32 %v2668_v62, %v7270_v42  ;;  %v2670_v24 = vpop.f32.mrb[231].mxu1  ;;  %v2913_v62 = vmax.f32 %v2424_v50, 0.0 }
 0x52f   : > { %v2671_v59 = vadd.f32 %v2670_v24, %v7273_v31  ;;  %3967 = vmatprep.mubr.f32.mxu1 %v2892_v14 }
 0x530   : > { %3743 = vmatmul.mubr.f32.gmra.mrb[128].mxu0 %v2889_v19  ;;  %3968 = vmatmul.mubr.f32.gmra.mrb[10].mxu1 %v2891_v44  ;;  %v2899_v47 = vmax.f32 %v2669_v25, 0.0  ;;  %v2922_v25 = vmax.f32 %v2432_v32, 0.0 }
 0x531   : > { %v2900_v61 = vmax.f32 %v2671_v59, 0.0  ;;  %v2674_v58 = vpop.f32.mrb[232].mxu1  ;;  %3747 = vmatprep.mubr.f32.mxu0 %v2898_v48  ;;  %v2921_v59 = vmax.f32 %v2430_v60, 0.0  ;;  %v2945_v60 = vmax.f32 %v2448_v35, 0.0 }
 0x532   : > { %v2675_v18 = vadd.f32 %v2674_v58, %v7270_v42  ;;  %v2676_v43 = vpop.f32.mrb[233].mxu1 }
 0x533   : > { %v2677_v9 = vadd.f32 %v2676_v43, %v7273_v31  ;;  %3972 = vmatprep.mubr.f32.mxu1 %v2900_v61 }
 0x534   : > { %3748 = vmatmul.mubr.f32.gmra.mrb[130].mxu0 %v2897_v40  ;;  %3973 = vmatmul.mubr.f32.gmra.mrb[12].mxu1 %v2899_v47  ;;  %v2907_v1 = vmax.f32 %v2675_v18, 0.0 }
 0x535   : > { %v2908_v56 = vmax.f32 %v2677_v9, 0.0  ;;  %v2680_v38 = vpop.f32.mrb[234].mxu1  ;;  %3752 = vmatprep.mubr.f32.mxu0 %v2906_v51  ;;  %v2929_v51 = vmax.f32 %v2436_v21, 0.0 }
 0x536   : > { %v2681_v3 = vadd.f32 %v2680_v38, %v7270_v42  ;;  %v2682_v41 = vpop.f32.mrb[235].mxu1  ;;  %v2938_v38 = vmax.f32 %v2444_v27, 0.0 }
 0x537   : > { %v2683_v15 = vadd.f32 %v2682_v41, %v7273_v31  ;;  %3977 = vmatprep.mubr.f32.mxu1 %v2908_v56 }
 0x538   : > { %3753 = vmatmul.mubr.f32.gmra.mrb[132].mxu0 %v2905_v30  ;;  %3978 = vmatmul.mubr.f32.gmra.mrb[14].mxu1 %v2907_v1  ;;  %v2915_v19 = vmax.f32 %v2681_v3, 0.0  ;;  %v2937_v3 = vmax.f32 %v2442_v2, 0.0 }
 0x539   : > { %v2916_v36 = vmax.f32 %v2683_v15, 0.0  ;;  %v2686_v14 = vpop.f32.mrb[236].mxu1  ;;  %3757 = vmatprep.mubr.f32.mxu0 %v2914_v0  ;;  %v2946_v15 = vmax.f32 %v2450_v8, 0.0 }
 0x53a   : > { %v2687_v37 = vadd.f32 %v2686_v14, %v7270_v42  ;;  %v2688_v44 = vpop.f32.mrb[237].mxu1 }
 0x53b   : > { %v2689_v24 = vadd.f32 %v2688_v44, %v7273_v31  ;;  %3982 = vmatprep.mubr.f32.mxu1 %v2916_v36 }
 0x53c   : > { %3758 = vmatmul.mubr.f32.gmra.mrb[134].mxu0 %v2913_v62  ;;  %3983 = vmatmul.mubr.f32.gmra.mrb[16].mxu1 %v2915_v19  ;;  %v2923_v61 = vmax.f32 %v2687_v37, 0.0  ;;  %v7851_v19 = vld [vmem:[#allocation10_spill] sm:$0xff] }
 0x53d   : > { %v2924_v48 = vmax.f32 %v2689_v24, 0.0  ;;  %v2692_v53 = vpop.f32.mrb[238].mxu1  ;;  %3762 = vmatprep.mubr.f32.mxu0 %v2922_v25  ;;  %v2454_v33 = vadd.f32 %v7851_v19, %v7135_v63  ;;  %v7852_v24 = vld [vmem:[#allocation55_spill] sm:$0xff] }
 0x53e   : > { %v2693_v58 = vadd.f32 %v2692_v53, %v7270_v42  ;;  %v2694_v40 = vpop.f32.mrb[239].mxu1  ;;  %v2462_v6 = vadd.f32 %v7852_v24, %v7131_v34 }
 0x53f   : > { %v2695_v47 = vadd.f32 %v2694_v40, %v7273_v31  ;;  %3987 = vmatprep.mubr.f32.mxu1 %v2924_v48  ;;  %v2953_v21 = vmax.f32 %v2454_v33, 0.0  ;;  %v7858_v33 = vld [vmem:[#allocation61_spill] sm:$0xff] }
 0x540   : > { %3763 = vmatmul.mubr.f32.gmra.mrb[136].mxu0 %v2921_v59  ;;  %3988 = vmatmul.mubr.f32.gmra.mrb[18].mxu1 %v2923_v61  ;;  %v2931_v28 = vmax.f32 %v2693_v58, 0.0  ;;  %v7853_v61 = vld [vmem:[#allocation11_spill] sm:$0xff] }
 0x541   : > { %v2932_v18 = vmax.f32 %v2695_v47, 0.0  ;;  %v2698_v43 = vpop.f32.mrb[240].mxu1  ;;  %3767 = vmatprep.mubr.f32.mxu0 %v2930_v22  ;;  %v2460_v58 = vadd.f32 %v7853_v61, %v7135_v63  ;;  %v2962_v47 = vmax.f32 %v2462_v6, 0.0  ;;  %v7859_v6 = vld [vmem:[#allocation60_spill] sm:$0xff] }
 0x542   : > { %v2699_v9 = vadd.f32 %v2698_v43, %v7270_v42  ;;  %v2700_v56 = vpop.f32.mrb[241].mxu1 }
 0x543   : > { %v2701_v30 = vadd.f32 %v2700_v56, %v7273_v31  ;;  %3992 = vmatprep.mubr.f32.mxu1 %v2932_v18  ;;  %v7854_v18 = vld [vmem:[#allocation57_spill] sm:$0xff]  ;;  %v7855_v56 = vld [vmem:[#allocation56_spill] sm:$0xff] }
 0x544   : > { %3768 = vmatmul.mubr.f32.gmra.mrb[138].mxu0 %v2929_v51  ;;  %3993 = vmatmul.mubr.f32.gmra.mrb[20].mxu1 %v2931_v28  ;;  %v2939_v41 = vmax.f32 %v2699_v9, 0.0  ;;  %v2468_v43 = vadd.f32 %v7854_v18, %v7131_v34  ;;  %v2961_v9 = vmax.f32 %v2460_v58, 0.0  ;;  %v7860_v58 = vld [vmem:[#allocation63_spill] sm:$0xff] }
 0x545   : > { %v2940_v50 = vmax.f32 %v2701_v30, 0.0  ;;  %v2704_v1 = vpop.f32.mrb[242].mxu1  ;;  %3772 = vmatprep.mubr.f32.mxu0 %v2938_v38  ;;  %v2466_v38 = vadd.f32 %v7855_v56, %v7135_v63 }
 0x546   : > { %v2705_v0 = vadd.f32 %v2704_v1, %v7270_v42  ;;  %v2706_v32 = vpop.f32.mrb[243].mxu1  ;;  %v2970_v1 = vmax.f32 %v2468_v43, 0.0  ;;  %v7861_v43 = vld [vmem:[#allocation62_spill] sm:$0xff] }
 0x547   : > { %v2707_v36 = vadd.f32 %v2706_v32, %v7273_v31  ;;  %3997 = vmatprep.mubr.f32.mxu1 %v2940_v50 }
 0x548   : > { %3773 = vmatmul.mubr.f32.gmra.mrb[140].mxu0 %v2937_v3  ;;  %3998 = vmatmul.mubr.f32.gmra.mrb[22].mxu1 %v2939_v41  ;;  %v2947_v37 = vmax.f32 %v2705_v0, 0.0  ;;  %v7856_v3 = vld [vmem:[#allocation59_spill] sm:$0xff] }
 0x549   : > { %v2948_v14 = vmax.f32 %v2707_v36, 0.0  ;;  %v2710_v62 = vpop.f32.mrb[244].mxu1  ;;  %3777 = vmatprep.mubr.f32.mxu0 %v2946_v15  ;;  %v2474_v35 = vadd.f32 %v7856_v3, %v7131_v34  ;;  %v2969_v15 = vmax.f32 %v2466_v38, 0.0  ;;  %v2472_v36 = vadd.f32 %v7857_v4, %v7135_v63  ;;  %v7862_v38 = vld [vmem:[#allocation65_spill] sm:$0xff] }
 0x54a   : > { %v2711_v44 = vadd.f32 %v2710_v62, %v7270_v42  ;;  %v2712_v25 = vpop.f32.mrb[245].mxu1 }
 0x54b   : > { %v2713_v48 = vadd.f32 %v2712_v25, %v7273_v31  ;;  %4002 = vmatprep.mubr.f32.mxu1 %v2948_v14  ;;  %v2978_v19 = vmax.f32 %v2474_v35, 0.0  ;;  %v2977_v24 = vmax.f32 %v2472_v36, 0.0  ;;  %v7863_v35 = vld [vmem:[#allocation64_spill] sm:$0xff]  ;;  %v7864_v36 = vld [vmem:[#allocation67_spill] sm:$0xff] }
 0x54c   : > { %3778 = vmatmul.mubr.f32.gmra.mrb[142].mxu0 %v2945_v60  ;;  %4003 = vmatmul.mubr.f32.gmra.mrb[24].mxu1 %v2947_v37  ;;  %v2955_v40 = vmax.f32 %v2711_v44, 0.0  ;;  %v2480_v37 = vadd.f32 %v7858_v33, %v7131_v34 }
 0x54d   : > { %v2956_v53 = vmax.f32 %v2713_v48, 0.0  ;;  %v2716_v59 = vpop.f32.mrb[246].mxu1  ;;  %3782 = vmatprep.mubr.f32.mxu0 %v2954_v55  ;;  %v2478_v48 = vadd.f32 %v7859_v6, %v7135_v63 }
 0x54e   : > { %v2717_v22 = vadd.f32 %v2716_v59, %v7270_v42  ;;  %v2718_v27 = vpop.f32.mrb[247].mxu1  ;;  %v2986_v61 = vmax.f32 %v2480_v37, 0.0  ;;  %v7865_v37 = vld [vmem:[#allocation66_spill] sm:$0xff] }
 0x54f   : > { %v2719_v51 = vadd.f32 %v2718_v27, %v7273_v31  ;;  %4007 = vmatprep.mubr.f32.mxu1 %v2956_v53  ;;  %v2985_v18 = vmax.f32 %v2478_v48, 0.0 }
 0x550   : > { %3783 = vmatmul.mubr.f32.gmra.mrb[144].mxu0 %v2953_v21  ;;  %4008 = vmatmul.mubr.f32.gmra.mrb[26].mxu1 %v2955_v40  ;;  %v2963_v8 = vmax.f32 %v2717_v22, 0.0  ;;  %v2486_v40 = vadd.f32 %v7860_v58, %v7131_v34  ;;  %v2575_v58 = vadd.f32 %v7153_v57, %v7273_v31  ;;  %v2587_v57 = vadd.f32 %v7172_v52, %v7273_v31 }
 0x551   : > { %v2964_v2 = vmax.f32 %v2719_v51, 0.0  ;;  %v2722_v28 = vpop.f32.mrb[248].mxu1  ;;  %3787 = vmatprep.mubr.f32.mxu0 %v2962_v47  ;;  %v2484_v51 = vadd.f32 %v7861_v43, %v7135_v63  ;;  %v2599_v52 = vadd.f32 %v7192_v49, %v7273_v31  ;;  %v2611_v49 = vadd.f32 %v7212_v5, %v7273_v31 }
 0x552   : > { %v2723_v30 = vadd.f32 %v2722_v28, %v7270_v42  ;;  %v2724_v50 = vpop.f32.mrb[249].mxu1  ;;  %v2994_v56 = vmax.f32 %v2486_v40, 0.0  ;;  %v2573_v40 = vadd.f32 %v7149_v46, %v7270_v42  ;;  %v2623_v5 = vadd.f32 %v7232_v17, %v7273_v31 }
 0x553   : > { %v2725_v41 = vadd.f32 %v2724_v50, %v7273_v31  ;;  %4012 = vmatprep.mubr.f32.mxu1 %v2964_v2  ;;  %v2993_v3 = vmax.f32 %v2484_v51, 0.0  ;;  %v2635_v17 = vadd.f32 %v7252_v16, %v7273_v31 }
 0x554   : > { %3788 = vmatmul.mubr.f32.gmra.mrb[146].mxu0 %v2961_v9  ;;  %4013 = vmatmul.mubr.f32.gmra.mrb[28].mxu1 %v2963_v8  ;;  %v2971_v14 = vmax.f32 %v2723_v30, 0.0  ;;  %v2492_v8 = vadd.f32 %v7862_v38, %v7131_v34 }
 0x555   : > { %v2972_v0 = vmax.f32 %v2725_v41, 0.0  ;;  %v2728_v32 = vpop.f32.mrb[250].mxu1  ;;  %3792 = vmatprep.mubr.f32.mxu0 %v2970_v1  ;;  %v2490_v41 = vadd.f32 %v7863_v35, %v7135_v63 }
 0x556   : > { %v2729_v62 = vadd.f32 %v2728_v32, %v7270_v42  ;;  %v2730_v60 = vpop.f32.mrb[251].mxu1  ;;  %v3002_v4 = vmax.f32 %v2492_v8, 0.0 }
 0x557   : > { %v2731_v44 = vadd.f32 %v2730_v60, %v7273_v31  ;;  %4017 = vmatprep.mubr.f32.mxu1 %v2972_v0  ;;  %v3001_v33 = vmax.f32 %v2490_v41, 0.0  ;;  %v7870_v41 = vld [vmem:[#allocation16_spill] sm:$0xff] }
 0x558   : > { %3793 = vmatmul.mubr.f32.gmra.mrb[148].mxu0 %v2969_v15  ;;  %4018 = vmatmul.mubr.f32.gmra.mrb[30].mxu1 %v2971_v14  ;;  %v2979_v53 = vmax.f32 %v2729_v62, 0.0  ;;  %v2498_v14 = vadd.f32 %v7864_v36, %v7131_v34  ;;  %v2569_v34 = vadd.f32 %v7145_v10, %v7273_v31 }
 0x559   : > { %v2980_v25 = vmax.f32 %v2731_v44, 0.0  ;;  %v2734_v55 = vpop.f32.mrb[252].mxu1  ;;  %3797 = vmatprep.mubr.f32.mxu0 %v2978_v19  ;;  %v2496_v44 = vadd.f32 %v7865_v37, %v7135_v63 }
 0x55a   : > { %v2735_v59 = vadd.f32 %v2734_v55, %v7270_v42  ;;  %v2736_v21 = vpop.f32.mrb[253].mxu1  ;;  %v3010_v6 = vmax.f32 %v2498_v14, 0.0  ;;  %v2820_v14 = vmax.f32 %v2611_v49, 0.0 }
 0x55b   : > { %v2737_v22 = vadd.f32 %v2736_v21, %v7273_v31  ;;  %4022 = vmatprep.mubr.f32.mxu1 %v2980_v25  ;;  %v2567_v21 = vadd.f32 %v7141_v45, %v7270_v42  ;;  %v2771_v45 = vmax.f32 %v2573_v40, 0.0 }
 0x55c   : > { %3798 = vmatmul.mubr.f32.gmra.mrb[150].mxu0 %v2977_v24  ;;  %4023 = vmatmul.mubr.f32.gmra.mrb[32].mxu1 %v2979_v53  ;;  %v2987_v2 = vmax.f32 %v2735_v59, 0.0  ;;  %v3009_v59 = vmax.f32 %v2496_v44, 0.0  ;;  %v2621_v44 = vadd.f32 %v7227_v13, %v7270_v42  ;;  %v2633_v13 = vadd.f32 %v7247_v7, %v7270_v42  ;;  %v7454_v7 = vld [vmem:[%s7616_s10] ss:$0 sm:$0xff] }
 0x55d   : > { %v2988_v27 = vmax.f32 %v2737_v22, 0.0  ;;  %v2740_v47 = vpop.f32.mrb[254].mxu1  ;;  %3802 = vmatprep.mubr.f32.mxu0 %v2986_v61  ;;  %v2764_v61 = vmax.f32 %v2569_v34, 0.0  ;;  %v2763_v10 = vmax.f32 %v2567_v21, 0.0  ;;  %v2772_v22 = vmax.f32 %v2575_v58, 0.0 }
 0x55e   : > { %v2741_v28 = vadd.f32 %v2740_v47, %v7270_v42  ;;  %v2742_v9 = vpop.f32.mrb[255].mxu1  ;;  %v7866_v47 = vld [vmem:[#allocation12_spill] sm:$0xff] }
 0x55f   : > { %v2743_v30 = vadd.f32 %v2742_v9, %v7273_v31  ;;  %4027 = vmatprep.mubr.f32.mxu1 %v2988_v27  ;;  %v2581_v27 = vadd.f32 %v7162_v11, %v7273_v31  ;;  %v2593_v11 = vadd.f32 %v7182_v23, %v7273_v31  ;;  %v2605_v23 = vadd.f32 %v7202_v29, %v7273_v31 }
 0x560   : > { %3803 = vmatmul.mubr.f32.gmra.mrb[152].mxu0 %v2985_v18  ;;  %4028 = vmatmul.mubr.f32.gmra.mrb[34].mxu1 %v2987_v2  ;;  %v2995_v0 = vmax.f32 %v2741_v28, 0.0  ;;  %v2579_v18 = vadd.f32 %v7866_v47, %v7270_v42  ;;  %v7867_v2 = vld [vmem:[#allocation13_spill] sm:$0xff]  ;;  %v2788_v28 = vmax.f32 %v2587_v57, 0.0  ;;  %v2617_v29 = vadd.f32 %v7222_v26, %v7273_v31 }
 0x561   : > { %v2996_v50 = vmax.f32 %v2743_v30, 0.0  ;;  %v2746_v1 = vpop.f32.mrb[0].mxu1  ;;  %3807 = vmatprep.mubr.f32.mxu0 %v2994_v56  ;;  %v2780_v43 = vmax.f32 %v2581_v27, 0.0  ;;  %v2585_v46 = vadd.f32 %v7867_v2, %v7270_v42  ;;  %v7868_v56 = vld [vmem:[#allocation14_spill] sm:$0xff]  ;;  %v2796_v8 = vmax.f32 %v2593_v11, 0.0 }
 0x562   : > { %v2747_v32 = vadd.f32 %v2746_v1, %v7270_v42  ;;  %v2748_v15 = vpop.f32.mrb[1].mxu1  ;;  %v2779_v51 = vmax.f32 %v2579_v18, 0.0  ;;  %v2591_v38 = vadd.f32 %v7868_v56, %v7270_v42  ;;  %v2629_v26 = vadd.f32 %v7242_v54, %v7273_v31 }
 0x563   : > { %v2749_v62 = vadd.f32 %v2748_v15, %v7273_v31  ;;  %4032 = vmatprep.mubr.f32.mxu1 %v2996_v50  ;;  %v2787_v9 = vmax.f32 %v2585_v46, 0.0  ;;  %v7869_v50 = vld [vmem:[#allocation15_spill] sm:$0xff]  ;;  %v2641_v54 = vadd.f32 %v7264_v12, %v7273_v31 }
 0x564   : > { %3808 = vmatmul.mubr.f32.gmra.mrb[154].mxu0 %v2993_v3  ;;  %4033 = vmatmul.mubr.f32.gmra.mrb[36].mxu1 %v2995_v0  ;;  %v3003_v25 = vmax.f32 %v2747_v32, 0.0  ;;  %v2795_v30 = vmax.f32 %v2591_v38, 0.0  ;;  %v2597_v1 = vadd.f32 %v7869_v50, %v7270_v42  ;;  %v2804_v3 = vmax.f32 %v2599_v52, 0.0 }
 0x565   : > { %v3004_v60 = vmax.f32 %v2749_v62, 0.0  ;;  %v2752_v19 = vpop.f32.mrb[2].mxu1  ;;  %3812 = vmatprep.mubr.f32.mxu0 %v3002_v4  ;;  %v2603_v0 = vadd.f32 %v7870_v41, %v7270_v42  ;;  %v2812_v32 = vmax.f32 %v2605_v23, 0.0  ;;  %v7871_v4 = vld [vmem:[#allocation17_spill] sm:$0xff]  ;;  %v2860_v16 = vmax.f32 %v2641_v54, 0.0 }
 0x566   : > { %v2753_v55 = vadd.f32 %v2752_v19, %v7270_v42  ;;  %v2754_v24 = vpop.f32.mrb[3].mxu1  ;;  %v2803_v35 = vmax.f32 %v2597_v1, 0.0  ;;  %v2609_v36 = vadd.f32 %v7871_v4, %v7270_v42 }
 0x567   : > { %v2755_v48 = vadd.f32 %v2754_v24, %v7273_v31  ;;  %4037 = vmatprep.mubr.f32.mxu1 %v3004_v60  ;;  %v2811_v15 = vmax.f32 %v2603_v0, 0.0  ;;  %v7872_v60 = vld [vmem:[#allocation18_spill] sm:$0xff]  ;;  %v2627_v24 = vadd.f32 %v7237_v39, %v7270_v42  ;;  %v2851_v39 = vmax.f32 %v2633_v13, 0.0 }
 0x568   : > { %3813 = vmatmul.mubr.f32.gmra.mrb[156].mxu0 %v3001_v33  ;;  %4038 = vmatmul.mubr.f32.gmra.mrb[38].mxu1 %v3003_v25  ;;  %v3011_v63 = vmax.f32 %v2753_v55, 0.0  ;;  %v2819_v62 = vmax.f32 %v2609_v36, 0.0  ;;  %v2615_v19 = vadd.f32 %v7872_v60, %v7270_v42  ;;  %v2828_v33 = vmax.f32 %v2617_v29, 0.0 }
 0x569   : > { %v3012_v53 = vmax.f32 %v2755_v48, 0.0  ;;  %3817 = vmatprep.mubr.f32.mxu0 %v3010_v6  ;;  %v2836_v25 = vmax.f32 %v2623_v5, 0.0  ;;  %v2835_v55 = vmax.f32 %v2621_v44, 0.0  ;;  %v2844_v6 = vmax.f32 %v2629_v26, 0.0 }
 0x56a   : > { %v2827_v37 = vmax.f32 %v2615_v19, 0.0  ;;  %v2843_v34 = vmax.f32 %v2627_v24, 0.0  ;;  %v2852_v48 = vmax.f32 %v2635_v17, 0.0 }
 0x56b   : > { %4042 = vmatprep.mubr.f32.mxu1 %v3012_v53  ;;  %v2639_v53 = vadd.f32 %v7259_v20, %v7270_v42 }
 0x56c   : > { %3818 = vmatmul.mubr.f32.gmra.mrb[158].mxu0 %v3009_v59  ;;  %4043 = vmatmul.mubr.f32.gmra.mrb[40].mxu1 %v3011_v63 }
 0x56d   : > { %3887 = vmatprep.mubr.f32.mxu0 %v2764_v61  ;;  %v2859_v59 = vmax.f32 %v2639_v53, 0.0 }
 0x570   : > { %3888 = vmatmul.mubr.f32.vlgmr.msra.gmra.mrb[96].mxu0 %v2763_v10 }
 0x571   : > { %3892 = vmatprep.mubr.f32.mxu0 %v2772_v22 }
 0x574   : > { %3893 = vmatmul.mubr.f32.gmra.mrb[98].mxu0 %v2771_v45 }
 0x575   : > { %3897 = vmatprep.mubr.f32.mxu0 %v2780_v43 }
 0x578   : > { %3898 = vmatmul.mubr.f32.gmra.mrb[100].mxu0 %v2779_v51 }
 0x579   : > { %3902 = vmatprep.mubr.f32.mxu0 %v2788_v28 }
 0x57c   : > { %3903 = vmatmul.mubr.f32.gmra.mrb[102].mxu0 %v2787_v9 }
 0x57d   : > { %3907 = vmatprep.mubr.f32.mxu0 %v2796_v8 }
 0x580   : > { %3908 = vmatmul.mubr.f32.gmra.mrb[104].mxu0 %v2795_v30 }
 0x581   : > { %3912 = vmatprep.mubr.f32.mxu0 %v2804_v3 }
 0x584   : > { %3913 = vmatmul.mubr.f32.gmra.mrb[106].mxu0 %v2803_v35 }
 0x585   : > { %3917 = vmatprep.mubr.f32.mxu0 %v2812_v32 }
 0x588   : > { %3918 = vmatmul.mubr.f32.gmra.mrb[108].mxu0 %v2811_v15 }
 0x589   : > { %3922 = vmatprep.mubr.f32.mxu0 %v2820_v14 }
 0x58c   : > { %3923 = vmatmul.mubr.f32.gmra.mrb[110].mxu0 %v2819_v62 }
 0x58d   : > { %3927 = vmatprep.mubr.f32.mxu0 %v2828_v33 }
 0x590   : > { %3928 = vmatmul.mubr.f32.gmra.mrb[112].mxu0 %v2827_v37 }
 0x591   : > { %3932 = vmatprep.mubr.f32.mxu0 %v2836_v25 }
 0x594   : > { %3933 = vmatmul.mubr.f32.gmra.mrb[114].mxu0 %v2835_v55 }
 0x595   : > { %3937 = vmatprep.mubr.f32.mxu0 %v2844_v6 }
 0x598   : > { %3938 = vmatmul.mubr.f32.gmra.mrb[116].mxu0 %v2843_v34 }
 0x599   : > { %3942 = vmatprep.mubr.f32.mxu0 %v2852_v48 }
 0x59c   : > { %3943 = vmatmul.mubr.f32.gmra.mrb[118].mxu0 %v2851_v39 }
 0x59d   : > { %3947 = vmatprep.mubr.f32.mxu0 %v2860_v16 }
 0x5a0   : > { %3948 = vmatmul.mubr.f32.gmra.mrb[120].mxu0 %v2859_v59 }
 0x5f7   : > { %v3729_v20 = vpop.f32.mrb[122].mxu0  ;;  %v3954_v12 = vpop.f32.mrb[4].mxu1 }
 0x5f8   : > { %5267 = shalt.err (!%p5264_p7)
}
 0x5f9   : > { %s5268_s30 = scalar_lea.hbm %s7459_s17, 64  ;;  %s5272_s25 = scalar_lea.hbm %s7617_s11, 128 }
 0x5fa   : > { %p5269_p8 = scmp.ne.s32.totalorder %s7459_s17, %s5268_s30  ;;  %p5273_p1 = scmp.lt.u32.totalorder %s7459_s17, %s7617_s11 }
 0x5fb   : > { %p5274_p0 = scmp.lt.u32.totalorder %s5272_s25, %s5268_s30  ;;  %p5276_p6 = scmp.lt.u32.totalorder %s5268_s30, %s7459_s17 }
 0x5fc   : > { %p5270_p11 = pnand %p5269_p8, %p7874_p9 }
 0x5fd   : > { %p5275_p5 = por %p5274_p0, %p5273_p1 }
 0x5fe   : > { %p5271_p13 = pneg %p5270_p11 }
 0x5ff   : > { %p5277_p10 = por %p5276_p6, %p5275_p5 }
 0x601   : > { %p5278_p12 = pnand %p5277_p10, %p5271_p13 }
 0x603   : > { %5281 = shalt.err (!%p5278_p12)
}
 0x604   : > { %5173 = dma.vmem_to_hbm [thread:$0]  (%p7874_p9), %s7461_s20, 64, %s7459_s17, %s4082_s15   ;;  %v4977_v42 = vadd.f32 %v7454_v7, %v3729_v20  ;;  %v3731_v31 = vpop.f32.mrb[123].mxu0  ;;  %v3956_v21 = vpop.f32.mrb[5].mxu1  ;;  %vm4048_vm5 = vcmask 64512  }
 0x605   : > { %s7875_s18 = sshll.u32 %s7883_s23, 3  ;;  %v3734_v61 = vpop.f32.mrb[124].mxu0  ;;  %v3959_v58 = vpop.f32.mrb[6].mxu1 }
 0x606   : > { %s7492_s29 = scalar_lea.vmem %s7618_s12, %s7875_s18  ;;  %v4978_v63 = vadd.f32 %v4977_v42, %v3954_v12  ;;  %v4979_v10 = vadd.f32 %v7454_v7, %v3734_v61  ;;  %v3736_v40 = vpop.f32.mrb[125].mxu0  ;;  %v3961_v22 = vpop.f32.mrb[7].mxu1 }
 0x607   : > { %v3739_v45 = vpop.f32.mrb[126].mxu0  ;;  %v3964_v47 = vpop.f32.mrb[8].mxu1 }
 0x608   : > { %4062 = vst.msk [vmem:[%s7492_s29 + $0x68] sm:$0xff] %vm4048_vm5, %v4978_v63  ;;  %v4980_v27 = vadd.f32 %v4979_v10, %v3959_v58  ;;  %v4981_v18 = vadd.f32 %v7454_v7, %v3739_v45  ;;  %v3741_v43 = vpop.f32.mrb[127].mxu0  ;;  %v3966_v57 = vpop.f32.mrb[9].mxu1 }
 0x609   : > { %v3744_v2 = vpop.f32.mrb[128].mxu0  ;;  %v3969_v46 = vpop.f32.mrb[10].mxu1 }
 0x60a   : > { %4063 = vst.msk [vmem:[%s7492_s29 + $0x70] sm:$0xff] %vm4048_vm5, %v4980_v27  ;;  %v4982_v51 = vadd.f32 %v4981_v18, %v3964_v47  ;;  %v4983_v28 = vadd.f32 %v7454_v7, %v3744_v2  ;;  %v3746_v11 = vpop.f32.mrb[129].mxu0  ;;  %v3971_v9 = vpop.f32.mrb[11].mxu1 }
 0x60b   : > { %v3749_v38 = vpop.f32.mrb[130].mxu0  ;;  %v3974_v8 = vpop.f32.mrb[12].mxu1 }
 0x60c   : > { %4064 = vst.msk [vmem:[%s7492_s29 + $0x78] sm:$0xff] %vm4048_vm5, %v4982_v51  ;;  %v4984_v56 = vadd.f32 %v4983_v28, %v3969_v46  ;;  %v4985_v52 = vadd.f32 %v7454_v7, %v3749_v38  ;;  %v3751_v30 = vpop.f32.mrb[131].mxu0  ;;  %v3976_v50 = vpop.f32.mrb[13].mxu1 }
 0x60d   : > { %v3754_v3 = vpop.f32.mrb[132].mxu0  ;;  %v3979_v23 = vpop.f32.mrb[14].mxu1 }
 0x60e   : > { %4065 = vst.msk [vmem:[%s7492_s29 + $0x80] sm:$0xff] %vm4048_vm5, %v4984_v56  ;;  %v4986_v1 = vadd.f32 %v4985_v52, %v3974_v8  ;;  %v4987_v35 = vadd.f32 %v7454_v7, %v3754_v3  ;;  %v3756_v41 = vpop.f32.mrb[133].mxu0  ;;  %v3981_v0 = vpop.f32.mrb[15].mxu1 }
 0x60f   : > { %v3759_v49 = vpop.f32.mrb[134].mxu0  ;;  %v3984_v15 = vpop.f32.mrb[16].mxu1 }
 0x610   : > { %4066 = vst.msk [vmem:[%s7492_s29 + $0x88] sm:$0xff] %vm4048_vm5, %v4986_v1  ;;  %v4988_v32 = vadd.f32 %v4987_v35, %v3979_v23  ;;  %v4989_v4 = vadd.f32 %v7454_v7, %v3759_v49  ;;  %v3761_v36 = vpop.f32.mrb[135].mxu0  ;;  %v3986_v14 = vpop.f32.mrb[17].mxu1 }
 0x612   : > { %4067 = vst.msk [vmem:[%s7492_s29 + $0x90] sm:$0xff] %vm4048_vm5, %v4988_v32  ;;  %v4990_v29 = vadd.f32 %v4989_v4, %v3984_v15 }
 0x613   : > { %v3764_v62 = vpop.f32.mrb[136].mxu0  ;;  %v3989_v60 = vpop.f32.mrb[18].mxu1 }
 0x614   : > { %4068 = vst.msk [vmem:[%s7492_s29 + $0x98] sm:$0xff] %vm4048_vm5, %v4990_v29  ;;  %v4991_v19 = vadd.f32 %v7454_v7, %v3764_v62  ;;  %v3766_v33 = vpop.f32.mrb[137].mxu0  ;;  %v3991_v5 = vpop.f32.mrb[19].mxu1 }
 0x616   : > { %v4992_v37 = vadd.f32 %v4991_v19, %v3989_v60 }
 0x617   : > { %v3769_v44 = vpop.f32.mrb[138].mxu0  ;;  %v3994_v25 = vpop.f32.mrb[20].mxu1 }
 0x618   : > { %4069 = vst.msk [vmem:[%s7492_s29 + $0xa0] sm:$0xff] %vm4048_vm5, %v4992_v37  ;;  %v4993_v26 = vadd.f32 %v7454_v7, %v3769_v44  ;;  %v3771_v55 = vpop.f32.mrb[139].mxu0  ;;  %v3996_v24 = vpop.f32.mrb[21].mxu1 }
 0x61a   : > { %v4994_v6 = vadd.f32 %v4993_v26, %v3994_v25 }
 0x61b   : > { %v3774_v17 = vpop.f32.mrb[140].mxu0  ;;  %v3999_v34 = vpop.f32.mrb[22].mxu1 }
 0x61c   : > { %4070 = vst.msk [vmem:[%s7492_s29 + $0xa8] sm:$0xff] %vm4048_vm5, %v4994_v6  ;;  %v4995_v13 = vadd.f32 %v7454_v7, %v3774_v17  ;;  %v3776_v48 = vpop.f32.mrb[141].mxu0  ;;  %v4001_v54 = vpop.f32.mrb[23].mxu1 }
 0x61e   : > { %v4996_v39 = vadd.f32 %v4995_v13, %v3999_v34 }
 0x61f   : > { %v3779_v53 = vpop.f32.mrb[142].mxu0  ;;  %v4004_v16 = vpop.f32.mrb[24].mxu1 }
 0x620   : > { %4071 = vst.msk [vmem:[%s7492_s29 + $0xb0] sm:$0xff] %vm4048_vm5, %v4996_v39  ;;  %v4997_v59 = vadd.f32 %v7454_v7, %v3779_v53  ;;  %v3781_v20 = vpop.f32.mrb[143].mxu0  ;;  %v4006_v12 = vpop.f32.mrb[25].mxu1 }
 0x622   : > { %v4998_v42 = vadd.f32 %v4997_v59, %v4004_v16 }
 0x623   : > { %v3784_v31 = vpop.f32.mrb[144].mxu0  ;;  %v4009_v21 = vpop.f32.mrb[26].mxu1 }
 0x624   : > { %4072 = vst.msk [vmem:[%s7492_s29 + $0xb8] sm:$0xff] %vm4048_vm5, %v4998_v42  ;;  %v4999_v63 = vadd.f32 %v7454_v7, %v3784_v31  ;;  %v3786_v61 = vpop.f32.mrb[145].mxu0  ;;  %v4011_v58 = vpop.f32.mrb[27].mxu1 }
 0x626   : > { %v5000_v10 = vadd.f32 %v4999_v63, %v4009_v21 }
 0x627   : > { %v3789_v40 = vpop.f32.mrb[146].mxu0  ;;  %v4014_v22 = vpop.f32.mrb[28].mxu1 }
 0x628   : > { %4073 = vst.msk [vmem:[%s7492_s29 + $0xc0] sm:$0xff] %vm4048_vm5, %v5000_v10  ;;  %v5001_v27 = vadd.f32 %v7454_v7, %v3789_v40  ;;  %v3791_v45 = vpop.f32.mrb[147].mxu0  ;;  %v4016_v47 = vpop.f32.mrb[29].mxu1 }
 0x62a   : > { %v5002_v18 = vadd.f32 %v5001_v27, %v4014_v22 }
 0x62b   : > { %v3794_v43 = vpop.f32.mrb[148].mxu0  ;;  %v4019_v57 = vpop.f32.mrb[30].mxu1 }
 0x62c   : > { %4074 = vst.msk [vmem:[%s7492_s29 + $0xc8] sm:$0xff] %vm4048_vm5, %v5002_v18  ;;  %v5003_v51 = vadd.f32 %v7454_v7, %v3794_v43  ;;  %v3796_v2 = vpop.f32.mrb[149].mxu0  ;;  %v4021_v46 = vpop.f32.mrb[31].mxu1 }
 0x62e   : > { %v5004_v28 = vadd.f32 %v5003_v51, %v4019_v57 }
 0x62f   : > { %v3799_v11 = vpop.f32.mrb[150].mxu0  ;;  %v4024_v9 = vpop.f32.mrb[32].mxu1 }
 0x630   : > { %4075 = vst.msk [vmem:[%s7492_s29 + $0xd0] sm:$0xff] %vm4048_vm5, %v5004_v28  ;;  %v5005_v56 = vadd.f32 %v7454_v7, %v3799_v11  ;;  %v3801_v38 = vpop.f32.mrb[151].mxu0  ;;  %v4026_v8 = vpop.f32.mrb[33].mxu1 }
 0x632   : > { %v5006_v52 = vadd.f32 %v5005_v56, %v4024_v9 }
 0x633   : > { %v3804_v30 = vpop.f32.mrb[152].mxu0  ;;  %v4029_v50 = vpop.f32.mrb[34].mxu1 }
 0x634   : > { %4076 = vst.msk [vmem:[%s7492_s29 + $0xd8] sm:$0xff] %vm4048_vm5, %v5006_v52  ;;  %v5007_v1 = vadd.f32 %v7454_v7, %v3804_v30  ;;  %v3806_v3 = vpop.f32.mrb[153].mxu0  ;;  %v4031_v23 = vpop.f32.mrb[35].mxu1 }
 0x636   : > { %v5008_v35 = vadd.f32 %v5007_v1, %v4029_v50 }
 0x637   : > { %v3809_v41 = vpop.f32.mrb[154].mxu0  ;;  %v4034_v0 = vpop.f32.mrb[36].mxu1 }
 0x638   : > { %4077 = vst.msk [vmem:[%s7492_s29 + $0xe0] sm:$0xff] %vm4048_vm5, %v5008_v35  ;;  %v5009_v32 = vadd.f32 %v7454_v7, %v3809_v41  ;;  %v3811_v49 = vpop.f32.mrb[155].mxu0  ;;  %v4036_v15 = vpop.f32.mrb[37].mxu1 }
 0x63a   : > { %v5010_v4 = vadd.f32 %v5009_v32, %v4034_v0 }
 0x63b   : > { %v3814_v36 = vpop.f32.mrb[156].mxu0  ;;  %v4039_v14 = vpop.f32.mrb[38].mxu1 }
 0x63c   : > { %4078 = vst.msk [vmem:[%s7492_s29 + $0xe8] sm:$0xff] %vm4048_vm5, %v5010_v4  ;;  %v5011_v29 = vadd.f32 %v7454_v7, %v3814_v36  ;;  %v3816_v62 = vpop.f32.mrb[157].mxu0  ;;  %v4041_v60 = vpop.f32.mrb[39].mxu1 }
 0x63e   : > { %v5012_v19 = vadd.f32 %v5011_v29, %v4039_v14 }
 0x63f   : > { %v3819_v33 = vpop.f32.mrb[158].mxu0  ;;  %v4044_v5 = vpop.f32.mrb[40].mxu1 }
 0x640   : > { %4079 = vst.msk [vmem:[%s7492_s29 + $0xf0] sm:$0xff] %vm4048_vm5, %v5012_v19  ;;  %v5013_v37 = vadd.f32 %v7454_v7, %v3819_v33  ;;  %v3821_v44 = vpop.f32.mrb[159].mxu0  ;;  %v4046_v25 = vpop.f32.mrb[41].mxu1 }
 0x642   : > { %v5014_v26 = vadd.f32 %v5013_v37, %v4044_v5 }
 0x643   : > { %v3889_v55 = vpop.f32.mrb[96].mxu0 }
 0x644   : > { %4080 = vst.msk [vmem:[%s7492_s29 + $0xf8] sm:$0xff] %vm4048_vm5, %v5014_v26  ;;  %v4964_v24 = vadd.f32 %v7454_v7, %v3889_v55  ;;  %v3891_v6 = vpop.f32.mrb[97].mxu0 }
 0x646   : > { %4049 = vst.msk [vmem:[%s7492_s29] sm:$0xff] %vm4048_vm5, %v4964_v24 }
 0x647   : > { %v3894_v17 = vpop.f32.mrb[98].mxu0 }
 0x648   : > { %v4965_v34 = vadd.f32 %v7454_v7, %v3894_v17  ;;  %v3896_v13 = vpop.f32.mrb[99].mxu0 }
 0x64a   : > { %4050 = vst.msk [vmem:[%s7492_s29 + $0x8] sm:$0xff] %vm4048_vm5, %v4965_v34 }
 0x64b   : > { %v3899_v48 = vpop.f32.mrb[100].mxu0 }
 0x64c   : > { %v4966_v54 = vadd.f32 %v7454_v7, %v3899_v48  ;;  %v3901_v39 = vpop.f32.mrb[101].mxu0 }
 0x64e   : > { %4051 = vst.msk [vmem:[%s7492_s29 + $0x10] sm:$0xff] %vm4048_vm5, %v4966_v54 }
 0x64f   : > { %v3904_v53 = vpop.f32.mrb[102].mxu0 }
 0x650   : > { %v4967_v16 = vadd.f32 %v7454_v7, %v3904_v53  ;;  %v3906_v59 = vpop.f32.mrb[103].mxu0 }
 0x652   : > { %4052 = vst.msk [vmem:[%s7492_s29 + $0x18] sm:$0xff] %vm4048_vm5, %v4967_v16 }
 0x653   : > { %v3909_v20 = vpop.f32.mrb[104].mxu0 }
 0x654   : > { %v4968_v12 = vadd.f32 %v7454_v7, %v3909_v20  ;;  %v3911_v42 = vpop.f32.mrb[105].mxu0 }
 0x656   : > { %4053 = vst.msk [vmem:[%s7492_s29 + $0x20] sm:$0xff] %vm4048_vm5, %v4968_v12 }
 0x657   : > { %v3914_v31 = vpop.f32.mrb[106].mxu0 }
 0x658   : > { %v4969_v21 = vadd.f32 %v7454_v7, %v3914_v31  ;;  %v3916_v63 = vpop.f32.mrb[107].mxu0 }
 0x65a   : > { %4054 = vst.msk [vmem:[%s7492_s29 + $0x28] sm:$0xff] %vm4048_vm5, %v4969_v21 }
 0x65b   : > { %v3919_v61 = vpop.f32.mrb[108].mxu0 }
 0x65c   : > { %v4970_v58 = vadd.f32 %v7454_v7, %v3919_v61  ;;  %v3921_v10 = vpop.f32.mrb[109].mxu0 }
 0x65e   : > { %4055 = vst.msk [vmem:[%s7492_s29 + $0x30] sm:$0xff] %vm4048_vm5, %v4970_v58 }
 0x65f   : > { %v3924_v40 = vpop.f32.mrb[110].mxu0 }
 0x660   : > { %v4971_v22 = vadd.f32 %v7454_v7, %v3924_v40  ;;  %v3926_v27 = vpop.f32.mrb[111].mxu0 }
 0x662   : > { %4056 = vst.msk [vmem:[%s7492_s29 + $0x38] sm:$0xff] %vm4048_vm5, %v4971_v22 }
 0x663   : > { %v3929_v45 = vpop.f32.mrb[112].mxu0 }
 0x664   : > { %v4972_v47 = vadd.f32 %v7454_v7, %v3929_v45  ;;  %v3931_v18 = vpop.f32.mrb[113].mxu0 }
 0x666   : > { %4057 = vst.msk [vmem:[%s7492_s29 + $0x40] sm:$0xff] %vm4048_vm5, %v4972_v47 }
 0x667   : > { %v3934_v43 = vpop.f32.mrb[114].mxu0 }
 0x668   : > { %v4973_v57 = vadd.f32 %v7454_v7, %v3934_v43  ;;  %v3936_v51 = vpop.f32.mrb[115].mxu0 }
 0x66a   : > { %4058 = vst.msk [vmem:[%s7492_s29 + $0x48] sm:$0xff] %vm4048_vm5, %v4973_v57 }
 0x66b   : > { %v3939_v2 = vpop.f32.mrb[116].mxu0 }
 0x66c   : > { %v4974_v46 = vadd.f32 %v7454_v7, %v3939_v2  ;;  %v3941_v28 = vpop.f32.mrb[117].mxu0 }
 0x66e   : > { %4059 = vst.msk [vmem:[%s7492_s29 + $0x50] sm:$0xff] %vm4048_vm5, %v4974_v46 }
 0x66f   : > { %v3944_v11 = vpop.f32.mrb[118].mxu0 }
 0x670   : > { %v4975_v9 = vadd.f32 %v7454_v7, %v3944_v11  ;;  %v3946_v56 = vpop.f32.mrb[119].mxu0 }
 0x672   : > { %4060 = vst.msk [vmem:[%s7492_s29 + $0x58] sm:$0xff] %vm4048_vm5, %v4975_v9 }
 0x673   : > { %v3949_v38 = vpop.f32.mrb[120].mxu0 }
 0x674   : > { %v4976_v8 = vadd.f32 %v7454_v7, %v3949_v38  ;;  %v3951_v52 = vpop.f32.mrb[121].mxu0 }
 0x676   : > { %4061 = vst.msk [vmem:[%s7492_s29 + $0x60] sm:$0xff] %vm4048_vm5, %v4976_v8 }
 0x677 PF: > { %p5185_p9 = scmp.ge.s32.totalorder %s5320_s24, 2  ;;  %s4116_s13 = sand.u32 1, %s5308_s21  }
 0x678   : > { %p7876_p2 = scmp.ne.s32.totalorder %s7692_s14, 0  ;;  %s4117_s23 = scalar_lea.sflag [#allocation4], %s4116_s13 }
 0x67a   : > { %p5180_p3 = pnand %p5185_p9, %p7876_p2 }
 0x67c   : > { %5303 = dma.done.wait (!%p5180_p3), %s4117_s23, 64  }
 0x67d   : > { %5305 = vsyncadd (!%p5180_p3), %s4117_s23, 4294967232  ;;  %s7877_s20 = sld [smem:[#allocation8_spill]]  ;;  %s7878_s23 = sld [smem:[#allocation9_spill]] }
 0x67e   : > { %p24_p4 = scmp.ge.s32.totalorder %s5419_s27, 4   ;;  %s7879_s21 = smov %s5312_s22 }
 0x67f   : > { %s7881_s24 = smov %s5419_s27 }
 0x680   :  { %26 = sbr.rel (!%p24_p4) target bundleno = 4 (0x4), region = 116 }
 0x683   : > { %s7880_s22 = smov %s7877_s20 }
 0x687   :  { %4130 = vsyncpa [#allocation3], 1 }
 0x688   :  { %4132 = vsyncpa [#allocation3 + $0x1], 1 }
 0x689   :  { %4133 = vsyncpa [#allocation4], 1 }
 0x68a   :  { %4135 = vsyncpa [#allocation4 + $0x1], 1 }

</bundles_post_ra>
